<compile_context>
chip_gen: v5e
topology: v5e:2x2
jax: 0.10.0
libtpu: 0.0.40
codegen_flags: <defaults>
</compile_context>

<pallas_src>
from functools import partial

import jax
import jax.numpy as jnp
from jax.experimental import pallas as pl
from jax.experimental.pallas import tpu as pltpu

EMB = 768
NEG_SLOPE = 0.01   # torch.nn.LeakyReLU default
LN_EPS = 1e-5      # torch.nn.LayerNorm default
OUT_PAD = 128      # lane-dense output width (real logits are lanes [:2])


def _layernorm(x, gamma, beta):
    mu = jnp.mean(x, axis=-1, keepdims=True)
    var = jnp.mean((x - mu) ** 2, axis=-1, keepdims=True)
    return (x - mu) * jax.lax.rsqrt(var + LN_EPS) * gamma + beta


def _leaky_relu(x):
    return jnp.where(x > 0, x, NEG_SLOPE * x)


def _round_up(x, m):
    return (x + m - 1) // m * m


def sentence_clf_kernel(inv1_ref, inv2_ref, h1_ref, h2_ref,
                        w1_ref, b1_ref, g1_ref, be1_ref,
                        w2_ref, b2_ref, g2_ref, be2_ref,
                        w3_ref, b3_ref, g3_ref, be3_ref,
                        w4_ref, b4_ref,
                        out_ref, acc1_ref, acc2_ref,
                        *, seq_len, s_tile, ragged):
    s = pl.program_id(1)

    @pl.when(s == 0)
    def _init():
        acc1_ref[...] = jnp.zeros_like(acc1_ref)
        acc2_ref[...] = jnp.zeros_like(acc2_ref)

    # Pooling: unmasked sum over the sequence axis (matches the torch forward:
    # hidden.sum(axis=1) / mask.sum(axis=1)), accumulated in f32 across tiles.
    x1 = h1_ref[...].astype(jnp.float32)
    x2 = h2_ref[...].astype(jnp.float32)
    if ragged:
        # Last sequence tile extends past S: zero the out-of-range positions
        # (their block contents are undefined, never real data).
        pos = s * s_tile + jax.lax.broadcasted_iota(jnp.int32, (1, s_tile, 1), 1)
        valid = pos < seq_len
        x1 = jnp.where(valid, x1, 0.0)
        x2 = jnp.where(valid, x2, 0.0)
    acc1_ref[...] += jnp.sum(x1, axis=1)
    acc2_ref[...] += jnp.sum(x2, axis=1)

    @pl.when(s == pl.num_programs(1) - 1)
    def _finalize():
        # divide-by-count == multiply-by-reciprocal (computed in the wrapper)
        first = (acc1_ref[...] * inv1_ref[...]).astype(jnp.bfloat16)
        second = (acc2_ref[...] * inv2_ref[...]).astype(jnp.bfloat16)

        # concat-free first layer: split W1 on its input axis (static slices).
        x = (jnp.dot(first, w1_ref[:EMB, :], preferred_element_type=jnp.float32)
             + jnp.dot(second, w1_ref[EMB:, :], preferred_element_type=jnp.float32)
             + b1_ref[...])
        x = _leaky_relu(_layernorm(x, g1_ref[...], be1_ref[...]))

        x = jnp.dot(x.astype(jnp.bfloat16), w2_ref[...],
                    preferred_element_type=jnp.float32) + b2_ref[...]
        x = _leaky_relu(_layernorm(x, g2_ref[...], be2_ref[...]))

        x = jnp.dot(x.astype(jnp.bfloat16), w3_ref[...],
                    preferred_element_type=jnp.float32) + b3_ref[...]
        x = _leaky_relu(_layernorm(x, g3_ref[...], be3_ref[...]))

        x = jnp.dot(x.astype(jnp.bfloat16), w4_ref[...],
                    preferred_element_type=jnp.float32) + b4_ref[...]
        out_ref[...] = x.astype(out_ref.dtype)   # lane-dense (b_tile, 128) store


def sentence_clf(hidden_1, mask_1, hidden_2, mask_2, params,
                 *, b_tile=64, s_tile=64):
    """Forward pass after emb_model; returns (B, 2) logits."""
    (w1, b1, g1, be1, w2, b2, g2, be2, w3, b3, g3, be3, w4, b4) = params
    B, S, H = hidden_1.shape
    assert H == EMB

    # emb_model should emit bf16 directly (no extra HBM pass); only cast if it
    # did not.
    if hidden_1.dtype != jnp.bfloat16:
        hidden_1 = hidden_1.astype(jnp.bfloat16)
    if hidden_2.dtype != jnp.bfloat16:
        hidden_2 = hidden_2.astype(jnp.bfloat16)

    # Mask counts -> (B, 1) f32 reciprocals computed outside the kernel (tiny).
    inv1 = 1.0 / jnp.sum(mask_1, axis=1, keepdims=True).astype(jnp.float32)
    inv2 = 1.0 / jnp.sum(mask_2, axis=1, keepdims=True).astype(jnp.float32)

    # bf16 weights for the tail MLP (one-time tiny cast; biases / LN stay f32).
    # bf16 halves the resident weight VMEM and avoids slow multi-pass f32 MXU.
    w1b = w1.astype(jnp.bfloat16)
    w2b = w2.astype(jnp.bfloat16)
    w3b = w3.astype(jnp.bfloat16)
    # Lane-dense final layer: pad (256, 2) -> (256, 128), (1, 2) -> (1, 128).
    w4p = jnp.pad(w4, ((0, 0), (0, OUT_PAD - w4.shape[1]))).astype(jnp.bfloat16)
    b4p = jnp.pad(b4, ((0, 0), (0, OUT_PAD - b4.shape[1])))

    # --- tile selection ------------------------------------------------------
    b_tile = min(b_tile, B)
    # v7x has 2 TensorCores/chip: give the "parallel" batch axis >= 2 tiles
    # whenever the batch is big enough to split (v5e/v6e unaffected).
    if B >= 16 and pl.cdiv(B, b_tile) < 2:
        b_tile = _round_up(pl.cdiv(B, 2), 8)
    # Default s_tile is a multiple of 16 (bf16 sublane packing); small inputs
    # collapse to a single full-extent tile.
    s_tile = min(s_tile, S)
    ragged = (S % s_tile) != 0            # mask the tail seq tile in-kernel

    grid_b = pl.cdiv(B, b_tile)
    grid_s = pl.cdiv(S, s_tile)
    Bp = grid_b * b_tile

    # Only the tiny (B, 1) reciprocals / (Bp, 128) output are padded -- the
    # big (B, S, 768) hidden-state arrays are never copied or padded.
    if Bp != B:
        inv1 = jnp.pad(inv1, ((0, Bp - B), (0, 0)))
        inv2 = jnp.pad(inv2, ((0, Bp - B), (0, 0)))

    def resident(arr):
        # Full-array block with a constant index_map -> stays resident in VMEM.
        return pl.BlockSpec(arr.shape, lambda b, s, _n=arr.ndim: (0,) * _n)

    in_specs = [
        pl.BlockSpec((b_tile, 1), lambda b, s: (b, 0)),               # inv1
        pl.BlockSpec((b_tile, 1), lambda b, s: (b, 0)),               # inv2
        pl.BlockSpec((b_tile, s_tile, EMB), lambda b, s: (b, s, 0)),  # h1
        pl.BlockSpec((b_tile, s_tile, EMB), lambda b, s: (b, s, 0)),  # h2
        resident(w1b), resident(b1), resident(g1), resident(be1),
        resident(w2b), resident(b2), resident(g2), resident(be2),
        resident(w3b), resident(b3), resident(g3), resident(be3),
        resident(w4p), resident(b4p),
    ]
    out_spec = pl.BlockSpec((b_tile, OUT_PAD), lambda b, s: (b, 0))

    kernel = partial(sentence_clf_kernel,
                     seq_len=S, s_tile=s_tile, ragged=ragged)

    out = pl.pallas_call(
        kernel,
        out_shape=jax.ShapeDtypeStruct((Bp, OUT_PAD), jnp.float32),
        grid_spec=pltpu.PrefetchScalarGridSpec(
            num_scalar_prefetch=0,
            grid=(grid_b, grid_s),
            in_specs=in_specs,
            out_specs=out_spec,
            scratch_shapes=[pltpu.VMEM((b_tile, EMB), jnp.float32),
                            pltpu.VMEM((b_tile, EMB), jnp.float32)]),
        compiler_params=pltpu.CompilerParams(
            dimension_semantics=("parallel", "arbitrary"),
            vmem_limit_bytes=48 * 1024 * 1024),
    )(inv1, inv2, hidden_1, hidden_2,
      w1b, b1, g1, be1, w2b, b2, g2, be2, w3b, b3, g3, be3, w4p, b4p)

    return out[:B, :2]


def init_params(key):
    """Deterministic synthetic parameters with the module's shapes."""
    dims = [(2 * EMB, 512), (512, 512), (512, 256), (256, 2)]
    params = []
    for i, (din, dout) in enumerate(dims):
        key, kw, kb = jax.random.split(key, 3)
        params.append(jax.random.normal(kw, (din, dout), jnp.float32) * 0.02)
        params.append(jax.random.normal(kb, (1, dout), jnp.float32) * 0.02)
        if i < 3:  # LayerNorm after the first three Linears
            key, kg = jax.random.split(key)
            params.append(1.0 + 0.1 * jax.random.normal(kg, (1, dout), jnp.float32))
            params.append(jnp.zeros((1, dout), jnp.float32))
    return tuple(params)


def reference(hidden_1, mask_1, hidden_2, mask_2, params):
    """Pure-JAX f32 reference of the torch forward (post emb_model)."""
    (w1, b1, g1, be1, w2, b2, g2, be2, w3, b3, g3, be3, w4, b4) = params
    c1 = jnp.sum(mask_1, axis=1, keepdims=True).astype(jnp.float32)
    c2 = jnp.sum(mask_2, axis=1, keepdims=True).astype(jnp.float32)
    first = jnp.sum(hidden_1.astype(jnp.float32), axis=1) / c1
    second = jnp.sum(hidden_2.astype(jnp.float32), axis=1) / c2
    x = jnp.concatenate([first, second], axis=1)
    x = _leaky_relu(_layernorm(x @ w1 + b1, g1, be1))
    x = _leaky_relu(_layernorm(x @ w2 + b2, g2, be2))
    x = _leaky_relu(_layernorm(x @ w3 + b3, g3, be3))
    return x @ w4 + b4


if __name__ == "__main__":
    key = jax.random.PRNGKey(0)
    B, S = 2, 8

    k1, k2, key = jax.random.split(key, 3)
    # emb_model's second-to-last hidden states, already in bf16 (the cast is
    # considered part of emb_model's output path, not this kernel's wrapper).
    hidden_1 = jax.random.normal(k1, (B, S, EMB), jnp.float32).astype(jnp.bfloat16)
    hidden_2 = jax.random.normal(k2, (B, S, EMB), jnp.float32).astype(jnp.bfloat16)
    # attention masks: 1s with trailing 0s (padding), int32 like torch
    mask_1 = jnp.array([[1] * 8, [1] * 6 + [0] * 2], jnp.int32)
    mask_2 = jnp.array([[1] * 7 + [0], [1] * 5 + [0] * 3], jnp.int32)

    params = init_params(key)

    out = sentence_clf(hidden_1, mask_1, hidden_2, mask_2, params)
    out = jax.block_until_ready(out)

    # f32 reference on the same bf16 hidden states; the kernel additionally
    # runs the tail MLP with bf16 weights/activations (f32 accumulation), so
    # allow a few-percent tolerance.
    ref = reference(hidden_1, mask_1, hidden_2, mask_2, params)

    assert out.shape == (B, 2)
    assert jnp.allclose(out, ref, atol=5e-2, rtol=5e-2), (out, ref)
    print("KERNEL_OK")
</pallas_src>

<mosaic_0001>
module attributes {stable_mosaic.version = 11 : i64} {
  func.func @sentence_clf_kernel(%arg0: i32, %arg1: i32, %arg2: memref<2x1xf32, #tpu.memory_space<vmem>>, %arg3: memref<2x1xf32, #tpu.memory_space<vmem>>, %arg4: memref<2x8x768xbf16, #tpu.memory_space<vmem>>, %arg5: memref<2x8x768xbf16, #tpu.memory_space<vmem>>, %arg6: memref<1536x512xbf16, #tpu.memory_space<vmem>>, %arg7: memref<1x512xf32, #tpu.memory_space<vmem>>, %arg8: memref<1x512xf32, #tpu.memory_space<vmem>>, %arg9: memref<1x512xf32, #tpu.memory_space<vmem>>, %arg10: memref<512x512xbf16, #tpu.memory_space<vmem>>, %arg11: memref<1x512xf32, #tpu.memory_space<vmem>>, %arg12: memref<1x512xf32, #tpu.memory_space<vmem>>, %arg13: memref<1x512xf32, #tpu.memory_space<vmem>>, %arg14: memref<512x256xbf16, #tpu.memory_space<vmem>>, %arg15: memref<1x256xf32, #tpu.memory_space<vmem>>, %arg16: memref<1x256xf32, #tpu.memory_space<vmem>>, %arg17: memref<1x256xf32, #tpu.memory_space<vmem>>, %arg18: memref<256x128xbf16, #tpu.memory_space<vmem>>, %arg19: memref<1x128xf32, #tpu.memory_space<vmem>>, %arg20: memref<2x128xf32, #tpu.memory_space<vmem>>, %arg21: memref<2x768xf32, #tpu.memory_space<vmem>>, %arg22: memref<2x768xf32, #tpu.memory_space<vmem>>) attributes {dimension_semantics = [#tpu.dimension_semantics<parallel>, #tpu.dimension_semantics<arbitrary>], iteration_bounds = array<i64: 1, 1>, scalar_prefetch = 0 : i64, scratch_operands = 2 : i64, tpu.core_type = #tpu.core_type<tc>, window_params = [{transform_indices = @transform_0, window_bounds = array<i64: 2, 1>}, {transform_indices = @transform_1, window_bounds = array<i64: 2, 1>}, {transform_indices = @transform_2, window_bounds = array<i64: 2, 8, 768>}, {transform_indices = @transform_3, window_bounds = array<i64: 2, 8, 768>}, {pipeline_mode = #tpu.pipeline_mode<synchronous>, transform_indices = @transform_4, window_bounds = array<i64: 1536, 512>}, {pipeline_mode = #tpu.pipeline_mode<synchronous>, transform_indices = @transform_5, window_bounds = array<i64: 1, 512>}, {pipeline_mode = #tpu.pipeline_mode<synchronous>, transform_indices = @transform_6, window_bounds = array<i64: 1, 512>}, {pipeline_mode = #tpu.pipeline_mode<synchronous>, transform_indices = @transform_7, window_bounds = array<i64: 1, 512>}, {pipeline_mode = #tpu.pipeline_mode<synchronous>, transform_indices = @transform_8, window_bounds = array<i64: 512, 512>}, {pipeline_mode = #tpu.pipeline_mode<synchronous>, transform_indices = @transform_9, window_bounds = array<i64: 1, 512>}, {pipeline_mode = #tpu.pipeline_mode<synchronous>, transform_indices = @transform_10, window_bounds = array<i64: 1, 512>}, {pipeline_mode = #tpu.pipeline_mode<synchronous>, transform_indices = @transform_11, window_bounds = array<i64: 1, 512>}, {pipeline_mode = #tpu.pipeline_mode<synchronous>, transform_indices = @transform_12, window_bounds = array<i64: 512, 256>}, {pipeline_mode = #tpu.pipeline_mode<synchronous>, transform_indices = @transform_13, window_bounds = array<i64: 1, 256>}, {pipeline_mode = #tpu.pipeline_mode<synchronous>, transform_indices = @transform_14, window_bounds = array<i64: 1, 256>}, {pipeline_mode = #tpu.pipeline_mode<synchronous>, transform_indices = @transform_15, window_bounds = array<i64: 1, 256>}, {pipeline_mode = #tpu.pipeline_mode<synchronous>, transform_indices = @transform_16, window_bounds = array<i64: 256, 128>}, {pipeline_mode = #tpu.pipeline_mode<synchronous>, transform_indices = @transform_17, window_bounds = array<i64: 1, 128>}, {transform_indices = @transform_18, window_bounds = array<i64: 2, 128>}]} {
    %c0_i32 = arith.constant 0 : i32
    %0 = arith.cmpi eq, %arg1, %c0_i32 : i32
    %1 = arith.extui %0 : i1 to i32
    %c0_i32_0 = arith.constant 0 : i32
    %2 = arith.cmpi ne, %1, %c0_i32_0 : i32
    scf.if %2 {
      %cst_17 = arith.constant 0.000000e+00 : f32
      %18 = vector.broadcast %cst_17 : f32 to vector<2x768xf32>
      %c0_18 = arith.constant 0 : index
      %c0_19 = arith.constant 0 : index
      %19 = vector.load %arg21[%c0_18, %c0_19] : memref<2x768xf32, #tpu.memory_space<vmem>>, vector<2x768xf32>
      tpu.vector_store %arg21[%c0_18, %c0_19], %18 {strides = array<i32>} : memref<2x768xf32, #tpu.memory_space<vmem>>, vector<2x768xf32>,
      %cst_20 = arith.constant 0.000000e+00 : f32
      %20 = vector.broadcast %cst_20 : f32 to vector<2x768xf32>
      %c0_21 = arith.constant 0 : index
      %c0_22 = arith.constant 0 : index
      %21 = vector.load %arg22[%c0_21, %c0_22] : memref<2x768xf32, #tpu.memory_space<vmem>>, vector<2x768xf32>
      tpu.vector_store %arg22[%c0_21, %c0_22], %20 {strides = array<i32>} : memref<2x768xf32, #tpu.memory_space<vmem>>, vector<2x768xf32>,
    } else {
    }
    %c0 = arith.constant 0 : index
    %c0_1 = arith.constant 0 : index
    %c0_2 = arith.constant 0 : index
    %3 = vector.load %arg4[%c0, %c0_1, %c0_2] : memref<2x8x768xbf16, #tpu.memory_space<vmem>>, vector<2x8x768xbf16>
    %4 = arith.extf %3 : vector<2x8x768xbf16> to vector<2x8x768xf32>
    %c0_3 = arith.constant 0 : index
    %c0_4 = arith.constant 0 : index
    %c0_5 = arith.constant 0 : index
    %5 = vector.load %arg5[%c0_3, %c0_4, %c0_5] : memref<2x8x768xbf16, #tpu.memory_space<vmem>>, vector<2x8x768xbf16>
    %6 = arith.extf %5 : vector<2x8x768xbf16> to vector<2x8x768xf32>
    %c0_6 = arith.constant 0 : index
    %c0_7 = arith.constant 0 : index
    %7 = vector.load %arg21[%c0_6, %c0_7] : memref<2x768xf32, #tpu.memory_space<vmem>>, vector<2x768xf32>
    %cst = arith.constant dense<0.000000e+00> : vector<2x768xf32>
    %8 = vector.multi_reduction <add>, %4, %cst [1] : vector<2x8x768xf32> to vector<2x768xf32>
    %9 = arith.addf %7, %8 : vector<2x768xf32>
    %c0_8 = arith.constant 0 : index
    %c0_9 = arith.constant 0 : index
    %10 = vector.load %arg21[%c0_8, %c0_9] : memref<2x768xf32, #tpu.memory_space<vmem>>, vector<2x768xf32>
    tpu.vector_store %arg21[%c0_8, %c0_9], %9 {strides = array<i32>} : memref<2x768xf32, #tpu.memory_space<vmem>>, vector<2x768xf32>,
    %c0_10 = arith.constant 0 : index
    %c0_11 = arith.constant 0 : index
    %11 = vector.load %arg22[%c0_10, %c0_11] : memref<2x768xf32, #tpu.memory_space<vmem>>, vector<2x768xf32>
    %cst_12 = arith.constant dense<0.000000e+00> : vector<2x768xf32>
    %12 = vector.multi_reduction <add>, %6, %cst_12 [1] : vector<2x8x768xf32> to vector<2x768xf32>
    %13 = arith.addf %11, %12 : vector<2x768xf32>
    %c0_13 = arith.constant 0 : index
    %c0_14 = arith.constant 0 : index
    %14 = vector.load %arg22[%c0_13, %c0_14] : memref<2x768xf32, #tpu.memory_space<vmem>>, vector<2x768xf32>
    tpu.vector_store %arg22[%c0_13, %c0_14], %13 {strides = array<i32>} : memref<2x768xf32, #tpu.memory_space<vmem>>, vector<2x768xf32>,
    %c0_i32_15 = arith.constant 0 : i32
    %15 = arith.cmpi eq, %arg1, %c0_i32_15 : i32
    %16 = arith.extui %15 : i1 to i32
    %c0_i32_16 = arith.constant 0 : i32
    %17 = arith.cmpi ne, %16, %c0_i32_16 : i32
    scf.if %17 {
      %c0_17 = arith.constant 0 : index
      %c0_18 = arith.constant 0 : index
      %18 = vector.load %arg21[%c0_17, %c0_18] : memref<2x768xf32, #tpu.memory_space<vmem>>, vector<2x768xf32>
      %c0_19 = arith.constant 0 : index
      %c0_20 = arith.constant 0 : index
      %19 = vector.load %arg2[%c0_19, %c0_20] : memref<2x1xf32, #tpu.memory_space<vmem>>, vector<2x1xf32>
      %20 = vector.broadcast %19 : vector<2x1xf32> to vector<2x768xf32>
      %21 = arith.mulf %18, %20 : vector<2x768xf32>
      %22 = arith.truncf %21 : vector<2x768xf32> to vector<2x768xbf16>
      %c0_21 = arith.constant 0 : index
      %c0_22 = arith.constant 0 : index
      %23 = vector.load %arg22[%c0_21, %c0_22] : memref<2x768xf32, #tpu.memory_space<vmem>>, vector<2x768xf32>
      %c0_23 = arith.constant 0 : index
      %c0_24 = arith.constant 0 : index
      %24 = vector.load %arg3[%c0_23, %c0_24] : memref<2x1xf32, #tpu.memory_space<vmem>>, vector<2x1xf32>
      %25 = vector.broadcast %24 : vector<2x1xf32> to vector<2x768xf32>
      %26 = arith.mulf %23, %25 : vector<2x768xf32>
      %27 = arith.truncf %26 : vector<2x768xf32> to vector<2x768xbf16>
      %c0_25 = arith.constant 0 : index
      %c0_26 = arith.constant 0 : index
      %28 = vector.load %arg6[%c0_25, %c0_26] : memref<1536x512xbf16, #tpu.memory_space<vmem>>, vector<768x512xbf16>
      %cst_27 = arith.constant dense<0.000000e+00> : vector<2x512xf32>
      %29 = tpu.matmul %22, %28, %cst_27 {dimension_numbers = #tpu.dot_dimension_numbers<[1], [0], [0], [1], [0, 0, 1, 1], [], []>} : vector<2x768xbf16>, vector<768x512xbf16>, vector<2x512xf32> -> vector<2x512xf32>
      %c768 = arith.constant 768 : index
      %c0_28 = arith.constant 0 : index
      %30 = vector.load %arg6[%c768, %c0_28] : memref<1536x512xbf16, #tpu.memory_space<vmem>>, vector<768x512xbf16>
      %cst_29 = arith.constant dense<0.000000e+00> : vector<2x512xf32>
      %31 = tpu.matmul %27, %30, %cst_29 {dimension_numbers = #tpu.dot_dimension_numbers<[1], [0], [0], [1], [0, 0, 1, 1], [], []>} : vector<2x768xbf16>, vector<768x512xbf16>, vector<2x512xf32> -> vector<2x512xf32>
      %32 = arith.addf %29, %31 : vector<2x512xf32>
      %c0_30 = arith.constant 0 : index
      %c0_31 = arith.constant 0 : index
      %33 = vector.load %arg7[%c0_30, %c0_31] : memref<1x512xf32, #tpu.memory_space<vmem>>, vector<1x512xf32>
      %34 = vector.broadcast %33 : vector<1x512xf32> to vector<2x512xf32>
      %35 = arith.addf %32, %34 : vector<2x512xf32>
      %c0_32 = arith.constant 0 : index
      %c0_33 = arith.constant 0 : index
      %36 = vector.load %arg8[%c0_32, %c0_33] : memref<1x512xf32, #tpu.memory_space<vmem>>, vector<1x512xf32>
      %c0_34 = arith.constant 0 : index
      %c0_35 = arith.constant 0 : index
      %37 = vector.load %arg9[%c0_34, %c0_35] : memref<1x512xf32, #tpu.memory_space<vmem>>, vector<1x512xf32>
      %cst_36 = arith.constant dense<0.000000e+00> : vector<2xf32>
      %38 = vector.multi_reduction <add>, %35, %cst_36 [1] : vector<2x512xf32> to vector<2xf32>
      %39 = vector.shape_cast %38 : vector<2xf32> to vector<2x1xf32>
      %cst_37 = arith.constant 5.120000e+02 : f32
      %40 = vector.broadcast %cst_37 : f32 to vector<2x1xf32>
      %41 = arith.divf %39, %40 : vector<2x1xf32>
      %42 = vector.broadcast %41 : vector<2x1xf32> to vector<2x512xf32>
      %43 = arith.subf %35, %42 : vector<2x512xf32>
      %44 = arith.mulf %43, %43 : vector<2x512xf32>
      %cst_38 = arith.constant dense<0.000000e+00> : vector<2xf32>
      %45 = vector.multi_reduction <add>, %44, %cst_38 [1] : vector<2x512xf32> to vector<2xf32>
      %46 = vector.shape_cast %45 : vector<2xf32> to vector<2x1xf32>
      %cst_39 = arith.constant 5.120000e+02 : f32
      %47 = vector.broadcast %cst_39 : f32 to vector<2x1xf32>
      %48 = arith.divf %46, %47 : vector<2x1xf32>
      %49 = vector.broadcast %41 : vector<2x1xf32> to vector<2x512xf32>
      %50 = arith.subf %35, %49 : vector<2x512xf32>
      %cst_40 = arith.constant 9.99999974E-6 : f32
      %51 = vector.broadcast %cst_40 : f32 to vector<2x1xf32>
      %52 = arith.addf %48, %51 : vector<2x1xf32>
      %53 = math.rsqrt %52 : vector<2x1xf32>
      %54 = vector.broadcast %53 : vector<2x1xf32> to vector<2x512xf32>
      %55 = arith.mulf %50, %54 : vector<2x512xf32>
      %56 = vector.broadcast %36 : vector<1x512xf32> to vector<2x512xf32>
      %57 = arith.mulf %55, %56 : vector<2x512xf32>
      %58 = vector.broadcast %37 : vector<1x512xf32> to vector<2x512xf32>
      %59 = arith.addf %57, %58 : vector<2x512xf32>
      %cst_41 = arith.constant 0.000000e+00 : f32
      %60 = vector.broadcast %cst_41 : f32 to vector<2x512xf32>
      %61 = arith.cmpf ogt, %59, %60 : vector<2x512xf32>
      %cst_42 = arith.constant 0.00999999977 : f32
      %62 = vector.broadcast %cst_42 : f32 to vector<2x512xf32>
      %63 = arith.mulf %62, %59 : vector<2x512xf32>
      %64 = arith.select %61, %59, %63 : vector<2x512xi1>, vector<2x512xf32>
      %65 = arith.truncf %64 : vector<2x512xf32> to vector<2x512xbf16>
      %c0_43 = arith.constant 0 : index
      %c0_44 = arith.constant 0 : index
      %66 = vector.load %arg10[%c0_43, %c0_44] : memref<512x512xbf16, #tpu.memory_space<vmem>>, vector<512x512xbf16>
      %cst_45 = arith.constant dense<0.000000e+00> : vector<2x512xf32>
      %67 = tpu.matmul %65, %66, %cst_45 {dimension_numbers = #tpu.dot_dimension_numbers<[1], [0], [0], [1], [0, 0, 1, 1], [], []>} : vector<2x512xbf16>, vector<512x512xbf16>, vector<2x512xf32> -> vector<2x512xf32>
      %c0_46 = arith.constant 0 : index
      %c0_47 = arith.constant 0 : index
      %68 = vector.load %arg11[%c0_46, %c0_47] : memref<1x512xf32, #tpu.memory_space<vmem>>, vector<1x512xf32>
      %69 = vector.broadcast %68 : vector<1x512xf32> to vector<2x512xf32>
      %70 = arith.addf %67, %69 : vector<2x512xf32>
      %c0_48 = arith.constant 0 : index
      %c0_49 = arith.constant 0 : index
      %71 = vector.load %arg12[%c0_48, %c0_49] : memref<1x512xf32, #tpu.memory_space<vmem>>, vector<1x512xf32>
      %c0_50 = arith.constant 0 : index
      %c0_51 = arith.constant 0 : index
      %72 = vector.load %arg13[%c0_50, %c0_51] : memref<1x512xf32, #tpu.memory_space<vmem>>, vector<1x512xf32>
      %cst_52 = arith.constant dense<0.000000e+00> : vector<2xf32>
      %73 = vector.multi_reduction <add>, %70, %cst_52 [1] : vector<2x512xf32> to vector<2xf32>
      %74 = vector.shape_cast %73 : vector<2xf32> to vector<2x1xf32>
      %cst_53 = arith.constant 5.120000e+02 : f32
      %75 = vector.broadcast %cst_53 : f32 to vector<2x1xf32>
      %76 = arith.divf %74, %75 : vector<2x1xf32>
      %77 = vector.broadcast %76 : vector<2x1xf32> to vector<2x512xf32>
      %78 = arith.subf %70, %77 : vector<2x512xf32>
      %79 = arith.mulf %78, %78 : vector<2x512xf32>
      %cst_54 = arith.constant dense<0.000000e+00> : vector<2xf32>
      %80 = vector.multi_reduction <add>, %79, %cst_54 [1] : vector<2x512xf32> to vector<2xf32>
      %81 = vector.shape_cast %80 : vector<2xf32> to vector<2x1xf32>
      %cst_55 = arith.constant 5.120000e+02 : f32
      %82 = vector.broadcast %cst_55 : f32 to vector<2x1xf32>
      %83 = arith.divf %81, %82 : vector<2x1xf32>
      %84 = vector.broadcast %76 : vector<2x1xf32> to vector<2x512xf32>
      %85 = arith.subf %70, %84 : vector<2x512xf32>
      %cst_56 = arith.constant 9.99999974E-6 : f32
      %86 = vector.broadcast %cst_56 : f32 to vector<2x1xf32>
      %87 = arith.addf %83, %86 : vector<2x1xf32>
      %88 = math.rsqrt %87 : vector<2x1xf32>
      %89 = vector.broadcast %88 : vector<2x1xf32> to vector<2x512xf32>
      %90 = arith.mulf %85, %89 : vector<2x512xf32>
      %91 = vector.broadcast %71 : vector<1x512xf32> to vector<2x512xf32>
      %92 = arith.mulf %90, %91 : vector<2x512xf32>
      %93 = vector.broadcast %72 : vector<1x512xf32> to vector<2x512xf32>
      %94 = arith.addf %92, %93 : vector<2x512xf32>
      %cst_57 = arith.constant 0.000000e+00 : f32
      %95 = vector.broadcast %cst_57 : f32 to vector<2x512xf32>
      %96 = arith.cmpf ogt, %94, %95 : vector<2x512xf32>
      %cst_58 = arith.constant 0.00999999977 : f32
      %97 = vector.broadcast %cst_58 : f32 to vector<2x512xf32>
      %98 = arith.mulf %97, %94 : vector<2x512xf32>
      %99 = arith.select %96, %94, %98 : vector<2x512xi1>, vector<2x512xf32>
      %100 = arith.truncf %99 : vector<2x512xf32> to vector<2x512xbf16>
      %c0_59 = arith.constant 0 : index
      %c0_60 = arith.constant 0 : index
      %101 = vector.load %arg14[%c0_59, %c0_60] : memref<512x256xbf16, #tpu.memory_space<vmem>>, vector<512x256xbf16>
      %cst_61 = arith.constant dense<0.000000e+00> : vector<2x256xf32>
      %102 = tpu.matmul %100, %101, %cst_61 {dimension_numbers = #tpu.dot_dimension_numbers<[1], [0], [0], [1], [0, 0, 1, 1], [], []>} : vector<2x512xbf16>, vector<512x256xbf16>, vector<2x256xf32> -> vector<2x256xf32>
      %c0_62 = arith.constant 0 : index
      %c0_63 = arith.constant 0 : index
      %103 = vector.load %arg15[%c0_62, %c0_63] : memref<1x256xf32, #tpu.memory_space<vmem>>, vector<1x256xf32>
      %104 = vector.broadcast %103 : vector<1x256xf32> to vector<2x256xf32>
      %105 = arith.addf %102, %104 : vector<2x256xf32>
      %c0_64 = arith.constant 0 : index
      %c0_65 = arith.constant 0 : index
      %106 = vector.load %arg16[%c0_64, %c0_65] : memref<1x256xf32, #tpu.memory_space<vmem>>, vector<1x256xf32>
      %c0_66 = arith.constant 0 : index
      %c0_67 = arith.constant 0 : index
      %107 = vector.load %arg17[%c0_66, %c0_67] : memref<1x256xf32, #tpu.memory_space<vmem>>, vector<1x256xf32>
      %cst_68 = arith.constant dense<0.000000e+00> : vector<2xf32>
      %108 = vector.multi_reduction <add>, %105, %cst_68 [1] : vector<2x256xf32> to vector<2xf32>
      %109 = vector.shape_cast %108 : vector<2xf32> to vector<2x1xf32>
      %cst_69 = arith.constant 2.560000e+02 : f32
      %110 = vector.broadcast %cst_69 : f32 to vector<2x1xf32>
      %111 = arith.divf %109, %110 : vector<2x1xf32>
      %112 = vector.broadcast %111 : vector<2x1xf32> to vector<2x256xf32>
      %113 = arith.subf %105, %112 : vector<2x256xf32>
      %114 = arith.mulf %113, %113 : vector<2x256xf32>
      %cst_70 = arith.constant dense<0.000000e+00> : vector<2xf32>
      %115 = vector.multi_reduction <add>, %114, %cst_70 [1] : vector<2x256xf32> to vector<2xf32>
      %116 = vector.shape_cast %115 : vector<2xf32> to vector<2x1xf32>
      %cst_71 = arith.constant 2.560000e+02 : f32
      %117 = vector.broadcast %cst_71 : f32 to vector<2x1xf32>
      %118 = arith.divf %116, %117 : vector<2x1xf32>
      %119 = vector.broadcast %111 : vector<2x1xf32> to vector<2x256xf32>
      %120 = arith.subf %105, %119 : vector<2x256xf32>
      %cst_72 = arith.constant 9.99999974E-6 : f32
      %121 = vector.broadcast %cst_72 : f32 to vector<2x1xf32>
      %122 = arith.addf %118, %121 : vector<2x1xf32>
      %123 = math.rsqrt %122 : vector<2x1xf32>
      %124 = vector.broadcast %123 : vector<2x1xf32> to vector<2x256xf32>
      %125 = arith.mulf %120, %124 : vector<2x256xf32>
      %126 = vector.broadcast %106 : vector<1x256xf32> to vector<2x256xf32>
      %127 = arith.mulf %125, %126 : vector<2x256xf32>
      %128 = vector.broadcast %107 : vector<1x256xf32> to vector<2x256xf32>
      %129 = arith.addf %127, %128 : vector<2x256xf32>
      %cst_73 = arith.constant 0.000000e+00 : f32
      %130 = vector.broadcast %cst_73 : f32 to vector<2x256xf32>
      %131 = arith.cmpf ogt, %129, %130 : vector<2x256xf32>
      %cst_74 = arith.constant 0.00999999977 : f32
      %132 = vector.broadcast %cst_74 : f32 to vector<2x256xf32>
      %133 = arith.mulf %132, %129 : vector<2x256xf32>
      %134 = arith.select %131, %129, %133 : vector<2x256xi1>, vector<2x256xf32>
      %135 = arith.truncf %134 : vector<2x256xf32> to vector<2x256xbf16>
      %c0_75 = arith.constant 0 : index
      %c0_76 = arith.constant 0 : index
      %136 = vector.load %arg18[%c0_75, %c0_76] : memref<256x128xbf16, #tpu.memory_space<vmem>>, vector<256x128xbf16>
      %cst_77 = arith.constant dense<0.000000e+00> : vector<2x128xf32>
      %137 = tpu.matmul %135, %136, %cst_77 {dimension_numbers = #tpu.dot_dimension_numbers<[1], [0], [0], [1], [0, 0, 1, 1], [], []>} : vector<2x256xbf16>, vector<256x128xbf16>, vector<2x128xf32> -> vector<2x128xf32>
      %c0_78 = arith.constant 0 : index
      %c0_79 = arith.constant 0 : index
      %138 = vector.load %arg19[%c0_78, %c0_79] : memref<1x128xf32, #tpu.memory_space<vmem>>, vector<1x128xf32>
      %139 = vector.broadcast %138 : vector<1x128xf32> to vector<2x128xf32>
      %140 = arith.addf %137, %139 : vector<2x128xf32>
      %c0_80 = arith.constant 0 : index
      %c0_81 = arith.constant 0 : index
      %141 = vector.load %arg20[%c0_80, %c0_81] : memref<2x128xf32, #tpu.memory_space<vmem>>, vector<2x128xf32>
      tpu.vector_store %arg20[%c0_80, %c0_81], %140 {strides = array<i32>} : memref<2x128xf32, #tpu.memory_space<vmem>>, vector<2x128xf32>,
    } else {
    }
    return
  }
  func.func @transform_0(%arg0: i32, %arg1: i32) -> (i32, i32) {
    %c0_i32 = arith.constant 0 : i32
    %c0_i32_0 = arith.constant 0 : i32
    return %arg0, %c0_i32 : i32, i32
  }
  func.func @transform_1(%arg0: i32, %arg1: i32) -> (i32, i32) {
    %c0_i32 = arith.constant 0 : i32
    %c0_i32_0 = arith.constant 0 : i32
    return %arg0, %c0_i32 : i32, i32
  }
  func.func @transform_2(%arg0: i32, %arg1: i32) -> (i32, i32, i32) {
    %c0_i32 = arith.constant 0 : i32
    %c0_i32_0 = arith.constant 0 : i32
    return %arg0, %arg1, %c0_i32 : i32, i32, i32
  }
  func.func @transform_3(%arg0: i32, %arg1: i32) -> (i32, i32, i32) {
    %c0_i32 = arith.constant 0 : i32
    %c0_i32_0 = arith.constant 0 : i32
    return %arg0, %arg1, %c0_i32 : i32, i32, i32
  }
  func.func @transform_4(%arg0: i32, %arg1: i32) -> (i32, i32) {
    %c0_i32 = arith.constant 0 : i32
    %c0_i32_0 = arith.constant 0 : i32
    %c0_i32_1 = arith.constant 0 : i32
    return %c0_i32, %c0_i32_0 : i32, i32
  }
  func.func @transform_5(%arg0: i32, %arg1: i32) -> (i32, i32) {
    %c0_i32 = arith.constant 0 : i32
    %c0_i32_0 = arith.constant 0 : i32
    %c0_i32_1 = arith.constant 0 : i32
    return %c0_i32, %c0_i32_0 : i32, i32
  }
  func.func @transform_6(%arg0: i32, %arg1: i32) -> (i32, i32) {
    %c0_i32 = arith.constant 0 : i32
    %c0_i32_0 = arith.constant 0 : i32
    %c0_i32_1 = arith.constant 0 : i32
    return %c0_i32, %c0_i32_0 : i32, i32
  }
  func.func @transform_7(%arg0: i32, %arg1: i32) -> (i32, i32) {
    %c0_i32 = arith.constant 0 : i32
    %c0_i32_0 = arith.constant 0 : i32
    %c0_i32_1 = arith.constant 0 : i32
    return %c0_i32, %c0_i32_0 : i32, i32
  }
  func.func @transform_8(%arg0: i32, %arg1: i32) -> (i32, i32) {
    %c0_i32 = arith.constant 0 : i32
    %c0_i32_0 = arith.constant 0 : i32
    %c0_i32_1 = arith.constant 0 : i32
    return %c0_i32, %c0_i32_0 : i32, i32
  }
  func.func @transform_9(%arg0: i32, %arg1: i32) -> (i32, i32) {
    %c0_i32 = arith.constant 0 : i32
    %c0_i32_0 = arith.constant 0 : i32
    %c0_i32_1 = arith.constant 0 : i32
    return %c0_i32, %c0_i32_0 : i32, i32
  }
  func.func @transform_10(%arg0: i32, %arg1: i32) -> (i32, i32) {
    %c0_i32 = arith.constant 0 : i32
    %c0_i32_0 = arith.constant 0 : i32
    %c0_i32_1 = arith.constant 0 : i32
    return %c0_i32, %c0_i32_0 : i32, i32
  }
  func.func @transform_11(%arg0: i32, %arg1: i32) -> (i32, i32) {
    %c0_i32 = arith.constant 0 : i32
    %c0_i32_0 = arith.constant 0 : i32
    %c0_i32_1 = arith.constant 0 : i32
    return %c0_i32, %c0_i32_0 : i32, i32
  }
  func.func @transform_12(%arg0: i32, %arg1: i32) -> (i32, i32) {
    %c0_i32 = arith.constant 0 : i32
    %c0_i32_0 = arith.constant 0 : i32
    %c0_i32_1 = arith.constant 0 : i32
    return %c0_i32, %c0_i32_0 : i32, i32
  }
  func.func @transform_13(%arg0: i32, %arg1: i32) -> (i32, i32) {
    %c0_i32 = arith.constant 0 : i32
    %c0_i32_0 = arith.constant 0 : i32
    %c0_i32_1 = arith.constant 0 : i32
    return %c0_i32, %c0_i32_0 : i32, i32
  }
  func.func @transform_14(%arg0: i32, %arg1: i32) -> (i32, i32) {
    %c0_i32 = arith.constant 0 : i32
    %c0_i32_0 = arith.constant 0 : i32
    %c0_i32_1 = arith.constant 0 : i32
    return %c0_i32, %c0_i32_0 : i32, i32
  }
  func.func @transform_15(%arg0: i32, %arg1: i32) -> (i32, i32) {
    %c0_i32 = arith.constant 0 : i32
    %c0_i32_0 = arith.constant 0 : i32
    %c0_i32_1 = arith.constant 0 : i32
    return %c0_i32, %c0_i32_0 : i32, i32
  }
  func.func @transform_16(%arg0: i32, %arg1: i32) -> (i32, i32) {
    %c0_i32 = arith.constant 0 : i32
    %c0_i32_0 = arith.constant 0 : i32
    %c0_i32_1 = arith.constant 0 : i32
    return %c0_i32, %c0_i32_0 : i32, i32
  }
  func.func @transform_17(%arg0: i32, %arg1: i32) -> (i32, i32) {
    %c0_i32 = arith.constant 0 : i32
    %c0_i32_0 = arith.constant 0 : i32
    %c0_i32_1 = arith.constant 0 : i32
    return %c0_i32, %c0_i32_0 : i32, i32
  }
  func.func @transform_18(%arg0: i32, %arg1: i32) -> (i32, i32) {
    %c0_i32 = arith.constant 0 : i32
    %c0_i32_0 = arith.constant 0 : i32
    return %arg0, %c0_i32 : i32, i32
  }
}

</mosaic_0001>

<bundles_post_ra>
// kernel: tpu_custom_call.1
= control target key start
LH: loop header
LB: loop body
LE: loop exit
PB: predicated region body
PF: predicated region fallthrough
CT: control target
= control target key end

     0   :  { %s9463_s0 = inlined_call_operand.vmem [shape: f32[2,1], index: 0, kind: input, shape index: {}]   ;;  %s9464_s1 = inlined_call_operand.vmem [shape: f32[2,1], index: 1, kind: input, shape index: {}]   ;;  %s9465_s2 = inlined_call_operand.hbm [shape: bf16[2,8,768], index: 2, kind: input, shape index: {}]   ;;  %s9466_s3 = inlined_call_operand.hbm [shape: bf16[2,8,768], index: 3, kind: input, shape index: {}]   ;;  %s9467_s4 = inlined_call_operand.hbm [shape: bf16[1536,512], index: 4, kind: input, shape index: {}]   ;;  %s9468_s5 = inlined_call_operand.hbm [shape: f32[1,512], index: 5, kind: input, shape index: {}]   ;;  %s9469_s6 = inlined_call_operand.hbm [shape: f32[1,512], index: 6, kind: input, shape index: {}]   ;;  %s9470_s7 = inlined_call_operand.hbm [shape: f32[1,512], index: 7, kind: input, shape index: {}]   ;;  %s9471_s8 = inlined_call_operand.hbm [shape: bf16[512,512], index: 8, kind: input, shape index: {}]   ;;  %s9472_s9 = inlined_call_operand.hbm [shape: f32[1,512], index: 9, kind: input, shape index: {}]   ;;  %s9473_s10 = inlined_call_operand.hbm [shape: f32[1,512], index: 10, kind: input, shape index: {}]   ;;  %s9474_s11 = inlined_call_operand.hbm [shape: f32[1,512], index: 11, kind: input, shape index: {}]   ;;  %s9475_s12 = inlined_call_operand.hbm [shape: bf16[512,256], index: 12, kind: input, shape index: {}]   ;;  %s9476_s13 = inlined_call_operand.hbm [shape: f32[1,256], index: 13, kind: input, shape index: {}]   ;;  %s9477_s14 = inlined_call_operand.hbm [shape: f32[1,256], index: 14, kind: input, shape index: {}]   ;;  %s9478_s15 = inlined_call_operand.hbm [shape: f32[1,256], index: 15, kind: input, shape index: {}]   ;;  %s9479_s16 = inlined_call_operand.hbm [shape: bf16[256,128], index: 16, kind: input, shape index: {}]   ;;  %s9480_s17 = inlined_call_operand.hbm [shape: f32[1,128], index: 17, kind: input, shape index: {}]   ;;  %s9481_s18 = inlined_call_operand.hbm [shape: f32[2,128], index: 18, kind: output, shape index: {}]  }
   0x1   :  { %9482 = sst [smem:[#allocation41_spill]] %s9463_s0 }
   0x2   :  { %9483 = sst [smem:[#allocation42_spill]] %s9464_s1 }
   0x3   :  { %9484 = sst [smem:[#allocation43_spill]] %s9465_s2 }
   0x4   :  { %23 = vsyncpa [#allocation5], 0 }
   0x5   :  { %24 = vsyncpa [#allocation8], 0 }
   0x6   :  { %25 = vsyncpa [#allocation11], 0 }
   0x7   :  { %26 = vsyncpa [#allocation14], 0 }
   0x8   :  { %27 = vsyncpa [#allocation17], 0 }
   0x9   :  { %28 = vsyncpa [#allocation20], 0 }
   0xa   :  { %29 = vsyncpa [#allocation23], 0 }
   0xb   :  { %30 = vsyncpa [#allocation26], 0 }
   0xc   :  { %31 = vsyncpa [#allocation29], 0 }
   0xd   :  { %32 = vsyncpa [#allocation6], 0  ;;  %s54_s29 = sshll.u32 %s9466_s3, 4  ;;  %s8940_s30 = smov [#allocation7]   ;;  %s55_s29 = int_to_ptr.hbm [resolvable:$true] %s54_s29 }
   0xe   :  { %s56_s0 = sshll.u32 %s8940_s30, 4  ;;  %s81_s20 = sshll.u32 %s9468_s5, 4  ;;  %s57_s0 = int_to_ptr.vmem [resolvable:$true] %s56_s0  ;;  %s82_s20 = int_to_ptr.hbm [resolvable:$true] %s81_s20 }
   0xf   :  { %s8941_s21 = smov 384   ;;  %s8942_s22 = smov 24  }
  0x10   :  { %62 = dma.hbm_to_vmem [thread:$0]  %s55_s29, 768, %s57_s0, [#allocation8], %s8941_s21, %s8941_s21, %s8942_s22  }
  0x11   :  { %s8943_s2 = smov [#allocation10]   ;;  %s103_s3 = sshll.u32 %s9470_s7, 4  ;;  %s104_s3 = int_to_ptr.hbm [resolvable:$true] %s103_s3 }
  0x12   :  { %s83_s23 = sshll.u32 %s8943_s2, 4  ;;  %s127_s5 = sshll.u32 %s9472_s9, 4  ;;  %s84_s23 = int_to_ptr.vmem [resolvable:$true] %s83_s23  ;;  %s128_s5 = int_to_ptr.hbm [resolvable:$true] %s127_s5 }
  0x13   :  { %86 = dma.hbm_to_vmem [thread:$0]  %s82_s20, 64, %s84_s23, [#allocation11]  }
  0x14   :  { %s8944_s28 = smov [#allocation13]   ;;  %s8945_s29 = smov [#allocation16]  }
  0x15   :  { %s105_s30 = sshll.u32 %s8944_s28, 4  ;;  %s129_s0 = sshll.u32 %s8945_s29, 4  ;;  %s106_s30 = int_to_ptr.vmem [resolvable:$true] %s105_s30  ;;  %s130_s0 = int_to_ptr.vmem [resolvable:$true] %s129_s0 }
  0x16   :  { %108 = dma.hbm_to_vmem [thread:$0]  %s104_s3, 64, %s106_s30, [#allocation14]  }
  0x17   :  { %s149_s2 = sshll.u32 %s9474_s11, 4  ;;  %s173_s23 = sshll.u32 %s9476_s13, 4  ;;  %s150_s2 = int_to_ptr.hbm [resolvable:$true] %s149_s2  ;;  %s174_s23 = int_to_ptr.hbm [resolvable:$true] %s173_s23 }
  0x18   :  { %132 = dma.hbm_to_vmem [thread:$0]  %s128_s5, 64, %s130_s0, [#allocation17]  }
  0x19   :  { %s8946_s24 = smov [#allocation19]   ;;  %s8947_s25 = smov [#allocation22]  }
  0x1a   :  { %s151_s9 = sshll.u32 %s8946_s24, 4  ;;  %s175_s3 = sshll.u32 %s8947_s25, 4  ;;  %s152_s9 = int_to_ptr.vmem [resolvable:$true] %s151_s9  ;;  %s176_s3 = int_to_ptr.vmem [resolvable:$true] %s175_s3 }
  0x1b   :  { %154 = dma.hbm_to_vmem [thread:$0]  %s150_s2, 64, %s152_s9, [#allocation20]  }
  0x1c   :  { %s195_s28 = sshll.u32 %s9478_s15, 4  ;;  %s9485_s30 = sld [smem:[#allocation43_spill]]  ;;  %s196_s28 = int_to_ptr.hbm [resolvable:$true] %s195_s28 }
  0x1d   :  { %178 = dma.hbm_to_vmem [thread:$0]  %s174_s23, 32, %s176_s3, [#allocation23]  }
  0x1e   :  { %s8948_s0 = smov [#allocation25]   ;;  %s8949_s19 = smov [#allocation4]  }
  0x1f   :  { %s197_s13 = sshll.u32 %s8948_s0, 4  ;;  %s43_s1 = sshll.u32 %s8949_s19, 4  ;;  %s198_s13 = int_to_ptr.vmem [resolvable:$true] %s197_s13  ;;  %s44_s1 = int_to_ptr.vmem [resolvable:$true] %s43_s1 }
  0x20   :  { %200 = dma.hbm_to_vmem [thread:$0]  %s196_s28, 32, %s198_s13, [#allocation26]  }
  0x21   :  { %s67_s20 = sshll.u32 %s9467_s4, 4  ;;  %s8950_s15 = smov [#allocation9]   ;;  %s68_s20 = int_to_ptr.hbm [resolvable:$true] %s67_s20 }
  0x22   :  { %s41_s29 = sshll.u32 %s9485_s30, 4  ;;  %s69_s23 = sshll.u32 %s8950_s15, 4  ;;  %s42_s29 = int_to_ptr.hbm [resolvable:$true] %s41_s29  ;;  %s70_s23 = int_to_ptr.vmem [resolvable:$true] %s69_s23 }
  0x23   :  { %49 = dma.hbm_to_vmem [thread:$0]  %s42_s29, 768, %s44_s1, [#allocation5], %s8941_s21, %s8941_s21, %s8942_s22  }
  0x24   :  { %s92_s25 = sshll.u32 %s9469_s6, 4  ;;  %s8951_s3 = smov 256   ;;  %s93_s25 = int_to_ptr.hbm [resolvable:$true] %s92_s25 }
  0x25   :  { %s8952_s26 = smov 16   ;;  %s8953_s27 = smov [#allocation12]  }
  0x26   :  { %75 = dma.hbm_to_vmem [thread:$0]  %s68_s20, 49152, %s70_s23, [#allocation8], %s8951_s3, %s8951_s3, %s8952_s26  }
  0x27   :  { %s94_s28 = sshll.u32 %s8953_s27, 4  ;;  %s113_s5 = sshll.u32 %s9471_s8, 4  ;;  %s95_s28 = int_to_ptr.vmem [resolvable:$true] %s94_s28  ;;  %s114_s5 = int_to_ptr.hbm [resolvable:$true] %s113_s5 }
  0x28   :  { %97 = dma.hbm_to_vmem [thread:$0]  %s93_s25, 64, %s95_s28, [#allocation11]  }
  0x29   :  { %s138_s30 = sshll.u32 %s9473_s10, 4  ;;  %s8954_s29 = smov [#allocation15]   ;;  %s139_s30 = int_to_ptr.hbm [resolvable:$true] %s138_s30 }
  0x2a   :  { %s115_s0 = sshll.u32 %s8954_s29, 4  ;;  %s8955_s6 = smov [#allocation18]   ;;  %s116_s0 = int_to_ptr.vmem [resolvable:$true] %s115_s0 }
  0x2b   :  { %121 = dma.hbm_to_vmem [thread:$0]  %s114_s5, 16384, %s116_s0, [#allocation14], %s8951_s3, %s8951_s3, %s8952_s26  }
  0x2c   :  { %s140_s13 = sshll.u32 %s8955_s6, 4  ;;  %s159_s2 = sshll.u32 %s9475_s12, 4  ;;  %s141_s13 = int_to_ptr.vmem [resolvable:$true] %s140_s13  ;;  %s160_s2 = int_to_ptr.hbm [resolvable:$true] %s159_s2 }
  0x2d   :  { %143 = dma.hbm_to_vmem [thread:$0]  %s139_s30, 64, %s141_s13, [#allocation17]  }
  0x2e   :  { %s8956_s8 = smov [#allocation21]   ;;  %s184_s10 = sshll.u32 %s9477_s14, 4  ;;  %s185_s10 = int_to_ptr.hbm [resolvable:$true] %s184_s10 }
  0x2f   :  { %s161_s7 = sshll.u32 %s8956_s8, 4  ;;  %s8957_s23 = smov 128   ;;  %s162_s7 = int_to_ptr.vmem [resolvable:$true] %s161_s7 }
  0x30   :  { %s8958_s24 = smov 8   ;;  %s8959_s9 = smov [#allocation24]  }
  0x31   :  { %167 = dma.hbm_to_vmem [thread:$0]  %s160_s2, 8192, %s162_s7, [#allocation20], %s8957_s23, %s8957_s23, %s8958_s24  }
  0x32   :  { %s186_s25 = sshll.u32 %s8959_s9, 4  ;;  %s205_s12 = sshll.u32 %s9479_s16, 4  ;;  %s187_s25 = int_to_ptr.vmem [resolvable:$true] %s186_s25  ;;  %s206_s12 = int_to_ptr.hbm [resolvable:$true] %s205_s12 }
  0x33   :  { %189 = dma.hbm_to_vmem [thread:$0]  %s185_s10, 32, %s187_s25, [#allocation23]  }
  0x34   :  { %s8960_s27 = smov [#allocation27]   ;;  %s219_s14 = sshll.u32 %s9480_s17, 4  ;;  %s220_s14 = int_to_ptr.hbm [resolvable:$true] %s219_s14 }
  0x35   :  { %s207_s28 = sshll.u32 %s8960_s27, 4  ;;  %s8961_s5 = smov 64   ;;  %s208_s28 = int_to_ptr.vmem [resolvable:$true] %s207_s28 }
  0x36   :  { %s8962_s21 = smov 4   ;;  %s8963_s22 = smov [#allocation28]  }
  0x37   :  { %213 = dma.hbm_to_vmem [thread:$0]  %s206_s12, 2048, %s208_s28, [#allocation26], %s8961_s5, %s8961_s5, %s8962_s21  }
  0x38   :  { %s221_s30 = sshll.u32 %s8963_s22, 4  ;;  %s222_s30 = int_to_ptr.vmem [resolvable:$true] %s221_s30 }
  0x39   :  { %224 = dma.hbm_to_vmem [thread:$0]  %s220_s14, 16, %s222_s30, [#allocation29]  }
  0x3a   :  { %8920 = dma.done.wait [#allocation5], 768  }
  0x3b   :  { %8921 = vsyncadd [#allocation5], 4294966528 }
  0x3c   :  { %8922 = dma.done.wait [#allocation8], 49920  }
  0x3d   :  { %8923 = vsyncadd [#allocation8], 4294917376 }
  0x3e   :  { %8924 = dma.done.wait [#allocation11], 128  }
  0x3f   :  { %8925 = vsyncadd [#allocation11], 4294967168 }
  0x40   :  { %8926 = dma.done.wait [#allocation14], 16448  }
  0x41   :  { %8927 = vsyncadd [#allocation14], 4294950848 }
  0x42   :  { %8928 = dma.done.wait [#allocation17], 128  }
  0x43   :  { %8929 = vsyncadd [#allocation17], 4294967168 }
  0x44   :  { %8930 = dma.done.wait [#allocation20], 8256  }
  0x45   :  { %8931 = vsyncadd [#allocation20], 4294959040 }
  0x46   :  { %8932 = dma.done.wait [#allocation23], 64  }
  0x47   :  { %8933 = vsyncadd [#allocation23], 4294967232 }
  0x48   :  { %8934 = dma.done.wait [#allocation26], 2080  }
  0x49   :  { %8935 = vsyncadd [#allocation26], 4294965216 }
  0x4a   :  { %8936 = dma.done.wait [#allocation29], 16  }
  0x4b   :  { %8937 = vsyncadd [#allocation29], 4294967280  ;;  %v8964_v0 = vmov 0   ;;  %s9486_s29 = sld [smem:[#allocation41_spill]]  ;;  %v5624_v2 = vld [vmem:[#allocation9 + $0x6e0] sm:$0xf] }
  0x4c   :  { %8500 = vset.pattern.permute.xlu0 %v8964_v0  ;;  %v8100_v3 = vld [vmem:[#allocation9 + $0x6ec] sm:$0xf0]  ;;  %v5752_v4 = vld [vmem:[#allocation9 + $0x7e0] sm:$0xf]  ;;  %s9487_s13 = sld [smem:[#allocation42_spill]]  ;;  %vm427_vm0 = vcmask 1041408  }
  0x4d   :  { %v8132_v5 = vld [vmem:[#allocation9 + $0x7ec] sm:$0xf0]  ;;  %v5625_v6 = vor.u32 %v8100_v3, %v5624_v2  ;;  %v5880_v8 = vld [vmem:[#allocation9 + $0x8e0] sm:$0xf]  ;;  %vm429_vm1 = vcmask 1045508   ;;  %vm431_vm2 = vcmask 1043456  }
  0x4e   :  { %v5753_v7 = vor.u32 %v8132_v5, %v5752_v4  ;;  %v8164_v9 = vld [vmem:[#allocation9 + $0x8ec] sm:$0xf0]  ;;  %v6008_v10 = vld [vmem:[#allocation9 + $0x9e0] sm:$0xf]  ;;  %vm443_vm3 = vcmask 1041409   ;;  %vm445_vm4 = vcmask 1043459  }
  0x4f   :  { %v5881_v11 = vor.u32 %v8164_v9, %v5880_v8  ;;  %v8196_v12 = vld [vmem:[#allocation9 + $0x9ec] sm:$0xf0]  ;;  %v5608_v13 = vld [vmem:[#allocation9 + $0x6c0] sm:$0xf]  ;;  %2007 = vmatpush.bf16.msra.mxu0 %v5625_v6  ;;  %vm447_vm5 = vcmask 1045509   ;;  %vm449_vm6 = vcmask 1047559  }
  0x50   :  { %v8096_v14 = vld [vmem:[#allocation9 + $0x6cc] sm:$0xf0]  ;;  %2020 = vmatpush.bf16.msra.mxu1 %v5753_v7  ;;  %v6009_v16 = vor.u32 %v8196_v12, %v6008_v10  ;;  %v5736_v18 = vld [vmem:[#allocation9 + $0x7c0] sm:$0xf]  ;;  %s8969_s19 = smov [#allocation30]   ;;  %s5492_s7 = sshll.u32 %s9481_s18, 4  ;;  %s5493_s7 = int_to_ptr.hbm [resolvable:$true] %s5492_s7 }
  0x51   :  { %v591_v1 = vld [vmem:[%s9486_s29] sm:$0x3]  ;;  %v5609_v17 = vor.u32 %v8096_v14, %v5608_v13  ;;  %v8128_v19 = vld [vmem:[#allocation9 + $0x7cc] sm:$0xf0]  ;;  %2033 = vmatpush.bf16.msra.mxu2 %v5881_v11  ;;  %s5490_s1 = sshll.u32 %s8969_s19, 4  ;;  %s5491_s1 = int_to_ptr.vmem [resolvable:$true] %s5490_s1 }
  0x52   :  { %594 = vperm.xlu0 %8500, %v591_v1   ;;  %v628_v15 = vld [vmem:[%s9487_s13] sm:$0x3]  ;;  %v5737_v21 = vor.u32 %v8128_v19, %v5736_v18  ;;  %v8160_v22 = vld [vmem:[#allocation9 + $0x8cc] sm:$0xf0]  ;;  %2046 = vmatpush.bf16.msra.mxu3 %v6009_v16 }
  0x53   :  { %v5864_v20 = vld [vmem:[#allocation9 + $0x8c0] sm:$0xf]  ;;  %v8192_v24 = vld [vmem:[#allocation9 + $0x9cc] sm:$0xf0]  ;;  %2008 = vmatpush.bf16.msra.mxu0 %v5609_v17 }
  0x54   :  { %v5992_v23 = vld [vmem:[#allocation9 + $0x9c0] sm:$0xf]  ;;  %v5865_v25 = vor.u32 %v8160_v22, %v5864_v20  ;;  %v8092_v28 = vld [vmem:[#allocation9 + $0x6ac] sm:$0xf0]  ;;  %2021 = vmatpush.bf16.msra.mxu1 %v5737_v21 }
  0x55   :  { %v5993_v26 = vor.u32 %v8192_v24, %v5992_v23  ;;  %v5592_v27 = vld [vmem:[#allocation9 + $0x6a0] sm:$0xf]  ;;  %v8124_v30 = vld [vmem:[#allocation9 + $0x7ac] sm:$0xf0] }
  0x56   :  { %v5720_v29 = vld [vmem:[#allocation9 + $0x7a0] sm:$0xf]  ;;  %v8156_v32 = vld [vmem:[#allocation9 + $0x8ac] sm:$0xf0]  ;;  %v5593_v33 = vor.u32 %v8092_v28, %v5592_v27  ;;  %2034 = vmatpush.bf16.msra.mxu2 %v5865_v25 }
  0x57   :  { %v5848_v31 = vld [vmem:[#allocation9 + $0x8a0] sm:$0xf]  ;;  %v5721_v34 = vor.u32 %v8124_v30, %v5720_v29  ;;  %v8188_v36 = vld [vmem:[#allocation9 + $0x9ac] sm:$0xf0]  ;;  %2047 = vmatpush.bf16.msra.mxu3 %v5993_v26 }
  0x58   :  { %v5976_v35 = vld [vmem:[#allocation9 + $0x9a0] sm:$0xf]  ;;  %v5849_v38 = vor.u32 %v8156_v32, %v5848_v31  ;;  %v8088_v39 = vld [vmem:[#allocation9 + $0x68c] sm:$0xf0]  ;;  %2009 = vmatpush.bf16.msra.mxu0 %v5593_v33 }
  0x59   :  { %v5576_v37 = vld [vmem:[#allocation9 + $0x680] sm:$0xf]  ;;  %v8120_v41 = vld [vmem:[#allocation9 + $0x78c] sm:$0xf0]  ;;  %v5977_v42 = vor.u32 %v8188_v36, %v5976_v35  ;;  %2022 = vmatpush.bf16.msra.mxu1 %v5721_v34  ;;  %v8098_v35 = vld [vmem:[#allocation9 + $0x6e4] sm:$0xf] }
  0x5a   :  { %631 = vperm.xlu0 %8500, %v628_v15   ;;  %v5704_v40 = vld [vmem:[#allocation9 + $0x780] sm:$0xf]  ;;  %v8152_v44 = vld [vmem:[#allocation9 + $0x88c] sm:$0xf0]  ;;  %v5577_v47 = vor.u32 %v8088_v39, %v5576_v37  ;;  %2035 = vmatpush.bf16.msra.mxu2 %v5849_v38  ;;  %v5626_v36 = vld [vmem:[#allocation9 + $0x6f0] sm:$0xf0] }
  0x5b   :  { %v5832_v43 = vld [vmem:[#allocation9 + $0x880] sm:$0xf]  ;;  %v8184_v46 = vld [vmem:[#allocation9 + $0x98c] sm:$0xf0]  ;;  %v5705_v48 = vor.u32 %v8120_v41, %v5704_v40  ;;  %2048 = vmatpush.bf16.msra.mxu3 %v5977_v42  ;;  %v8130_v39 = vld [vmem:[#allocation9 + $0x7e4] sm:$0xf] }
  0x5c   :  { %v5960_v45 = vld [vmem:[#allocation9 + $0x980] sm:$0xf]  ;;  %v5833_v50 = vor.u32 %v8152_v44, %v5832_v43  ;;  %v8084_v51 = vld [vmem:[#allocation9 + $0x66c] sm:$0xf0]  ;;  %2010 = vmatpush.bf16.msra.mxu0 %v5577_v47  ;;  %v5754_v40 = vld [vmem:[#allocation9 + $0x7f0] sm:$0xf0] }
  0x5d   :  { %v5560_v49 = vld [vmem:[#allocation9 + $0x660] sm:$0xf]  ;;  %v8116_v53 = vld [vmem:[#allocation9 + $0x76c] sm:$0xf0]  ;;  %v5961_v54 = vor.u32 %v8184_v46, %v5960_v45  ;;  %2023 = vmatpush.bf16.msra.mxu1 %v5705_v48  ;;  %v8965_v41 = vmov 0.0   ;;  %v5629_v48 = vor.u32 %v8098_v35, %v5626_v36 }
  0x5e   :  { %v5688_v52 = vld [vmem:[#allocation9 + $0x760] sm:$0xf]  ;;  %v8148_v56 = vld [vmem:[#allocation9 + $0x86c] sm:$0xf0]  ;;  %v5561_v59 = vor.u32 %v8084_v51, %v5560_v49  ;;  %2036 = vmatpush.bf16.msra.mxu2 %v5833_v50  ;;  %294 = vst [vmem:[#allocation2 + $0x8] sm:$0xf] %v8965_v41  ;;  %v5757_v49 = vor.u32 %v8130_v39, %v5754_v40 }
  0x5f   :  { %v5816_v55 = vld [vmem:[#allocation9 + $0x860] sm:$0xf]  ;;  %v8180_v58 = vld [vmem:[#allocation9 + $0x96c] sm:$0xf0]  ;;  %v5689_v60 = vor.u32 %v8116_v53, %v5688_v52  ;;  %2049 = vmatpush.bf16.msra.mxu3 %v5961_v54  ;;  %296 = vst [vmem:[#allocation3 + $0x8] sm:$0xf] %v8965_v41 }
  0x60   :  { %v5944_v57 = vld [vmem:[#allocation9 + $0x960] sm:$0xf]  ;;  %v5817_v62 = vor.u32 %v8148_v56, %v5816_v55  ;;  %v8080_v63 = vld [vmem:[#allocation9 + $0x64c] sm:$0xf0]  ;;  %2011 = vmatpush.bf16.msra.mxu0 %v5561_v59  ;;  %v8094_v52 = vld [vmem:[#allocation9 + $0x6c4] sm:$0xf] }
  0x61   :  { %v5544_v61 = vld [vmem:[#allocation9 + $0x640] sm:$0xf]  ;;  %v8112_v1 = vld [vmem:[#allocation9 + $0x74c] sm:$0xf0]  ;;  %v5945_v2 = vor.u32 %v8180_v58, %v5944_v57  ;;  %2024 = vmatpush.bf16.msra.mxu1 %v5689_v60  ;;  %v5610_v53 = vld [vmem:[#allocation9 + $0x6d0] sm:$0xf0] }
  0x62   :  { %v5672_v0 = vld [vmem:[#allocation9 + $0x740] sm:$0xf]  ;;  %v8144_v4 = vld [vmem:[#allocation9 + $0x84c] sm:$0xf0]  ;;  %v5545_v7 = vor.u32 %v8080_v63, %v5544_v61  ;;  %2037 = vmatpush.bf16.msra.mxu2 %v5817_v62  ;;  %v8126_v54 = vld [vmem:[#allocation9 + $0x7c4] sm:$0xf]  ;;  %v5613_v58 = vor.u32 %v8094_v52, %v5610_v53 }
  0x63   :  { %v5800_v3 = vld [vmem:[#allocation9 + $0x840] sm:$0xf]  ;;  %v8176_v6 = vld [vmem:[#allocation9 + $0x94c] sm:$0xf0]  ;;  %v5673_v8 = vor.u32 %v8112_v1, %v5672_v0  ;;  %2050 = vmatpush.bf16.msra.mxu3 %v5945_v2  ;;  %v5738_v55 = vld [vmem:[#allocation9 + $0x7d0] sm:$0xf0] }
  0x64   :  { %v5928_v5 = vld [vmem:[#allocation9 + $0x940] sm:$0xf]  ;;  %v8076_v10 = vld [vmem:[#allocation9 + $0x62c] sm:$0xf0]  ;;  %v5801_v11 = vor.u32 %v8144_v4, %v5800_v3  ;;  %2012 = vmatpush.bf16.msra.mxu0 %v5545_v7  ;;  %v5741_v59 = vor.u32 %v8126_v54, %v5738_v55  ;;  %v302_v60 = vld [vmem:[#allocation4 + $0x28] sm:$0xff] }
  0x65   :  { %v5528_v9 = vld [vmem:[#allocation9 + $0x620] sm:$0xf]  ;;  %v8108_v13 = vld [vmem:[#allocation9 + $0x72c] sm:$0xf0]  ;;  %v5929_v15 = vor.u32 %v8176_v6, %v5928_v5  ;;  %2025 = vmatpush.bf16.msra.mxu1 %v5673_v8  ;;  %v314_v61 = vunpack.c.h.bf16 %v302_v60  ;;  %v313_v0 = vunpack.c.l.bf16 %v302_v60  ;;  %v300_v6 = vld [vmem:[#allocation4 + $0x18] sm:$0xff] }
  0x66   :  { %v5656_v12 = vld [vmem:[#allocation9 + $0x720] sm:$0xf]  ;;  %v8140_v16 = vld [vmem:[#allocation9 + $0x82c] sm:$0xf0]  ;;  %v5529_v22 = vor.u32 %v8076_v10, %v5528_v9  ;;  %2038 = vmatpush.bf16.msra.mxu2 %v5801_v11 }
  0x67   :  { %v5784_v14 = vld [vmem:[#allocation9 + $0x820] sm:$0xf]  ;;  %v8172_v18 = vld [vmem:[#allocation9 + $0x92c] sm:$0xf0]  ;;  %v5657_v23 = vor.u32 %v8108_v13, %v5656_v12  ;;  %2051 = vmatpush.bf16.msra.mxu3 %v5929_v15  ;;  %v401_v1 = vrot.slane %v314_v61, 4  ;;  %v395_v4 = vrot.slane %v313_v0, 4  ;;  %v310_v12 = vunpack.c.h.bf16 %v300_v6 }
  0x68   :  { %v5912_v17 = vld [vmem:[#allocation9 + $0x920] sm:$0xf]  ;;  %v8072_v20 = vld [vmem:[#allocation9 + $0x60c] sm:$0xf0]  ;;  %v5785_v27 = vor.u32 %v8140_v16, %v5784_v14  ;;  %2013 = vmatpush.bf16.msra.mxu0 %v5529_v22  ;;  %v298_v16 = vld [vmem:[#allocation4 + $0x8] sm:$0xff] }
  0x69   :  { %v5512_v19 = vld [vmem:[#allocation9 + $0x600] sm:$0xf]  ;;  %v8104_v24 = vld [vmem:[#allocation9 + $0x70c] sm:$0xf0]  ;;  %v5913_v31 = vor.u32 %v8172_v18, %v5912_v17  ;;  %2026 = vmatpush.bf16.msra.mxu1 %v5657_v23  ;;  %v402_v5 = vadd.f32 %v401_v1, %v314_v61  ;;  %v9127_v10 = vadd.f32 %v395_v4, %v313_v0  ;;  %v305_v22 = vunpack.c.l.bf16 %v298_v16 }
  0x6a   :  { %v5640_v21 = vld [vmem:[#allocation9 + $0x700] sm:$0xf]  ;;  %v8136_v26 = vld [vmem:[#allocation9 + $0x80c] sm:$0xf0]  ;;  %v5513_v37 = vor.u32 %v8072_v20, %v5512_v19  ;;  %2039 = vmatpush.bf16.msra.mxu2 %v5785_v27  ;;  %v306_v23 = vunpack.c.h.bf16 %v298_v16  ;;  %v377_v27 = vrot.slane %v310_v12, 4 }
  0x6b   :  { %v5768_v25 = vld [vmem:[#allocation9 + $0x800] sm:$0xf]  ;;  %v8168_v29 = vld [vmem:[#allocation9 + $0x90c] sm:$0xf0]  ;;  %v5641_v38 = vor.u32 %v8104_v24, %v5640_v21  ;;  %2052 = vmatpush.bf16.msra.mxu3 %v5913_v31  ;;  %v403_v11 = vrot.slane %v402_v5, 2  ;;  %v397_v19 = vrot.slane %v9127_v10, 2  ;;  %v309_v24 = vunpack.c.l.bf16 %v300_v6 }
  0x6c   :  { %v5896_v28 = vld [vmem:[#allocation9 + $0x900] sm:$0xf]  ;;  %v8228_v32 = vld [vmem:[#allocation9 + $0xaec] sm:$0xf0]  ;;  %v5769_v42 = vor.u32 %v8136_v26, %v5768_v25  ;;  %2014 = vmatpush.bf16.msra.mxu0 %v5513_v37  ;;  %v347_v31 = vrot.slane %v305_v22, 4  ;;  %v378_v36 = vadd.f32 %v377_v27, %v310_v12 }
  0x6d   :  { %v6136_v30 = vld [vmem:[#allocation9 + $0xae0] sm:$0xf]  ;;  %v8260_v34 = vld [vmem:[#allocation9 + $0xbec] sm:$0xf0]  ;;  %v5897_v44 = vor.u32 %v8168_v29, %v5896_v28  ;;  %2027 = vmatpush.bf16.msra.mxu1 %v5641_v38  ;;  %v9132_v20 = vadd.f32 %v403_v11, %v402_v5  ;;  %v371_v35 = vrot.slane %v309_v24, 4 }
  0x6e   :  { %v6264_v33 = vld [vmem:[#allocation9 + $0xbe0] sm:$0xf]  ;;  %v6137_v43 = vor.u32 %v8228_v32, %v6136_v30  ;;  %v8224_v47 = vld [vmem:[#allocation9 + $0xacc] sm:$0xf0]  ;;  %2040 = vmatpush.bf16.msra.mxu2 %v5769_v42  ;;  %v353_v32 = vrot.slane %v306_v23, 4  ;;  %v348_v39 = vadd.f32 %v347_v31, %v305_v22  ;;  %v9144_v31 = vld [vmem:[#allocation7 + $0x8] sm:$0xff] }
  0x6f   :  { %v6265_v45 = vor.u32 %v8260_v34, %v6264_v33  ;;  %v6120_v46 = vld [vmem:[#allocation9 + $0xac0] sm:$0xf]  ;;  %v8256_v51 = vld [vmem:[#allocation9 + $0xbcc] sm:$0xf0]  ;;  %2053 = vmatpush.bf16.msra.mxu3 %v5897_v44  ;;  %v379_v44 = vrot.slane %v378_v36, 2  ;;  %v405_v16 = vrot.slane %v9132_v20, 1 }
  0x70   :  { %v6248_v50 = vld [vmem:[#allocation9 + $0xbc0] sm:$0xf]  ;;  %2059 = vmatpush.bf16.msrb.mxu0 %v6137_v43  ;;  %v6121_v56 = vor.u32 %v8224_v47, %v6120_v46  ;;  %v299_v62 = vld [vmem:[#allocation4 + $0x10] sm:$0xff]  ;;  %v354_v40 = vadd.f32 %v353_v32, %v306_v23  ;;  %v372_v43 = vadd.f32 %v371_v35, %v309_v24  ;;  %v349_v47 = vrot.slane %v348_v39, 2 }
  0x71   :  { %2072 = vmatpush.bf16.msrb.mxu1 %v6265_v45  ;;  %v6249_v57 = vor.u32 %v8256_v51, %v6248_v50  ;;  %v308_v63 = vunpack.c.h.bf16 %v299_v62  ;;  %v307_v2 = vunpack.c.l.bf16 %v299_v62  ;;  %v9125_v7 = vld [vmem:[#allocation4 + $0x20] sm:$0xff]  ;;  %v380_v51 = vadd.f32 %v379_v44, %v378_v36 }
  0x72   :  { %2085 = vmatpush.bf16.msrb.mxu2 %v5629_v48  ;;  %v311_v13 = vunpack.c.l.bf16 %v9125_v7  ;;  %v312_v14 = vunpack.c.h.bf16 %v9125_v7  ;;  %v297_v15 = vld [vmem:[#allocation4] sm:$0xff]  ;;  %v355_v48 = vrot.slane %v354_v40, 2  ;;  %v373_v50 = vrot.slane %v372_v43, 2 }
  0x73   :  { %2098 = vmatpush.bf16.msrb.mxu3 %v5757_v49  ;;  %v365_v3 = vrot.slane %v308_v63, 4  ;;  %v359_v8 = vrot.slane %v307_v2, 4  ;;  %v304_v21 = vunpack.c.h.bf16 %v297_v15  ;;  %v303_v29 = vunpack.c.l.bf16 %v297_v15  ;;  %v9149_v36 = vld [vmem:[#allocation7 + $0x10] sm:$0xff] }
  0x74   :  { %2060 = vmatpush.bf16.msrb.mxu0 %v6121_v56  ;;  %v383_v28 = vrot.slane %v311_v13, 4  ;;  %v350_v55 = vadd.f32 %v349_v47, %v348_v39  ;;  %v356_v56 = vadd.f32 %v355_v48, %v354_v40  ;;  %v389_v60 = vrot.slane %v312_v14, 4  ;;  %v9154_v40 = vld [vmem:[#allocation7 + $0x18] sm:$0xff]  ;;  %v6104_v44 = vld [vmem:[#allocation9 + $0xaa0] sm:$0xf] }
  0x75   :  { %2073 = vmatpush.bf16.msrb.mxu1 %v6249_v57  ;;  %v366_v9 = vadd.f32 %v365_v3, %v308_v63  ;;  %v360_v17 = vadd.f32 %v359_v8, %v307_v2  ;;  %v341_v30 = vrot.slane %v304_v21, 4  ;;  %v335_v37 = vrot.slane %v303_v29, 4 }
  0x76   :  { %2086 = vmatpush.bf16.msrb.mxu2 %v5613_v58  ;;  %v384_v52 = vadd.f32 %v383_v28, %v311_v13  ;;  %v374_v57 = vadd.f32 %v373_v50, %v372_v43  ;;  %v381_v58 = vrot.slane %v380_v51, 1  ;;  %v351_v63 = vrot.slane %v350_v55, 1 }
  0x77   :  { %2099 = vmatpush.bf16.msrb.mxu3 %v5741_v59  ;;  %v367_v18 = vrot.slane %v366_v9, 2  ;;  %v361_v25 = vrot.slane %v360_v17, 2  ;;  %v342_v38 = vadd.f32 %v341_v30, %v304_v21  ;;  %v336_v45 = vadd.f32 %v335_v37, %v303_v29  ;;  %v9142_v30 = vld [vmem:[#allocation7] sm:$0xff] }
  0x78   :  { %v385_v59 = vrot.slane %v384_v52, 2  ;;  %v357_v0 = vrot.slane %v356_v56, 1  ;;  %v375_v1 = vrot.slane %v374_v57, 1  ;;  %v382_v2 = vadd.f32 %v381_v58, %v380_v51  ;;  %v8252_v51 = vld [vmem:[#allocation9 + $0xbac] sm:$0xf0] }
  0x79   :  { %v368_v26 = vadd.f32 %v367_v18, %v366_v9  ;;  %v362_v33 = vadd.f32 %v361_v25, %v360_v17  ;;  %v343_v46 = vrot.slane %v342_v38, 2  ;;  %v337_v53 = vrot.slane %v336_v45, 2 }
  0x7a   :  { %v386_v3 = vadd.f32 %v385_v59, %v384_v52  ;;  %v390_v4 = vadd.f32 %v389_v60, %v312_v14  ;;  %v352_v7 = vadd.f32 %v351_v63, %v350_v55  ;;  %v358_v8 = vadd.f32 %v357_v0, %v356_v56  ;;  %v8090_v52 = vld [vmem:[#allocation9 + $0x6a4] sm:$0xf]  ;;  %v5594_v59 = vld [vmem:[#allocation9 + $0x6b0] sm:$0xf0]  ;;  %v334_v63 = vld [vmem:[#allocation2 + $0x8] sm:$0xf] }
  0x7b   :  { %v369_v34 = vrot.slane %v368_v26, 1  ;;  %v363_v41 = vrot.slane %v362_v33, 1  ;;  %v344_v54 = vadd.f32 %v343_v46, %v342_v38  ;;  %v338_v61 = vadd.f32 %v337_v53, %v336_v45  ;;  %v8220_v45 = vld [vmem:[#allocation9 + $0xaac] sm:$0xf0]  ;;  %v8122_v60 = vld [vmem:[#allocation9 + $0x7a4] sm:$0xf] }
  0x7c   :  { %v376_v9 = vadd.f32 %v375_v1, %v374_v57  ;;  %v387_v11 = vrot.slane %v386_v3, 1  ;;  %v391_v12 = vrot.slane %v390_v4, 2  ;;  %v398_v13 = vadd.f32 %v397_v19, %v9127_v10  ;;  %v9157_v46 = vld [vmem:[#allocation7 + $0x20] sm:$0xff] }
  0x7d   :  { %v9134_v42 = vadd.f32 %v369_v34, %v368_v26  ;;  %v364_v49 = vadd.f32 %v363_v41, %v362_v33  ;;  %v345_v62 = vrot.slane %v344_v54, 1  ;;  %v339_v5 = vrot.slane %v338_v61, 1 }
  0x7e   :  { %v420_v18 = vrot.slane %v352_v7, 4  ;;  %v388_v21 = vadd.f32 %v387_v11, %v386_v3  ;;  %v392_v22 = vadd.f32 %v391_v12, %v390_v4  ;;  %v399_v23 = vrot.slane %v398_v13, 1  ;;  %v8216_v7 = vld [vmem:[#allocation9 + $0xa8c] sm:$0xf0] }
  0x7f   :  { %v346_v6 = vadd.f32 %v345_v62, %v344_v54  ;;  %v340_v15 = vadd.f32 %v339_v5, %v338_v61  ;;  %v421_v24 = vrot.slane %v358_v8, 2  ;;  %v406_v14 = vadd.f32 %v405_v16, %v9132_v20  ;;  %v5722_v61 = vld [vmem:[#allocation9 + $0x7b0] sm:$0xf0]  ;;  %v8086_v16 = vld [vmem:[#allocation9 + $0x684] sm:$0xf] }
  0x80   :  { %v422_v25 = vrot.slane %v9134_v42, 6  ;;  %v423_v26 = vrot.slane %v382_v2, 6  ;;  %v393_v28 = vrot.slane %v392_v22, 1  ;;  %v400_v29 = vadd.f32 %v399_v23, %v398_v13  ;;  %v6216_v13 = vld [vmem:[#allocation9 + $0xb80] sm:$0xf] }
  0x81   :  { %v419_v17 = vrot.slane %v346_v6, 6  ;;  %v430_v10 = vsel %vm429_vm1, %v420_v18, %v421_v24  ;;  %v426_v19 = vrot.slane %v406_v14, 6  ;;  %v8966_v32 = vmov 269488144   ;;  %v6088_v6 = vld [vmem:[#allocation9 + $0xa80] sm:$0xf] }
  0x82   :  { %v9146_v20 = vunpack.c.l.s4 %v8966_v32  ;;  %v394_v33 = vadd.f32 %v393_v28, %v392_v22  ;;  %v424_v34 = vrot.slane %v388_v21, 4  ;;  %v433_v37 = vsel %vm427_vm0, %v364_v49, %v422_v25  ;;  %v6232_v49 = vld [vmem:[#allocation9 + $0xba0] sm:$0xf]  ;;  %v5578_v24 = vld [vmem:[#allocation9 + $0x690] sm:$0xf0] }
  0x83   :  { %v428_v27 = vsel %vm427_vm0, %v340_v15, %v419_v17  ;;  %v434_v38 = vsel %vm427_vm0, %v376_v9, %v423_v26  ;;  %v437_v39 = vsel %vm427_vm0, %v400_v29, %v426_v19  ;;  %v321_v41 = vunpack.c.l.bf16 %v9142_v30  ;;  %v8248_v15 = vld [vmem:[#allocation9 + $0xb8c] sm:$0xf0]  ;;  %v8118_v14 = vld [vmem:[#allocation9 + $0x784] sm:$0xf]  ;;  %v5706_v25 = vld [vmem:[#allocation9 + $0x790] sm:$0xf0] }
  0x84   :  { %v432_v35 = vsel %vm431_vm2, %v428_v27, %v430_v10  ;;  %v425_v42 = vrot.slane %v394_v33, 2  ;;  %v453_v43 = vrot.slane %v437_v39, 7  ;;  %v322_v47 = vunpack.c.h.bf16 %v9142_v30 }
  0x85   :  { %v323_v48 = vunpack.c.l.bf16 %v9144_v31  ;;  %v6105_v50 = vor.u32 %v8220_v45, %v6104_v44  ;;  %v324_v53 = vunpack.c.h.bf16 %v9144_v31  ;;  %v325_v54 = vunpack.c.l.bf16 %v9149_v36 }
  0x86   :  { %v326_v55 = vunpack.c.h.bf16 %v9149_v36  ;;  %v435_v56 = vsel %vm429_vm1, %v424_v34, %v425_v42  ;;  %v454_v57 = vsel %vm443_vm3, %v453_v43, %v433_v37  ;;  %v6233_v58 = vor.u32 %v8252_v51, %v6232_v49 }
  0x87   :  { %v327_v62 = vunpack.c.l.bf16 %v9154_v40  ;;  %v436_v0 = vsel %vm431_vm2, %v434_v38, %v435_v56  ;;  %v455_v1 = vsel %vm445_vm4, %v453_v43, %v454_v57  ;;  %2061 = vmatpush.bf16.msrb.mxu0 %v6105_v50  ;;  %v5597_v2 = vor.u32 %v8090_v52, %v5594_v59 }
  0x88   :  { %v5725_v3 = vor.u32 %v8122_v60, %v5722_v61  ;;  %v442_v4 = vrot.slane %v436_v0, 7  ;;  %v456_v5 = vsel %vm447_vm5, %v453_v43, %v455_v1  ;;  %2074 = vmatpush.bf16.msrb.mxu1 %v6233_v58  ;;  %v328_v8 = vunpack.c.h.bf16 %v9154_v40 }
  0x89   :  { %v466_v9 = vrot.slane %v321_v41, 4  ;;  %v457_v11 = vsel %vm449_vm6, %v453_v43, %v456_v5  ;;  %2087 = vmatpush.bf16.msrb.mxu2 %v5597_v2  ;;  %v6089_v12 = vor.u32 %v8216_v7, %v6088_v6  ;;  %v329_v17 = vunpack.c.l.bf16 %v9157_v46 }
  0x8a   :  { %2100 = vmatpush.bf16.msrb.mxu3 %v5725_v3  ;;  %v330_v18 = vunpack.c.h.bf16 %v9157_v46  ;;  %v444_v21 = vsel %vm443_vm3, %v442_v4, %v432_v35  ;;  %v461_v22 = vadd.f32 %v457_v11, %v334_v63  ;;  %v6217_v23 = vor.u32 %v8248_v15, %v6216_v13  ;;  %v320_v35 = vld [vmem:[#allocation7 + $0x28] sm:$0xff] }
  0x8b   :  { %v467_v26 = vadd.f32 %v466_v9, %v321_v41  ;;  %v446_v27 = vsel %vm445_vm4, %v442_v4, %v444_v21  ;;  %2062 = vmatpush.bf16.msrb.mxu0 %v6089_v12  ;;  %v5581_v28 = vor.u32 %v8086_v16, %v5578_v24  ;;  %v5709_v29 = vor.u32 %v8118_v14, %v5706_v25 }
  0x8c   :  { %v472_v10 = vrot.slane %v322_v47, 4  ;;  %v448_v19 = vsel %vm447_vm5, %v442_v4, %v446_v27  ;;  %463 = vst [vmem:[#allocation2 + $0x8] sm:$0xf] %v461_v22  ;;  %2075 = vmatpush.bf16.msrb.mxu1 %v6217_v23  ;;  %v478_v32 = vrot.slane %v323_v48, 4  ;;  %v484_v33 = vrot.slane %v324_v53, 4 }
  0x8d   :  { %v468_v30 = vrot.slane %v467_v26, 2  ;;  %v9180_v34 = vsel %vm449_vm6, %v442_v4, %v448_v19  ;;  %2088 = vmatpush.bf16.msrb.mxu2 %v5581_v28  ;;  %v490_v37 = vrot.slane %v325_v54, 4  ;;  %v496_v38 = vrot.slane %v326_v55, 4  ;;  %v8212_v27 = vld [vmem:[#allocation9 + $0xa6c] sm:$0xf0] }
  0x8e   :  { %2101 = vmatpush.bf16.msrb.mxu3 %v5709_v29  ;;  %v473_v36 = vadd.f32 %v472_v10, %v322_v47  ;;  %v331_v39 = vunpack.c.l.bf16 %v320_v35  ;;  %v479_v40 = vadd.f32 %v478_v32, %v323_v48  ;;  %v485_v41 = vadd.f32 %v484_v33, %v324_v53  ;;  %v6200_v19 = vld [vmem:[#allocation9 + $0xb60] sm:$0xf]  ;;  %v8082_v32 = vld [vmem:[#allocation9 + $0x664] sm:$0xf]  ;;  %v5562_v33 = vld [vmem:[#allocation9 + $0x670] sm:$0xf0] }
  0x8f   :  { %v491_v43 = vadd.f32 %v490_v37, %v325_v54  ;;  %v497_v44 = vadd.f32 %v496_v38, %v326_v55  ;;  %v502_v45 = vrot.slane %v327_v62, 4  ;;  %v469_v50 = vadd.f32 %v468_v30, %v467_v26  ;;  %v6072_v26 = vld [vmem:[#allocation9 + $0xa60] sm:$0xf]  ;;  %v8244_v30 = vld [vmem:[#allocation9 + $0xb6c] sm:$0xf0] }
  0x90   :  { %v474_v42 = vrot.slane %v473_v36, 2  ;;  %v480_v49 = vrot.slane %v479_v40, 2  ;;  %v486_v51 = vrot.slane %v485_v41, 2  ;;  %v508_v52 = vrot.slane %v328_v8, 4 }
  0x91   :  { %v492_v57 = vrot.slane %v491_v43, 2  ;;  %v498_v58 = vrot.slane %v497_v44, 2  ;;  %v503_v59 = vadd.f32 %v502_v45, %v327_v62  ;;  %v332_v47 = vunpack.c.h.bf16 %v320_v35  ;;  %v8208_v45 = vld [vmem:[#allocation9 + $0xa4c] sm:$0xf0] }
  0x92   :  { %v475_v56 = vadd.f32 %v474_v42, %v473_v36  ;;  %v481_v60 = vadd.f32 %v480_v49, %v479_v40  ;;  %v487_v61 = vadd.f32 %v486_v51, %v485_v41  ;;  %v509_v63 = vadd.f32 %v508_v52, %v328_v8  ;;  %v8114_v40 = vld [vmem:[#allocation9 + $0x764] sm:$0xf]  ;;  %v5690_v41 = vld [vmem:[#allocation9 + $0x770] sm:$0xf0]  ;;  %v6184_v52 = vld [vmem:[#allocation9 + $0xb40] sm:$0xf] }
  0x93   :  { %v493_v31 = vadd.f32 %v492_v57, %v491_v43  ;;  %v499_v48 = vadd.f32 %v498_v58, %v497_v44  ;;  %v504_v53 = vrot.slane %v503_v59, 2  ;;  %v514_v2 = vrot.slane %v329_v17, 4  ;;  %v6056_v44 = vld [vmem:[#allocation9 + $0xa40] sm:$0xf] }
  0x94   :  { %v476_v0 = vrot.slane %v475_v56, 1  ;;  %v482_v1 = vrot.slane %v481_v60, 1  ;;  %v488_v54 = vrot.slane %v487_v61, 1  ;;  %v510_v55 = vrot.slane %v509_v63, 2 }
  0x95   :  { %v470_v3 = vrot.slane %v469_v50, 1  ;;  %v500_v4 = vrot.slane %v499_v48, 1  ;;  %v505_v5 = vadd.f32 %v504_v53, %v503_v59  ;;  %v598_v6 = vunpack.c.0.s8 %v9146_v20  ;;  %v6010_v20 = vld [vmem:[#allocation9 + $0x9f0] sm:$0xf0] }
  0x96   :  { %v477_v7 = vadd.f32 %v476_v0, %v475_v56  ;;  %v511_v9 = vadd.f32 %v510_v55, %v509_v63  ;;  %v515_v62 = vadd.f32 %v514_v2, %v329_v17  ;;  %v483_v11 = vadd.f32 %v482_v1, %v481_v60  ;;  %v8240_v56 = vld [vmem:[#allocation9 + $0xb4c] sm:$0xf0]  ;;  %v8078_v60 = vld [vmem:[#allocation9 + $0x644] sm:$0xf]  ;;  %v5674_v1 = vld [vmem:[#allocation9 + $0x750] sm:$0xf0] }
  0x97   :  { %v489_v12 = vadd.f32 %v488_v54, %v487_v61  ;;  %v494_v13 = vrot.slane %v493_v31, 1  ;;  %v520_v8 = vrot.slane %v330_v18, 4  ;;  %v526_v21 = vrot.slane %v331_v39, 4  ;;  %v5546_v61 = vld [vmem:[#allocation9 + $0x650] sm:$0xf0] }
  0x98   :  { %v512_v15 = vrot.slane %v511_v9, 1  ;;  %v516_v16 = vrot.slane %v515_v62, 2  ;;  %v532_v22 = vrot.slane %v332_v47, 4  ;;  %v471_v23 = vadd.f32 %v470_v3, %v469_v50  ;;  %v8110_v63 = vld [vmem:[#allocation9 + $0x744] sm:$0xf] }
  0x99   :  { %v9187_v24 = vadd.f32 %v500_v4, %v499_v48  ;;  %v506_v14 = vrot.slane %v505_v5, 1  ;;  %v521_v25 = vadd.f32 %v520_v8, %v330_v18  ;;  %v527_v28 = vadd.f32 %v526_v21, %v331_v39  ;;  %v6040_v54 = vld [vmem:[#allocation9 + $0xa20] sm:$0xf]  ;;  %v8074_v8 = vld [vmem:[#allocation9 + $0x624] sm:$0xf] }
  0x9a   :  { %v517_v17 = vadd.f32 %v516_v16, %v515_v62  ;;  %v533_v29 = vadd.f32 %v532_v22, %v332_v47  ;;  %v550_v10 = vrot.slane %v477_v7, 6  ;;  %v9191_v35 = vadd.f32 %v494_v13, %v493_v31  ;;  %v6168_v7 = vld [vmem:[#allocation9 + $0xb20] sm:$0xf]  ;;  %v8236_v13 = vld [vmem:[#allocation9 + $0xb2c] sm:$0xf0] }
  0x9b   :  { %v513_v36 = vadd.f32 %v512_v15, %v511_v9  ;;  %v522_v37 = vrot.slane %v521_v25, 2  ;;  %v551_v38 = vrot.slane %v483_v11, 4  ;;  %v528_v46 = vrot.slane %v527_v28, 2 }
  0x9c   :  { %v518_v42 = vrot.slane %v517_v17, 1  ;;  %v534_v18 = vrot.slane %v533_v29, 2  ;;  %v552_v43 = vrot.slane %v489_v12, 2  ;;  %v507_v39 = vadd.f32 %v506_v14, %v505_v5  ;;  %v8204_v5 = vld [vmem:[#allocation9 + $0xa2c] sm:$0xf0] }
  0x9d   :  { %v523_v50 = vadd.f32 %v522_v37, %v521_v25  ;;  %v553_v49 = vrot.slane %v9187_v24, 6  ;;  %v6073_v51 = vor.u32 %v8212_v27, %v6072_v26  ;;  %v529_v58 = vadd.f32 %v528_v46, %v527_v28  ;;  %v8106_v24 = vld [vmem:[#allocation9 + $0x724] sm:$0xf]  ;;  %v5658_v14 = vld [vmem:[#allocation9 + $0x730] sm:$0xf0] }
  0x9e   :  { %v519_v57 = vadd.f32 %v518_v42, %v517_v17  ;;  %v535_v59 = vadd.f32 %v534_v18, %v533_v29  ;;  %v558_v47 = vsel %vm427_vm0, %v471_v23, %v550_v10  ;;  %v554_v31 = vrot.slane %v513_v36, 6  ;;  %v5530_v23 = vld [vmem:[#allocation9 + $0x630] sm:$0xf0]  ;;  %v6024_v17 = vld [vmem:[#allocation9 + $0xa00] sm:$0xf] }
  0x9f   :  { %v524_v0 = vrot.slane %v523_v50, 1  ;;  %2063 = vmatpush.bf16.msrb.mxu0 %v6073_v51  ;;  %v6201_v48 = vor.u32 %v8244_v30, %v6200_v19  ;;  %v5565_v53 = vor.u32 %v8082_v32, %v5562_v33  ;;  %v530_v55 = vrot.slane %v529_v58, 1  ;;  %v8200_v28 = vld [vmem:[#allocation9 + $0xa0c] sm:$0xf0]  ;;  %v8102_v51 = vld [vmem:[#allocation9 + $0x704] sm:$0xf] }
  0xa0   :  { %v536_v2 = vrot.slane %v535_v59, 1  ;;  %v559_v3 = vsel %vm429_vm1, %v551_v38, %v552_v43  ;;  %v5693_v4 = vor.u32 %v8114_v40, %v5690_v41  ;;  %v555_v62 = vrot.slane %v519_v57, 4  ;;  %v590_v10 = vld [vmem:[#allocation2 + $0x8] sm:$0xf]  ;;  %v6152_v40 = vld [vmem:[#allocation9 + $0xb00] sm:$0xf] }
  0xa1   :  { %v525_v9 = vadd.f32 %v524_v0, %v523_v50  ;;  %2076 = vmatpush.bf16.msrb.mxu1 %v6201_v48  ;;  %2089 = vmatpush.bf16.msrb.mxu2 %v5565_v53  ;;  %v6057_v11 = vor.u32 %v8208_v45, %v6056_v44  ;;  %v6185_v12 = vor.u32 %v8240_v56, %v6184_v52  ;;  %v8232_v41 = vld [vmem:[#allocation9 + $0xb0c] sm:$0xf0]  ;;  %v8070_v44 = vld [vmem:[#allocation9 + $0x604] sm:$0xf]  ;;  %v5642_v52 = vld [vmem:[#allocation9 + $0x710] sm:$0xf0] }
  0xa2   :  { %v531_v15 = vadd.f32 %v530_v55, %v529_v58  ;;  %v537_v16 = vadd.f32 %v536_v2, %v535_v59  ;;  %2102 = vmatpush.bf16.msrb.mxu3 %v5693_v4  ;;  %v5549_v21 = vor.u32 %v8078_v60, %v5546_v61  ;;  %v5677_v22 = vor.u32 %v8110_v63, %v5674_v1  ;;  %v465_v61 = vld [vmem:[#allocation3 + $0x8] sm:$0xf] }
  0xa3   :  { %v556_v25 = vrot.slane %v525_v9, 2  ;;  %v562_v26 = vsel %vm427_vm0, %v507_v39, %v554_v31  ;;  %2064 = vmatpush.bf16.msrb.mxu0 %v6057_v11  ;;  %v6041_v27 = vor.u32 %v8204_v5, %v6040_v54  ;;  %v560_v30 = vsel %vm431_vm2, %v558_v47, %v559_v3  ;;  %v5882_v9 = vld [vmem:[#allocation9 + $0x8f0] sm:$0xf0] }
  0xa4   :  { %v557_v19 = vrot.slane %v537_v16, 6  ;;  %v561_v32 = vsel %vm427_vm0, %v9191_v35, %v553_v49  ;;  %v6169_v33 = vor.u32 %v8236_v13, %v6168_v7  ;;  %v5533_v38 = vor.u32 %v8074_v8, %v5530_v23  ;;  %v5514_v35 = vld [vmem:[#allocation9 + $0x610] sm:$0xf0]  ;;  %v8162_v7 = vld [vmem:[#allocation9 + $0x8e4] sm:$0xf] }
  0xa5   :  { %v563_v37 = vsel %vm429_vm1, %v555_v62, %v556_v25  ;;  %2077 = vmatpush.bf16.msrb.mxu1 %v6185_v12  ;;  %2090 = vmatpush.bf16.msrb.mxu2 %v5549_v21  ;;  %v5661_v18 = vor.u32 %v8106_v24, %v5658_v14  ;;  %v6025_v43 = vor.u32 %v8200_v28, %v6024_v17  ;;  %v8194_v62 = vld [vmem:[#allocation9 + $0x9e4] sm:$0xf]  ;;  %v6138_v11 = vld [vmem:[#allocation9 + $0xaf0] sm:$0xf0] }
  0xa6   :  { %v564_v42 = vsel %vm431_vm2, %v562_v26, %v563_v37  ;;  %v565_v46 = vsel %vm427_vm0, %v531_v15, %v557_v19  ;;  %2103 = vmatpush.bf16.msrb.mxu3 %v5677_v22  ;;  %v6153_v56 = vor.u32 %v8232_v41, %v6152_v40  ;;  %v5517_v59 = vor.u32 %v8070_v44, %v5514_v35  ;;  %v8258_v12 = vld [vmem:[#allocation9 + $0xbe4] sm:$0xf]  ;;  %v6266_v8 = vld [vmem:[#allocation9 + $0xbf0] sm:$0xf0] }
  0xa7   :  { %v568_v50 = vrot.slane %v564_v42, 7  ;;  %v575_v49 = vrot.slane %v565_v46, 7  ;;  %2065 = vmatpush.bf16.msrb.mxu0 %v6041_v27  ;;  %v5645_v60 = vor.u32 %v8102_v51, %v5642_v52  ;;  %v8158_v24 = vld [vmem:[#allocation9 + $0x8c4] sm:$0xf]  ;;  %v5866_v14 = vld [vmem:[#allocation9 + $0x8d0] sm:$0xf0] }
  0xa8   :  { %v8190_v25 = vld [vmem:[#allocation9 + $0x9c4] sm:$0xf]  ;;  %v6250_v41 = vld [vmem:[#allocation9 + $0xbd0] sm:$0xf0]  ;;  %v5869_v42 = vor.u32 %v8158_v24, %v5866_v14 }
  0xa9   :  { %v569_v57 = vsel %vm443_vm3, %v568_v50, %v560_v30  ;;  %v576_v58 = vsel %vm443_vm3, %v575_v49, %v561_v32  ;;  %2078 = vmatpush.bf16.msrb.mxu1 %v6169_v33  ;;  %2091 = vmatpush.bf16.msrb.mxu2 %v5533_v38  ;;  %v6269_v33 = vor.u32 %v8258_v12, %v6266_v8  ;;  %v8222_v37 = vld [vmem:[#allocation9 + $0xac4] sm:$0xf]  ;;  %v6122_v38 = vld [vmem:[#allocation9 + $0xad0] sm:$0xf0] }
  0xaa   :  { %v570_v47 = vsel %vm445_vm4, %v568_v50, %v569_v57  ;;  %2104 = vmatpush.bf16.msrb.mxu3 %v5661_v18  ;;  %v8254_v40 = vld [vmem:[#allocation9 + $0xbc4] sm:$0xf]  ;;  %v6125_v44 = vor.u32 %v8222_v37, %v6122_v38  ;;  %v6234_v52 = vld [vmem:[#allocation9 + $0xbb0] sm:$0xf0] }
  0xab   :  { %v571_v63 = vsel %vm447_vm5, %v568_v50, %v570_v47  ;;  %2066 = vmatpush.bf16.msrb.mxu0 %v6025_v43  ;;  %v8154_v18 = vld [vmem:[#allocation9 + $0x8a4] sm:$0xf]  ;;  %v5850_v43 = vld [vmem:[#allocation9 + $0x8b0] sm:$0xf0]  ;;  %v6253_v35 = vor.u32 %v8254_v40, %v6250_v41 }
  0xac   :  { %v572_v48 = vsel %vm449_vm6, %v568_v50, %v571_v63  ;;  %v8218_v50 = vld [vmem:[#allocation9 + $0xaa4] sm:$0xf]  ;;  %v6074_v8 = vld [vmem:[#allocation9 + $0xa70] sm:$0xf0] }
  0xad   :  { %2079 = vmatpush.bf16.msrb.mxu1 %v6153_v56  ;;  %2092 = vmatpush.bf16.msrb.mxu2 %v5517_v59  ;;  %v8250_v51 = vld [vmem:[#allocation9 + $0xba4] sm:$0xf]  ;;  %v5853_v56 = vor.u32 %v8154_v18, %v5850_v43  ;;  %v5834_v59 = vld [vmem:[#allocation9 + $0x890] sm:$0xf0] }
  0xae   :  { %2105 = vmatpush.bf16.msrb.mxu3 %v5645_v60  ;;  %v8182_v60 = vld [vmem:[#allocation9 + $0x984] sm:$0xf]  ;;  %v6186_v38 = vld [vmem:[#allocation9 + $0xb50] sm:$0xf0] }
  0xaf   :  { %v8214_v63 = vld [vmem:[#allocation9 + $0xa84] sm:$0xf] }
  0xb0   :  { %v8238_v37 = vld [vmem:[#allocation9 + $0xb44] sm:$0xf] }
  0xb1   :  { %v6189_v43 = vor.u32 %v8238_v37, %v6186_v38  ;;  %v5600_v37 = vld [vmem:[#allocation9 + $0x6a8] sm:$0xf]  ;;  %v8093_v38 = vld [vmem:[#allocation9 + $0x6b4] sm:$0xf0] }
  0xc4   :  { %v595_v29 = vpop.permute.xlu0 %594 }
  0xc5   :  { %v599_v36 = vperm.slane %v595_v29, %v598_v6  ;;  %v5885_v29 = vor.u32 %v8162_v7, %v5882_v9  ;;  %v8178_v7 = vld [vmem:[#allocation9 + $0x964] sm:$0xf]  ;;  %v5946_v9 = vld [vmem:[#allocation9 + $0x970] sm:$0xf0] }
  0xc6   :  { %v5949_v14 = vor.u32 %v8178_v7, %v5946_v9  ;;  %v8165_v9 = vld [vmem:[#allocation9 + $0x8f4] sm:$0xf0] }
  0xc7   :  { %v601_v45 = vmul.f32 %v599_v36, %v9180_v34  ;;  %v602_v39 = vmul.f32 %v599_v36, %v590_v10  ;;  %v577_v34 = vsel %vm445_vm4, %v575_v49, %v576_v58  ;;  %v6013_v10 = vor.u32 %v8194_v62, %v6010_v20  ;;  %v5994_v36 = vld [vmem:[#allocation9 + $0x9d0] sm:$0xf0]  ;;  %v8150_v58 = vld [vmem:[#allocation9 + $0x884] sm:$0xf] }
  0xc8   :  { %v578_v0 = vsel %vm447_vm5, %v575_v49, %v577_v34  ;;  %v5997_v46 = vor.u32 %v8190_v25, %v5994_v36  ;;  %v6237_v34 = vor.u32 %v8250_v51, %v6234_v52  ;;  %v8210_v62 = vld [vmem:[#allocation9 + $0xa64] sm:$0xf]  ;;  %v6058_v36 = vld [vmem:[#allocation9 + $0xa50] sm:$0xf0] }
  0xc9   :  { %605 = vst [vmem:[#allocation1] ss:$4 sm:$0xff] %v601_v45  ;;  %v579_v53 = vsel %vm449_vm6, %v575_v49, %v578_v0  ;;  %v8186_v45 = vld [vmem:[#allocation9 + $0x9a4] sm:$0xf]  ;;  %v6106_v49 = vld [vmem:[#allocation9 + $0xab0] sm:$0xf0] }
  0xca   :  { %607 = vst [vmem:[#allocation1 + $0x20] ss:$4 sm:$0xff] %v602_v39  ;;  %v583_v54 = vadd.f32 %v579_v53, %v465_v61  ;;  %v5978_v39 = vld [vmem:[#allocation9 + $0x9b0] sm:$0xf0]  ;;  %v6109_v47 = vor.u32 %v8218_v50, %v6106_v49  ;;  %v8146_v53 = vld [vmem:[#allocation9 + $0x864] sm:$0xf] }
  0xcb   :  { %v5981_v57 = vor.u32 %v8186_v45, %v5978_v39  ;;  %v5962_v61 = vld [vmem:[#allocation9 + $0x990] sm:$0xf0]  ;;  %v8142_v25 = vld [vmem:[#allocation9 + $0x844] sm:$0xf] }
  0xcc   :  { %v632_v31 = vpop.permute.xlu0 %631  ;;  %585 = vst [vmem:[#allocation3 + $0x8] sm:$0xf] %v583_v54  ;;  %v6090_v0 = vld [vmem:[#allocation9 + $0xa90] sm:$0xf0]  ;;  %v5837_v54 = vor.u32 %v8150_v58, %v5834_v59  ;;  %v8202_v45 = vld [vmem:[#allocation9 + $0xa24] sm:$0xf] }
  0xcd   :  { %v636_v1 = vperm.slane %v632_v31, %v598_v6  ;;  %v8226_v6 = vld [vmem:[#allocation9 + $0xae4] sm:$0xf]  ;;  %v6093_v20 = vor.u32 %v8214_v63, %v6090_v0  ;;  %v6042_v39 = vld [vmem:[#allocation9 + $0xa30] sm:$0xf0] }
  0xce   :  { %v6141_v32 = vor.u32 %v8226_v6, %v6138_v11  ;;  %v8246_v31 = vld [vmem:[#allocation9 + $0xb84] sm:$0xf]  ;;  %v6170_v49 = vld [vmem:[#allocation9 + $0xb30] sm:$0xf0] }
  0xcf   :  { %v638_v55 = vmul.f32 %v636_v1, %v572_v48  ;;  %v6218_v48 = vld [vmem:[#allocation9 + $0xb90] sm:$0xf0]  ;;  %v8234_v50 = vld [vmem:[#allocation9 + $0xb24] sm:$0xf] }
  0xd0   :  { %v9216_v2 = vld.sshfl [vmem:[#allocation1] sm:$0xff pattern:$0x73625140]  ;;  %v9218_v3 = vld.sshfl [vmem:[#allocation1 + $0x8] sm:$0xff pattern:$0x73625140]  ;;  %v6221_v6 = vor.u32 %v8246_v31, %v6218_v48 }
  0xd1   :  { %v9220_v4 = vld.sshfl [vmem:[#allocation1 + $0x10] sm:$0xff pattern:$0x73625140]  ;;  %v9222_v5 = vld.sshfl [vmem:[#allocation1 + $0x18] sm:$0xff pattern:$0x73625140] }
  0xd2   :  { %642 = vst [vmem:[#allocation1] ss:$4 sm:$0xff] %v638_v55  ;;  %v9224_v13 = vld.sshfl [vmem:[#allocation1 + $0x20] sm:$0xff pattern:$0x73625140]  ;;  %v5965_v55 = vor.u32 %v8182_v60, %v5962_v61 }
  0xd3   :  { %v9226_v15 = vld.sshfl [vmem:[#allocation1 + $0x28] sm:$0xff pattern:$0x73625140]  ;;  %v627_v16 = vld [vmem:[#allocation3 + $0x8] sm:$0xf] }
  0xd4   :  { %v639_v21 = vmul.f32 %v636_v1, %v627_v16  ;;  %v5818_v1 = vld [vmem:[#allocation9 + $0x870] sm:$0xf0]  ;;  %v8242_v16 = vld [vmem:[#allocation9 + $0xb64] sm:$0xf]  ;;  %v5632_v31 = vld [vmem:[#allocation9 + $0x6e8] sm:$0xf] }
  0xd5   :  { %v8134_v51 = vld [vmem:[#allocation9 + $0x804] sm:$0xf]  ;;  %v5898_v59 = vld [vmem:[#allocation9 + $0x910] sm:$0xf0]  ;;  %v8101_v48 = vld [vmem:[#allocation9 + $0x6f4] sm:$0xf0] }
  0xd6   :  { %644 = vst [vmem:[#allocation1 + $0x20] ss:$4 sm:$0xff] %v639_v21  ;;  %v6202_v21 = vld [vmem:[#allocation9 + $0xb70] sm:$0xf0]  ;;  %v8166_v58 = vld [vmem:[#allocation9 + $0x904] sm:$0xf] }
  0xd7   :  { %v8198_v60 = vld [vmem:[#allocation9 + $0xa04] sm:$0xf]  ;;  %v6026_v61 = vld [vmem:[#allocation9 + $0xa10] sm:$0xf0]  ;;  %v5901_v7 = vor.u32 %v8166_v58, %v5898_v59  ;;  %v5840_v58 = vld [vmem:[#allocation9 + $0x888] sm:$0xf] }
  0xd8   :  { %v8230_v63 = vld [vmem:[#allocation9 + $0xb04] sm:$0xf]  ;;  %v6154_v0 = vld [vmem:[#allocation9 + $0xb10] sm:$0xf0]  ;;  %v8153_v59 = vld [vmem:[#allocation9 + $0x894] sm:$0xf0] }
  0xd9   :  { %v645_v22 = vld.sshfl [vmem:[#allocation1] sm:$0xff pattern:$0x73625140]  ;;  %v646_v23 = vld.sshfl [vmem:[#allocation1 + $0x8] sm:$0xff pattern:$0x73625140] }
  0xda   :  { %v9228_v26 = vpack.c.bf16 %v645_v22, %v645_v22  ;;  %v9230_v27 = vpack.c.bf16 %v646_v23, %v646_v23  ;;  %v647_v17 = vld.sshfl [vmem:[#allocation1 + $0x10] sm:$0xff pattern:$0x73625140]  ;;  %v648_v28 = vld.sshfl [vmem:[#allocation1 + $0x18] sm:$0xff pattern:$0x73625140]  ;;  %v5821_v22 = vor.u32 %v8146_v53, %v5818_v1 }
  0xdb   :  { %v9232_v19 = vpack.c.bf16 %v647_v17, %v647_v17  ;;  %v9234_v30 = vpack.c.bf16 %v648_v28, %v648_v28  ;;  %v5802_v17 = vld [vmem:[#allocation9 + $0x850] sm:$0xf0]  ;;  %v6077_v28 = vor.u32 %v8210_v62, %v6074_v8  ;;  %v5760_v53 = vld [vmem:[#allocation9 + $0x7e8] sm:$0xf]  ;;  %v8133_v1 = vld [vmem:[#allocation9 + $0x7f4] sm:$0xf0] }
  0xdc   :  { %2015 = vmatmul.bf16.vlgmr.msra.gmra.mxu0 %v9228_v26  ;;  %2028 = vmatmul.bf16.vlgmr.msra.gmra.mxu1 %v9230_v27  ;;  %v5805_v40 = vor.u32 %v8142_v25, %v5802_v17  ;;  %v6016_v62 = vld [vmem:[#allocation9 + $0x9e8] sm:$0xf]  ;;  %v5761_v8 = vor.u32 %v8133_v1, %v5760_v53  ;;  %v8129_v17 = vld [vmem:[#allocation9 + $0x7d4] sm:$0xf0] }
  0xdd   :  { %2041 = vmatmul.bf16.vlgmr.msra.gmra.mxu2 %v9232_v19  ;;  %2054 = vmatmul.bf16.vlgmr.msra.gmra.mxu3 %v9234_v30  ;;  %v649_v11 = vld.sshfl [vmem:[#allocation1 + $0x20] sm:$0xff pattern:$0x73625140]  ;;  %v650_v12 = vld.sshfl [vmem:[#allocation1 + $0x28] sm:$0xff pattern:$0x73625140] }
  0xde   :  { %2111 = vmatpush.bf16.msra.mxu0 %v5885_v29  ;;  %2124 = vmatpush.bf16.msra.mxu1 %v6013_v10  ;;  %v9240_v23 = vpack.c.bf16 %v649_v11, %v649_v11  ;;  %v9242_v24 = vpack.c.bf16 %v650_v12, %v650_v12  ;;  %v6205_v29 = vor.u32 %v8242_v16, %v6202_v21  ;;  %v8174_v10 = vld [vmem:[#allocation9 + $0x944] sm:$0xf]  ;;  %v5616_v16 = vld [vmem:[#allocation9 + $0x6c8] sm:$0xf]  ;;  %v8097_v21 = vld [vmem:[#allocation9 + $0x6d4] sm:$0xf0] }
  0xdf   :  { %2137 = vmatpush.bf16.msra.mxu2 %v6141_v32  ;;  %2150 = vmatpush.bf16.msra.mxu3 %v6269_v33  ;;  %v5930_v32 = vld [vmem:[#allocation9 + $0x950] sm:$0xf0]  ;;  %v8206_v33 = vld [vmem:[#allocation9 + $0xa44] sm:$0xf]  ;;  %v6157_v11 = vor.u32 %v8230_v63, %v6154_v0  ;;  %v5633_v12 = vor.u32 %v8101_v48, %v5632_v31  ;;  %v5744_v25 = vld [vmem:[#allocation9 + $0x7c8] sm:$0xf]  ;;  %v5841_v31 = vor.u32 %v8153_v59, %v5840_v58 }
  0xe0   :  { %v5933_v41 = vor.u32 %v8174_v10, %v5930_v32  ;;  %v6061_v18 = vor.u32 %v8206_v33, %v6058_v36  ;;  %v6000_v10 = vld [vmem:[#allocation9 + $0x9c8] sm:$0xf]  ;;  %v8193_v32 = vld [vmem:[#allocation9 + $0x9d4] sm:$0xf0]  ;;  %v5617_v33 = vor.u32 %v8097_v21, %v5616_v16  ;;  %v5745_v36 = vor.u32 %v8129_v17, %v5744_v25 }
  0xe1   :  { %v5568_v63 = vld [vmem:[#allocation9 + $0x668] sm:$0xf]  ;;  %v8085_v0 = vld [vmem:[#allocation9 + $0x674] sm:$0xf0] }
  0xe2   :  { %2112 = vmatpush.bf16.msra.mxu0 %v5869_v42  ;;  %2125 = vmatpush.bf16.msra.mxu1 %v5997_v46  ;;  %v8138_v42 = vld [vmem:[#allocation9 + $0x824] sm:$0xf]  ;;  %v5786_v46 = vld [vmem:[#allocation9 + $0x830] sm:$0xf0]  ;;  %v5696_v53 = vld [vmem:[#allocation9 + $0x768] sm:$0xf] }
  0xe3   :  { %2138 = vmatpush.bf16.msra.mxu2 %v6125_v44  ;;  %2151 = vmatpush.bf16.msra.mxu3 %v6253_v35  ;;  %v8170_v44 = vld [vmem:[#allocation9 + $0x924] sm:$0xf]  ;;  %v5914_v35 = vld [vmem:[#allocation9 + $0x930] sm:$0xf0]  ;;  %v5789_v52 = vor.u32 %v8138_v42, %v5786_v46  ;;  %v5728_v42 = vld [vmem:[#allocation9 + $0x7a8] sm:$0xf] }
  0xe4   :  { %v8125_v46 = vld [vmem:[#allocation9 + $0x7b4] sm:$0xf0]  ;;  %v5680_v16 = vld [vmem:[#allocation9 + $0x748] sm:$0xf] }
  0xe5   :  { %v8117_v1 = vld [vmem:[#allocation9 + $0x774] sm:$0xf0]  ;;  %v5936_v25 = vld [vmem:[#allocation9 + $0x948] sm:$0xf] }
  0xe6   :  { %2113 = vmatpush.bf16.msra.mxu0 %v5853_v56  ;;  %2126 = vmatpush.bf16.msra.mxu1 %v5981_v57  ;;  %v5917_v56 = vor.u32 %v8170_v44, %v5914_v35  ;;  %v5770_v57 = vld [vmem:[#allocation9 + $0x810] sm:$0xf0]  ;;  %v5984_v44 = vld [vmem:[#allocation9 + $0x9a8] sm:$0xf]  ;;  %v8189_v35 = vld [vmem:[#allocation9 + $0x9b4] sm:$0xf0] }
  0xe7   :  { %2139 = vmatpush.bf16.msra.mxu2 %v6109_v47  ;;  %2152 = vmatpush.bf16.msra.mxu3 %v6237_v34  ;;  %v6045_v47 = vor.u32 %v8202_v45, %v6042_v39  ;;  %v6173_v34 = vor.u32 %v8234_v50, %v6170_v49  ;;  %v5601_v45 = vor.u32 %v8093_v38, %v5600_v37  ;;  %v5584_v50 = vld [vmem:[#allocation9 + $0x688] sm:$0xf]  ;;  %v8089_v49 = vld [vmem:[#allocation9 + $0x694] sm:$0xf0] }
  0xe8   :  { %v5729_v39 = vor.u32 %v8125_v46, %v5728_v42  ;;  %v8113_v21 = vld [vmem:[#allocation9 + $0x754] sm:$0xf0]  ;;  %v5664_v37 = vld [vmem:[#allocation9 + $0x728] sm:$0xf] }
  0xe9   :  { %v8177_v17 = vld [vmem:[#allocation9 + $0x954] sm:$0xf0]  ;;  %v5920_v42 = vld [vmem:[#allocation9 + $0x928] sm:$0xf] }
  0xea   :  { %2114 = vmatpush.bf16.msra.mxu0 %v5837_v54  ;;  %2127 = vmatpush.bf16.msra.mxu1 %v5965_v55  ;;  %v5888_v54 = vld [vmem:[#allocation9 + $0x8e8] sm:$0xf]  ;;  %v5773_v55 = vor.u32 %v8134_v51, %v5770_v57  ;;  %v8121_v57 = vld [vmem:[#allocation9 + $0x794] sm:$0xf0] }
  0xeb   :  { %2140 = vmatpush.bf16.msra.mxu2 %v6093_v20  ;;  %2153 = vmatpush.bf16.msra.mxu3 %v6221_v6  ;;  %v8197_v20 = vld [vmem:[#allocation9 + $0x9f4] sm:$0xf0]  ;;  %v6029_v6 = vor.u32 %v8198_v60, %v6026_v61  ;;  %v5585_v60 = vor.u32 %v8089_v49, %v5584_v50  ;;  %v6144_v58 = vld [vmem:[#allocation9 + $0xae8] sm:$0xf] }
  0xec   :  { %2067 = vmatmul.bf16.vlgmr.msrb.gmra.mxu0 %v9240_v23  ;;  %2080 = vmatmul.bf16.vlgmr.msrb.gmra.mxu1 %v9242_v24  ;;  %v8109_v38 = vld [vmem:[#allocation9 + $0x734] sm:$0xf0] }
  0xed   :  { %2093 = vmatmul.bf16.vlgmr.msrb.gmra.mxu2 %v9228_v26  ;;  %2106 = vmatmul.bf16.vlgmr.msrb.gmra.mxu3 %v9230_v27  ;;  %v8173_v46 = vld [vmem:[#allocation9 + $0x934] sm:$0xf0] }
  0xee   :  { %2115 = vmatpush.bf16.msra.mxu0 %v5821_v22  ;;  %2128 = vmatpush.bf16.msra.mxu1 %v5949_v14  ;;  %v5889_v22 = vor.u32 %v8165_v9, %v5888_v54  ;;  %v6017_v14 = vor.u32 %v8197_v20, %v6016_v62  ;;  %v5824_v54 = vld [vmem:[#allocation9 + $0x868] sm:$0xf]  ;;  %v8181_v9 = vld [vmem:[#allocation9 + $0x974] sm:$0xf0]  ;;  %v5569_v62 = vor.u32 %v8085_v0, %v5568_v63  ;;  %v5634_v0 = vld [vmem:[#allocation9 + $0x6f8] sm:$0xf0] }
  0xef   :  { %2141 = vmatpush.bf16.msra.mxu2 %v6077_v28  ;;  %2154 = vmatpush.bf16.msra.mxu3 %v6205_v29  ;;  %v5872_v28 = vld [vmem:[#allocation9 + $0x8c8] sm:$0xf]  ;;  %v8161_v29 = vld [vmem:[#allocation9 + $0x8d4] sm:$0xf0]  ;;  %v5697_v20 = vor.u32 %v8117_v1, %v5696_v53  ;;  %v5921_v49 = vor.u32 %v8173_v46, %v5920_v42 }
  0xf0   :  { %v8229_v59 = vld [vmem:[#allocation9 + $0xaf4] sm:$0xf0]  ;;  %v6096_v42 = vld [vmem:[#allocation9 + $0xa88] sm:$0xf] }
  0xf1   :  { %v8217_v46 = vld [vmem:[#allocation9 + $0xa94] sm:$0xf0] }
  0xf2   :  { %2116 = vmatpush.bf16.msra.mxu0 %v5805_v40  ;;  %2129 = vmatpush.bf16.msra.mxu1 %v5933_v41  ;;  %v5873_v40 = vor.u32 %v8161_v29, %v5872_v28  ;;  %v6001_v41 = vor.u32 %v8193_v32, %v6000_v10  ;;  %v5681_v29 = vor.u32 %v8113_v21, %v5680_v16  ;;  %v5536_v10 = vld [vmem:[#allocation9 + $0x628] sm:$0xf]  ;;  %v8077_v32 = vld [vmem:[#allocation9 + $0x634] sm:$0xf0]  ;;  %v8127_v16 = vld [vmem:[#allocation9 + $0x7cc] sm:$0xf] }
  0xf3   :  { %2142 = vmatpush.bf16.msra.mxu2 %v6061_v18  ;;  %2155 = vmatpush.bf16.msra.mxu3 %v6189_v43  ;;  %v5856_v18 = vld [vmem:[#allocation9 + $0x8a8] sm:$0xf]  ;;  %v8157_v43 = vld [vmem:[#allocation9 + $0x8b4] sm:$0xf0]  ;;  %v5746_v21 = vld [vmem:[#allocation9 + $0x7d8] sm:$0xf0] }
  0xf4   :  { %v5857_v51 = vor.u32 %v8157_v43, %v5856_v18  ;;  %v5520_v18 = vld [vmem:[#allocation9 + $0x608] sm:$0xf]  ;;  %v5537_v43 = vor.u32 %v8077_v32, %v5536_v10  ;;  %v8253_v32 = vld [vmem:[#allocation9 + $0xbb4] sm:$0xf0] }
  0xf5   :  { %v6240_v10 = vld [vmem:[#allocation9 + $0xba8] sm:$0xf] }
  0xf6   :  { %2117 = vmatpush.bf16.msra.mxu0 %v5789_v52  ;;  %2130 = vmatpush.bf16.msra.mxu1 %v5917_v56  ;;  %v5985_v52 = vor.u32 %v8189_v35, %v5984_v44  ;;  %v5712_v56 = vld [vmem:[#allocation9 + $0x788] sm:$0xf]  ;;  %v5665_v44 = vor.u32 %v8109_v38, %v5664_v37  ;;  %v8073_v35 = vld [vmem:[#allocation9 + $0x614] sm:$0xf0]  ;;  %v8123_v37 = vld [vmem:[#allocation9 + $0x7ac] sm:$0xf] }
  0xf7   :  { %2143 = vmatpush.bf16.msra.mxu2 %v6045_v47  ;;  %2156 = vmatpush.bf16.msra.mxu3 %v6173_v34  ;;  %v5968_v47 = vld [vmem:[#allocation9 + $0x988] sm:$0xf]  ;;  %v8185_v34 = vld [vmem:[#allocation9 + $0x994] sm:$0xf0]  ;;  %v5713_v61 = vor.u32 %v8121_v57, %v5712_v56  ;;  %v5730_v38 = vld [vmem:[#allocation9 + $0x7b8] sm:$0xf0] }
  0xf8   :  { %v5969_v48 = vor.u32 %v8185_v34, %v5968_v47  ;;  %v5904_v56 = vld [vmem:[#allocation9 + $0x908] sm:$0xf]  ;;  %v8169_v57 = vld [vmem:[#allocation9 + $0x914] sm:$0xf0] }
  0xf9   :  { %v6272_v47 = vld [vmem:[#allocation9 + $0xbe8] sm:$0xf]  ;;  %v8261_v34 = vld [vmem:[#allocation9 + $0xbf4] sm:$0xf0]  ;;  %v5905_v1 = vor.u32 %v8169_v57, %v5904_v56 }
  0xfa   :  { %2118 = vmatpush.bf16.msra.mxu0 %v5773_v55  ;;  %2131 = vmatpush.bf16.msra.mxu1 %v5901_v7  ;;  %v8149_v55 = vld [vmem:[#allocation9 + $0x874] sm:$0xf0]  ;;  %v5952_v7 = vld [vmem:[#allocation9 + $0x968] sm:$0xf] }
  0xfb   :  { %2144 = vmatpush.bf16.msra.mxu2 %v6029_v6  ;;  %2157 = vmatpush.bf16.msra.mxu3 %v6157_v11  ;;  %v5552_v6 = vld [vmem:[#allocation9 + $0x648] sm:$0xf]  ;;  %v8081_v11 = vld [vmem:[#allocation9 + $0x654] sm:$0xf0] }
  0xfc   :  { %v5553_v28 = vor.u32 %v8081_v11, %v5552_v6  ;;  %v6256_v6 = vld [vmem:[#allocation9 + $0xbc8] sm:$0xf]  ;;  %v8257_v11 = vld [vmem:[#allocation9 + $0xbd4] sm:$0xf0] }
  0xfd   :  { %2119 = vmatmul.bf16.vlgmr.msra.gmra.mxu0 %v9232_v19  ;;  %2132 = vmatmul.bf16.vlgmr.msra.gmra.mxu1 %v9234_v30  ;;  %v6080_v56 = vld [vmem:[#allocation9 + $0xa68] sm:$0xf]  ;;  %v8213_v57 = vld [vmem:[#allocation9 + $0xa74] sm:$0xf0] }
  0xfe   :  { %2163 = vmatpush.bf16.msrb.mxu0 %v5633_v12  ;;  %2176 = vmatpush.bf16.msrb.mxu1 %v5761_v8  ;;  %v5825_v12 = vor.u32 %v8149_v55, %v5824_v54  ;;  %v5953_v8 = vor.u32 %v8181_v9, %v5952_v7  ;;  %v6145_v54 = vor.u32 %v8229_v59, %v6144_v58  ;;  %v6128_v7 = vld [vmem:[#allocation9 + $0xac8] sm:$0xf]  ;;  %v8225_v9 = vld [vmem:[#allocation9 + $0xad4] sm:$0xf0] }
  0xff   :  { %2189 = vmatpush.bf16.msrb.mxu2 %v5889_v22  ;;  %2202 = vmatpush.bf16.msrb.mxu3 %v6017_v14  ;;  %v5808_v22 = vld [vmem:[#allocation9 + $0x848] sm:$0xf]  ;;  %v8145_v14 = vld [vmem:[#allocation9 + $0x854] sm:$0xf0]  ;;  %v6273_v55 = vor.u32 %v8261_v34, %v6272_v47 }
 0x100   :  { %2145 = vmatmul.bf16.vlgmr.msra.gmra.mxu2 %v9240_v23  ;;  %2158 = vmatmul.bf16.vlgmr.msra.gmra.mxu3 %v9242_v24  ;;  %v6208_v47 = vld [vmem:[#allocation9 + $0xb68] sm:$0xf]  ;;  %v8245_v34 = vld [vmem:[#allocation9 + $0xb74] sm:$0xf0] }
 0x102   :  { %2164 = vmatpush.bf16.msrb.mxu0 %v5617_v33  ;;  %2177 = vmatpush.bf16.msrb.mxu1 %v5745_v36  ;;  %v5809_v33 = vor.u32 %v8145_v14, %v5808_v22  ;;  %v5937_v36 = vor.u32 %v8177_v17, %v5936_v25  ;;  %v6129_v22 = vor.u32 %v8225_v9, %v6128_v7  ;;  %v6112_v25 = vld [vmem:[#allocation9 + $0xaa8] sm:$0xf]  ;;  %v8221_v17 = vld [vmem:[#allocation9 + $0xab4] sm:$0xf0] }
 0x103   :  { %2190 = vmatpush.bf16.msrb.mxu2 %v5873_v40  ;;  %2203 = vmatpush.bf16.msrb.mxu3 %v6001_v41  ;;  %v5792_v40 = vld [vmem:[#allocation9 + $0x828] sm:$0xf]  ;;  %v8141_v41 = vld [vmem:[#allocation9 + $0x834] sm:$0xf0]  ;;  %v6257_v14 = vor.u32 %v8257_v11, %v6256_v6  ;;  %v8111_v6 = vld [vmem:[#allocation9 + $0x74c] sm:$0xf] }
 0x104   :  { %v5793_v50 = vor.u32 %v8141_v41, %v5792_v40  ;;  %v6113_v40 = vor.u32 %v8221_v17, %v6112_v25  ;;  %v6241_v41 = vor.u32 %v8253_v32, %v6240_v10  ;;  %v6192_v7 = vld [vmem:[#allocation9 + $0xb48] sm:$0xf]  ;;  %v8241_v9 = vld [vmem:[#allocation9 + $0xb54] sm:$0xf0]  ;;  %v5682_v11 = vld [vmem:[#allocation9 + $0x758] sm:$0xf0] }
 0x105   :  { %v6176_v25 = vld [vmem:[#allocation9 + $0xb28] sm:$0xf]  ;;  %v8237_v17 = vld [vmem:[#allocation9 + $0xb34] sm:$0xf0]  ;;  %v8107_v10 = vld [vmem:[#allocation9 + $0x72c] sm:$0xf] }
 0x106   :  { %2165 = vmatpush.bf16.msrb.mxu0 %v5601_v45  ;;  %2178 = vmatpush.bf16.msrb.mxu1 %v5729_v39  ;;  %v5648_v45 = vld [vmem:[#allocation9 + $0x708] sm:$0xf]  ;;  %v8105_v39 = vld [vmem:[#allocation9 + $0x714] sm:$0xf0]  ;;  %v5666_v32 = vld [vmem:[#allocation9 + $0x738] sm:$0xf0] }
 0x107   :  { %2191 = vmatpush.bf16.msrb.mxu2 %v5857_v51  ;;  %2204 = vmatpush.bf16.msrb.mxu3 %v5985_v52  ;;  %v5776_v51 = vld [vmem:[#allocation9 + $0x808] sm:$0xf]  ;;  %v8137_v52 = vld [vmem:[#allocation9 + $0x814] sm:$0xf0]  ;;  %v5649_v63 = vor.u32 %v8105_v39, %v5648_v45  ;;  %v8087_v45 = vld [vmem:[#allocation9 + $0x68c] sm:$0xf] }
 0x108   :  { %v5777_v53 = vor.u32 %v8137_v52, %v5776_v51  ;;  %v5586_v39 = vld [vmem:[#allocation9 + $0x698] sm:$0xf0]  ;;  %v6097_v51 = vor.u32 %v8217_v46, %v6096_v42  ;;  %v5669_v46 = vor.u32 %v8107_v10, %v5666_v32  ;;  %v8151_v10 = vld [vmem:[#allocation9 + $0x88c] sm:$0xf] }
 0x109   :  { %v5589_v58 = vor.u32 %v8087_v45, %v5586_v39  ;;  %v8163_v45 = vld [vmem:[#allocation9 + $0x8ec] sm:$0xf]  ;;  %v5890_v39 = vld [vmem:[#allocation9 + $0x8f8] sm:$0xf0] }
 0x10a   :  { %2166 = vmatpush.bf16.msrb.mxu0 %v5585_v60  ;;  %2179 = vmatpush.bf16.msrb.mxu1 %v5713_v61  ;;  %v8099_v60 = vld [vmem:[#allocation9 + $0x6ec] sm:$0xf]  ;;  %v5521_v61 = vor.u32 %v8073_v35, %v5520_v18  ;;  %v8249_v35 = vld [vmem:[#allocation9 + $0xb94] sm:$0xf0]  ;;  %v5842_v32 = vld [vmem:[#allocation9 + $0x898] sm:$0xf0] }
 0x10b   :  { %2192 = vmatpush.bf16.msrb.mxu2 %v5841_v31  ;;  %2205 = vmatpush.bf16.msrb.mxu3 %v5969_v48  ;;  %v8131_v31 = vld [vmem:[#allocation9 + $0x7ec] sm:$0xf]  ;;  %v5762_v48 = vld [vmem:[#allocation9 + $0x7f8] sm:$0xf0] }
 0x10e   :  { %2167 = vmatpush.bf16.msrb.mxu0 %v5569_v62  ;;  %2180 = vmatpush.bf16.msrb.mxu1 %v5697_v20  ;;  %v5637_v62 = vor.u32 %v8099_v60, %v5634_v0  ;;  %v5765_v20 = vor.u32 %v8131_v31, %v5762_v48  ;;  %v8083_v60 = vld [vmem:[#allocation9 + $0x66c] sm:$0xf]  ;;  %v5698_v0 = vld [vmem:[#allocation9 + $0x778] sm:$0xf0]  ;;  %v6081_v31 = vor.u32 %v8213_v57, %v6080_v56 }
 0x10f   :  { %2193 = vmatpush.bf16.msrb.mxu2 %v5825_v12  ;;  %2206 = vmatpush.bf16.msrb.mxu3 %v5953_v8  ;;  %v8095_v12 = vld [vmem:[#allocation9 + $0x6cc] sm:$0xf]  ;;  %v5618_v8 = vld [vmem:[#allocation9 + $0x6d8] sm:$0xf0]  ;;  %v6209_v48 = vor.u32 %v8245_v34, %v6208_v47 }
 0x110   :  { %v6146_v57 = vld [vmem:[#allocation9 + $0xaf8] sm:$0xf0] }
 0x112   :  { %2168 = vmatpush.bf16.msrb.mxu0 %v5553_v28  ;;  %2181 = vmatpush.bf16.msrb.mxu1 %v5681_v29  ;;  %v5621_v28 = vor.u32 %v8095_v12, %v5618_v8  ;;  %v5749_v29 = vor.u32 %v8127_v16, %v5746_v21  ;;  %v6193_v8 = vor.u32 %v8241_v9, %v6192_v7  ;;  %v6048_v16 = vld [vmem:[#allocation9 + $0xa28] sm:$0xf]  ;;  %v8205_v21 = vld [vmem:[#allocation9 + $0xa34] sm:$0xf0]  ;;  %v8255_v7 = vld [vmem:[#allocation9 + $0xbcc] sm:$0xf] }
 0x113   :  { %2194 = vmatpush.bf16.msrb.mxu2 %v5809_v33  ;;  %2207 = vmatpush.bf16.msrb.mxu3 %v5937_v36  ;;  %v8091_v33 = vld [vmem:[#allocation9 + $0x6ac] sm:$0xf]  ;;  %v5602_v36 = vld [vmem:[#allocation9 + $0x6b8] sm:$0xf0] }
 0x114   :  { %v5605_v18 = vor.u32 %v8091_v33, %v5602_v36  ;;  %v6032_v33 = vld [vmem:[#allocation9 + $0xa08] sm:$0xf]  ;;  %v6049_v36 = vor.u32 %v8205_v21, %v6048_v16  ;;  %v6258_v9 = vld [vmem:[#allocation9 + $0xbd8] sm:$0xf0]  ;;  %v8187_v16 = vld [vmem:[#allocation9 + $0x9ac] sm:$0xf] }
 0x115   :  { %v5986_v21 = vld [vmem:[#allocation9 + $0x9b8] sm:$0xf0] }
 0x116   :  { %2169 = vmatpush.bf16.msrb.mxu0 %v5537_v43  ;;  %2182 = vmatpush.bf16.msrb.mxu1 %v5665_v44  ;;  %v5733_v43 = vor.u32 %v8123_v37, %v5730_v38  ;;  %v6224_v44 = vld [vmem:[#allocation9 + $0xb88] sm:$0xf]  ;;  %v6177_v37 = vor.u32 %v8237_v17, %v6176_v25  ;;  %v8201_v38 = vld [vmem:[#allocation9 + $0xa14] sm:$0xf0]  ;;  %v8251_v25 = vld [vmem:[#allocation9 + $0xbac] sm:$0xf] }
 0x117   :  { %2195 = vmatpush.bf16.msrb.mxu2 %v5793_v50  ;;  %2208 = vmatpush.bf16.msrb.mxu3 %v5921_v49  ;;  %v8119_v50 = vld [vmem:[#allocation9 + $0x78c] sm:$0xf]  ;;  %v5714_v49 = vld [vmem:[#allocation9 + $0x798] sm:$0xf0]  ;;  %v6225_v52 = vor.u32 %v8249_v35, %v6224_v44 }
 0x118   :  { %v5717_v59 = vor.u32 %v8119_v50, %v5714_v49  ;;  %v8103_v44 = vld [vmem:[#allocation9 + $0x70c] sm:$0xf]  ;;  %v5650_v35 = vld [vmem:[#allocation9 + $0x718] sm:$0xf0] }
 0x119   :  { %v8195_v50 = vld [vmem:[#allocation9 + $0x9ec] sm:$0xf]  ;;  %v6018_v49 = vld [vmem:[#allocation9 + $0x9f8] sm:$0xf0]  ;;  %v5653_v34 = vor.u32 %v8103_v44, %v5650_v35 }
 0x11a   :  { %2170 = vmatpush.bf16.msrb.mxu0 %v5521_v61  ;;  %2183 = vmatpush.bf16.msrb.mxu1 %v5649_v63  ;;  %v5570_v61 = vld [vmem:[#allocation9 + $0x678] sm:$0xf0]  ;;  %v8115_v63 = vld [vmem:[#allocation9 + $0x76c] sm:$0xf] }
 0x11b   :  { %2196 = vmatpush.bf16.msrb.mxu2 %v5777_v53  ;;  %2209 = vmatpush.bf16.msrb.mxu3 %v5905_v1  ;;  %v6064_v53 = vld [vmem:[#allocation9 + $0xa48] sm:$0xf]  ;;  %v8209_v1 = vld [vmem:[#allocation9 + $0xa54] sm:$0xf0]  ;;  %v6242_v17 = vld [vmem:[#allocation9 + $0xbb8] sm:$0xf0] }
 0x11c   :  { %v6065_v12 = vor.u32 %v8209_v1, %v6064_v53  ;;  %v8191_v53 = vld [vmem:[#allocation9 + $0x9cc] sm:$0xf]  ;;  %v6002_v1 = vld [vmem:[#allocation9 + $0x9d8] sm:$0xf0] }
 0x11d   :  { %2171 = vmatmul.bf16.vlgmr.msrb.gmra.mxu0 %v9228_v26  ;;  %2184 = vmatmul.bf16.vlgmr.msrb.gmra.mxu1 %v9230_v27 }
 0x11e   :  { %2215 = vmatpush.bf16.msra.mxu0 %v6145_v54  ;;  %2228 = vmatpush.bf16.msra.mxu1 %v6273_v55  ;;  %v5573_v54 = vor.u32 %v8083_v60, %v5570_v61  ;;  %v5701_v55 = vor.u32 %v8115_v63, %v5698_v0  ;;  %v5893_v60 = vor.u32 %v8163_v45, %v5890_v39  ;;  %v8159_v63 = vld [vmem:[#allocation9 + $0x8cc] sm:$0xf]  ;;  %v5874_v0 = vld [vmem:[#allocation9 + $0x8d8] sm:$0xf0] }
 0x11f   :  { %2241 = vmatpush.bf16.msra.mxu2 %v5637_v62  ;;  %2254 = vmatpush.bf16.msra.mxu3 %v5765_v20  ;;  %v8079_v62 = vld [vmem:[#allocation9 + $0x64c] sm:$0xf]  ;;  %v5554_v20 = vld [vmem:[#allocation9 + $0x658] sm:$0xf0]  ;;  %v6021_v61 = vor.u32 %v8195_v50, %v6018_v49 }
 0x120   :  { %2197 = vmatmul.bf16.vlgmr.msrb.gmra.mxu2 %v9232_v19  ;;  %2210 = vmatmul.bf16.vlgmr.msrb.gmra.mxu3 %v9234_v30  ;;  %v8179_v45 = vld [vmem:[#allocation9 + $0x96c] sm:$0xf]  ;;  %v5954_v39 = vld [vmem:[#allocation9 + $0x978] sm:$0xf0] }
 0x121   :  { %v8211_v50 = vld [vmem:[#allocation9 + $0xa6c] sm:$0xf]  ;;  %v6082_v49 = vld [vmem:[#allocation9 + $0xa78] sm:$0xf0] }
 0x122   :  { %2216 = vmatpush.bf16.msra.mxu0 %v6129_v22  ;;  %2229 = vmatpush.bf16.msra.mxu1 %v6257_v14  ;;  %v5557_v22 = vor.u32 %v8079_v62, %v5554_v20  ;;  %v5685_v14 = vor.u32 %v8111_v6, %v5682_v11  ;;  %v5877_v62 = vor.u32 %v8159_v63, %v5874_v0  ;;  %v8155_v6 = vld [vmem:[#allocation9 + $0x8ac] sm:$0xf]  ;;  %v5858_v11 = vld [vmem:[#allocation9 + $0x8b8] sm:$0xf0] }
 0x123   :  { %2242 = vmatpush.bf16.msra.mxu2 %v5621_v28  ;;  %2255 = vmatpush.bf16.msra.mxu3 %v5749_v29  ;;  %v8075_v28 = vld [vmem:[#allocation9 + $0x62c] sm:$0xf]  ;;  %v5538_v29 = vld [vmem:[#allocation9 + $0x638] sm:$0xf0]  ;;  %v6005_v20 = vor.u32 %v8191_v53, %v6002_v1 }
 0x124   :  { %v5541_v42 = vor.u32 %v8075_v28, %v5538_v29  ;;  %v5861_v28 = vor.u32 %v8155_v6, %v5858_v11  ;;  %v5989_v29 = vor.u32 %v8187_v16, %v5986_v21  ;;  %v8207_v63 = vld [vmem:[#allocation9 + $0xa4c] sm:$0xf]  ;;  %v6066_v0 = vld [vmem:[#allocation9 + $0xa58] sm:$0xf0] }
 0x125   :  { %v8203_v6 = vld [vmem:[#allocation9 + $0xa2c] sm:$0xf]  ;;  %v6050_v11 = vld [vmem:[#allocation9 + $0xa38] sm:$0xf0] }
 0x126   :  { %2217 = vmatpush.bf16.msra.mxu0 %v6113_v40  ;;  %2230 = vmatpush.bf16.msra.mxu1 %v6241_v41  ;;  %v6160_v40 = vld [vmem:[#allocation9 + $0xb08] sm:$0xf]  ;;  %v8233_v41 = vld [vmem:[#allocation9 + $0xb14] sm:$0xf0]  ;;  %v8135_v16 = vld [vmem:[#allocation9 + $0x80c] sm:$0xf] }
 0x127   :  { %2243 = vmatpush.bf16.msra.mxu2 %v5605_v18  ;;  %2256 = vmatpush.bf16.msra.mxu3 %v5733_v43  ;;  %v8071_v18 = vld [vmem:[#allocation9 + $0x60c] sm:$0xf]  ;;  %v5522_v43 = vld [vmem:[#allocation9 + $0x618] sm:$0xf0]  ;;  %v6161_v56 = vor.u32 %v8233_v41, %v6160_v40 }
 0x128   :  { %v5525_v47 = vor.u32 %v8071_v18, %v5522_v43  ;;  %v8215_v40 = vld [vmem:[#allocation9 + $0xa8c] sm:$0xf]  ;;  %v6098_v41 = vld [vmem:[#allocation9 + $0xa98] sm:$0xf0] }
 0x129   :  { %v8147_v18 = vld [vmem:[#allocation9 + $0x86c] sm:$0xf]  ;;  %v5826_v43 = vld [vmem:[#allocation9 + $0x878] sm:$0xf0]  ;;  %v6101_v44 = vor.u32 %v8215_v40, %v6098_v41  ;;  %v6520_v40 = vld [vmem:[#allocation9 + $0x1e0] sm:$0xf] }
 0x12a   :  { %2218 = vmatpush.bf16.msra.mxu0 %v6097_v51  ;;  %2231 = vmatpush.bf16.msra.mxu1 %v6225_v52  ;;  %v8227_v51 = vld [vmem:[#allocation9 + $0xaec] sm:$0xf]  ;;  %v6033_v52 = vor.u32 %v8201_v38, %v6032_v33  ;;  %v5970_v38 = vld [vmem:[#allocation9 + $0x998] sm:$0xf0]  ;;  %v7940_v41 = vld [vmem:[#allocation9 + $0x1ec] sm:$0xf0] }
 0x12b   :  { %2244 = vmatpush.bf16.msra.mxu2 %v5589_v58  ;;  %2257 = vmatpush.bf16.msra.mxu3 %v5717_v59  ;;  %v8259_v58 = vld [vmem:[#allocation9 + $0xbec] sm:$0xf]  ;;  %v6274_v59 = vld [vmem:[#allocation9 + $0xbf8] sm:$0xf0] }
 0x12e   :  { %2219 = vmatpush.bf16.msra.mxu0 %v6081_v31  ;;  %2232 = vmatpush.bf16.msra.mxu1 %v6209_v48  ;;  %v6149_v31 = vor.u32 %v8227_v51, %v6146_v57  ;;  %v6277_v48 = vor.u32 %v8259_v58, %v6274_v59  ;;  %v8243_v51 = vld [vmem:[#allocation9 + $0xb6c] sm:$0xf]  ;;  %v5957_v57 = vor.u32 %v8179_v45, %v5954_v39  ;;  %v5810_v59 = vld [vmem:[#allocation9 + $0x858] sm:$0xf0] }
 0x12f   :  { %2245 = vmatpush.bf16.msra.mxu2 %v5573_v54  ;;  %2258 = vmatpush.bf16.msra.mxu3 %v5701_v55  ;;  %v8223_v54 = vld [vmem:[#allocation9 + $0xacc] sm:$0xf]  ;;  %v6130_v55 = vld [vmem:[#allocation9 + $0xad8] sm:$0xf0]  ;;  %v6521_v39 = vor.u32 %v7940_v41, %v6520_v40 }
 0x130   :  { %v8143_v58 = vld [vmem:[#allocation9 + $0x84c] sm:$0xf] }
 0x131   :  { %v5813_v53 = vor.u32 %v8143_v58, %v5810_v59  ;;  %v6632_v58 = vld [vmem:[#allocation9 + $0x2c0] sm:$0xf]  ;;  %v7968_v59 = vld [vmem:[#allocation9 + $0x2cc] sm:$0xf0] }
 0x132   :  { %2220 = vmatpush.bf16.msra.mxu0 %v6065_v12  ;;  %2233 = vmatpush.bf16.msra.mxu1 %v6193_v8  ;;  %v6133_v12 = vor.u32 %v8223_v54, %v6130_v55  ;;  %v6261_v8 = vor.u32 %v8255_v7, %v6258_v9  ;;  %v8139_v54 = vld [vmem:[#allocation9 + $0x82c] sm:$0xf]  ;;  %v5794_v55 = vld [vmem:[#allocation9 + $0x838] sm:$0xf0]  ;;  %v6069_v7 = vor.u32 %v8207_v63, %v6066_v0  ;;  %v6360_v63 = vld [vmem:[#allocation9 + $0xa0] sm:$0xf] }
 0x133   :  { %2246 = vmatpush.bf16.msra.mxu2 %v5557_v22  ;;  %2259 = vmatpush.bf16.msra.mxu3 %v5685_v14  ;;  %v8219_v22 = vld [vmem:[#allocation9 + $0xaac] sm:$0xf]  ;;  %v6114_v14 = vld [vmem:[#allocation9 + $0xab8] sm:$0xf0]  ;;  %v5797_v21 = vor.u32 %v8139_v54, %v5794_v55  ;;  %v7900_v0 = vld [vmem:[#allocation9 + $0xac] sm:$0xf0] }
 0x134   :  { %v6117_v33 = vor.u32 %v8219_v22, %v6114_v14  ;;  %v5778_v14 = vld [vmem:[#allocation9 + $0x818] sm:$0xf0]  ;;  %v6616_v54 = vld [vmem:[#allocation9 + $0x2a0] sm:$0xf]  ;;  %v7964_v55 = vld [vmem:[#allocation9 + $0x2ac] sm:$0xf0] }
 0x136   :  { %2221 = vmatpush.bf16.msra.mxu0 %v6049_v36  ;;  %2234 = vmatpush.bf16.msra.mxu1 %v6177_v37  ;;  %v6245_v36 = vor.u32 %v8251_v25, %v6242_v17  ;;  %v8183_v37 = vld [vmem:[#allocation9 + $0x98c] sm:$0xf]  ;;  %v5906_v17 = vld [vmem:[#allocation9 + $0x918] sm:$0xf0] }
 0x137   :  { %2247 = vmatpush.bf16.msra.mxu2 %v5541_v42  ;;  %2260 = vmatpush.bf16.msra.mxu3 %v5669_v46  ;;  %v8247_v42 = vld [vmem:[#allocation9 + $0xb8c] sm:$0xf]  ;;  %v6226_v46 = vld [vmem:[#allocation9 + $0xb98] sm:$0xf0] }
 0x138   :  { %v6229_v35 = vor.u32 %v8247_v42, %v6226_v46  ;;  %v8167_v25 = vld [vmem:[#allocation9 + $0x90c] sm:$0xf]  ;;  %v6648_v42 = vld [vmem:[#allocation9 + $0x2e0] sm:$0xf]  ;;  %v5781_v46 = vor.u32 %v8135_v16, %v5778_v14  ;;  %v7896_v16 = vld [vmem:[#allocation9 + $0x8c] sm:$0xf0] }
 0x139   :  { %v6600_v14 = vld [vmem:[#allocation9 + $0x280] sm:$0xf] }
 0x13a   :  { %2222 = vmatpush.bf16.msra.mxu0 %v6033_v52  ;;  %2235 = vmatpush.bf16.msra.mxu1 %v6161_v56  ;;  %v6210_v52 = vld [vmem:[#allocation9 + $0xb78] sm:$0xf0]  ;;  %v5829_v56 = vor.u32 %v8147_v18, %v5826_v43  ;;  %v6776_v18 = vld [vmem:[#allocation9 + $0x3e0] sm:$0xf]  ;;  %v8004_v43 = vld [vmem:[#allocation9 + $0x3ec] sm:$0xf0] }
 0x13b   :  { %2248 = vmatpush.bf16.msra.mxu2 %v5525_v47  ;;  %2261 = vmatpush.bf16.msra.mxu3 %v5653_v34  ;;  %v6085_v47 = vor.u32 %v8211_v50, %v6082_v49  ;;  %v6213_v34 = vor.u32 %v8243_v51, %v6210_v52  ;;  %v6376_v50 = vld [vmem:[#allocation9 + $0xc0] sm:$0xf]  ;;  %v7904_v49 = vld [vmem:[#allocation9 + $0xcc] sm:$0xf0]  ;;  %v6777_v52 = vor.u32 %v8004_v43, %v6776_v18 }
 0x13d   :  { %2223 = vmatmul.bf16.vlgmr.msra.gmra.mxu0 %v9240_v23  ;;  %2236 = vmatmul.bf16.vlgmr.msra.gmra.mxu1 %v9242_v24 }
 0x13e   :  { %2267 = vmatpush.bf16.msrb.mxu0 %v5893_v60  ;;  %2280 = vmatpush.bf16.msrb.mxu1 %v6021_v61  ;;  %v8175_v60 = vld [vmem:[#allocation9 + $0x94c] sm:$0xf]  ;;  %v5938_v61 = vld [vmem:[#allocation9 + $0x958] sm:$0xf0] }
 0x13f   :  { %2293 = vmatpush.bf16.msrb.mxu2 %v6149_v31  ;;  %2306 = vmatpush.bf16.msrb.mxu3 %v6277_v48  ;;  %v8239_v31 = vld [vmem:[#allocation9 + $0xb4c] sm:$0xf]  ;;  %v6194_v48 = vld [vmem:[#allocation9 + $0xb58] sm:$0xf0]  ;;  %v5941_v1 = vor.u32 %v8175_v60, %v5938_v61  ;;  %v6377_v60 = vor.u32 %v7904_v49, %v6376_v50 }
 0x140   :  { %2249 = vmatmul.bf16.vlgmr.msra.gmra.mxu2 %v9228_v26  ;;  %2262 = vmatmul.bf16.vlgmr.msra.gmra.mxu3 %v9230_v27  ;;  %v5845_v26 = vor.u32 %v8151_v10, %v5842_v32  ;;  %v5973_v27 = vor.u32 %v8183_v37, %v5970_v38  ;;  %v6197_v9 = vor.u32 %v8239_v31, %v6194_v48  ;;  %v8199_v10 = vld [vmem:[#allocation9 + $0xa0c] sm:$0xf]  ;;  %v6034_v32 = vld [vmem:[#allocation9 + $0xa18] sm:$0xf0]  ;;  %v6392_v37 = vld [vmem:[#allocation9 + $0xe0] sm:$0xf] }
 0x141   :  { %v7908_v38 = vld [vmem:[#allocation9 + $0xec] sm:$0xf0]  ;;  %v6633_v31 = vor.u32 %v7968_v59, %v6632_v58  ;;  %v6696_v59 = vld [vmem:[#allocation9 + $0x340] sm:$0xf] }
 0x142   :  { %2268 = vmatpush.bf16.msrb.mxu0 %v5877_v62  ;;  %2281 = vmatpush.bf16.msrb.mxu1 %v6005_v20  ;;  %v8171_v62 = vld [vmem:[#allocation9 + $0x92c] sm:$0xf]  ;;  %v5922_v20 = vld [vmem:[#allocation9 + $0x938] sm:$0xf0]  ;;  %v6393_v45 = vor.u32 %v7908_v38, %v6392_v37  ;;  %v7924_v37 = vld [vmem:[#allocation9 + $0x16c] sm:$0xf0] }
 0x143   :  { %2294 = vmatpush.bf16.msrb.mxu2 %v6133_v12  ;;  %2307 = vmatpush.bf16.msrb.mxu3 %v6261_v8  ;;  %v8235_v12 = vld [vmem:[#allocation9 + $0xb2c] sm:$0xf]  ;;  %v6178_v8 = vld [vmem:[#allocation9 + $0xb38] sm:$0xf0]  ;;  %v5925_v22 = vor.u32 %v8171_v62, %v5922_v20  ;;  %v6584_v38 = vld [vmem:[#allocation9 + $0x260] sm:$0xf] }
 0x144   :  { %v7952_v58 = vld [vmem:[#allocation9 + $0x24c] sm:$0xf0] }
 0x146   :  { %2269 = vmatpush.bf16.msrb.mxu0 %v5861_v28  ;;  %2282 = vmatpush.bf16.msrb.mxu1 %v5989_v29  ;;  %v6053_v28 = vor.u32 %v8203_v6, %v6050_v11  ;;  %v6181_v29 = vor.u32 %v8235_v12, %v6178_v8  ;;  %v6361_v6 = vor.u32 %v7900_v0, %v6360_v63  ;;  %v6344_v8 = vld [vmem:[#allocation9 + $0x80] sm:$0xf]  ;;  %v7884_v63 = vld [vmem:[#allocation9 + $0x2c] sm:$0xf0] }
 0x147   :  { %2295 = vmatpush.bf16.msrb.mxu2 %v6117_v33  ;;  %2308 = vmatpush.bf16.msrb.mxu3 %v6245_v36  ;;  %v8231_v33 = vld [vmem:[#allocation9 + $0xb0c] sm:$0xf]  ;;  %v6162_v36 = vld [vmem:[#allocation9 + $0xb18] sm:$0xf0] }
 0x14a   :  { %2270 = vmatpush.bf16.msrb.mxu0 %v5845_v26  ;;  %2283 = vmatpush.bf16.msrb.mxu1 %v5973_v27  ;;  %v5909_v26 = vor.u32 %v8167_v25, %v5906_v17  ;;  %v7972_v27 = vld [vmem:[#allocation9 + $0x2ec] sm:$0xf0] }
 0x14b   :  { %2296 = vmatpush.bf16.msrb.mxu2 %v6101_v44  ;;  %2309 = vmatpush.bf16.msrb.mxu3 %v6229_v35  ;;  %v6037_v44 = vor.u32 %v8199_v10, %v6034_v32  ;;  %v6165_v35 = vor.u32 %v8231_v33, %v6162_v36  ;;  %v6649_v51 = vor.u32 %v7972_v27, %v6648_v42  ;;  %v7960_v25 = vld [vmem:[#allocation9 + $0x28c] sm:$0xf0]  ;;  %v6456_v36 = vld [vmem:[#allocation9 + $0x160] sm:$0xf] }
 0x14c   :  { %v7992_v17 = vld [vmem:[#allocation9 + $0x38c] sm:$0xf0]  ;;  %v6601_v32 = vor.u32 %v7960_v25, %v6600_v14  ;;  %v6536_v25 = vld [vmem:[#allocation9 + $0x200] sm:$0xf] }
 0x14d   :  { %v7892_v10 = vld [vmem:[#allocation9 + $0x6c] sm:$0xf0] }
 0x14e   :  { %2271 = vmatpush.bf16.msrb.mxu0 %v5829_v56  ;;  %2284 = vmatpush.bf16.msrb.mxu1 %v5957_v57  ;;  %v6504_v56 = vld [vmem:[#allocation9 + $0x1c0] sm:$0xf]  ;;  %v7936_v57 = vld [vmem:[#allocation9 + $0x1cc] sm:$0xf0] }
 0x14f   :  { %2297 = vmatpush.bf16.msrb.mxu2 %v6085_v47  ;;  %2310 = vmatpush.bf16.msrb.mxu3 %v6213_v34  ;;  %v6760_v47 = vld [vmem:[#allocation9 + $0x3c0] sm:$0xf]  ;;  %v8000_v34 = vld [vmem:[#allocation9 + $0x3cc] sm:$0xf0]  ;;  %v6505_v61 = vor.u32 %v7936_v57, %v6504_v56 }
 0x150   :  { %v6761_v48 = vor.u32 %v8000_v34, %v6760_v47  ;;  %v7956_v42 = vld [vmem:[#allocation9 + $0x26c] sm:$0xf0]  ;;  %v6568_v57 = vld [vmem:[#allocation9 + $0x240] sm:$0xf] }
 0x151   :  { %v6585_v49 = vor.u32 %v7956_v42, %v6584_v38  ;;  %v7920_v56 = vld [vmem:[#allocation9 + $0x14c] sm:$0xf0]  ;;  %v6569_v0 = vor.u32 %v7952_v58, %v6568_v57  ;;  %v6522_v42 = vld [vmem:[#allocation9 + $0x1f0] sm:$0xf0]  ;;  %v7902_v58 = vld [vmem:[#allocation9 + $0xc4] sm:$0xf] }
 0x152   :  { %2272 = vmatpush.bf16.msrb.mxu0 %v5813_v53  ;;  %2285 = vmatpush.bf16.msrb.mxu1 %v5941_v1  ;;  %v6488_v53 = vld [vmem:[#allocation9 + $0x1a0] sm:$0xf]  ;;  %v7932_v1 = vld [vmem:[#allocation9 + $0x1ac] sm:$0xf0] }
 0x153   :  { %2298 = vmatpush.bf16.msrb.mxu2 %v6069_v7  ;;  %2311 = vmatpush.bf16.msrb.mxu3 %v6197_v9  ;;  %v6744_v7 = vld [vmem:[#allocation9 + $0x3a0] sm:$0xf]  ;;  %v7996_v9 = vld [vmem:[#allocation9 + $0x3ac] sm:$0xf0]  ;;  %v6489_v11 = vor.u32 %v7932_v1, %v6488_v53 }
 0x154   :  { %v7984_v47 = vld [vmem:[#allocation9 + $0x34c] sm:$0xf0]  ;;  %v6552_v1 = vld [vmem:[#allocation9 + $0x220] sm:$0xf] }
 0x155   :  { %v7916_v53 = vld [vmem:[#allocation9 + $0x12c] sm:$0xf0] }
 0x156   :  { %2273 = vmatpush.bf16.msrb.mxu0 %v5797_v21  ;;  %2286 = vmatpush.bf16.msrb.mxu1 %v5925_v22  ;;  %v6472_v21 = vld [vmem:[#allocation9 + $0x180] sm:$0xf]  ;;  %v7928_v22 = vld [vmem:[#allocation9 + $0x18c] sm:$0xf0] }
 0x157   :  { %2299 = vmatpush.bf16.msrb.mxu2 %v6053_v28  ;;  %2312 = vmatpush.bf16.msrb.mxu3 %v6181_v29  ;;  %v6473_v28 = vor.u32 %v7928_v22, %v6472_v21  ;;  %v6328_v29 = vld [vmem:[#allocation9 + $0x60] sm:$0xf]  ;;  %v7912_v21 = vld [vmem:[#allocation9 + $0x10c] sm:$0xf0] }
 0x158   :  { %v8064_v57 = vld [vmem:[#allocation9 + $0x5cc] sm:$0xf0] }
 0x159   :  { %v2016_v62 = vpop.f32.mrf.mxu0  ;;  %v2029_v20 = vpop.f32.mrf.mxu1 }
 0x15a   :  { %2274 = vmatpush.bf16.msrb.mxu0 %v5781_v46  ;;  %2287 = vmatpush.bf16.msrb.mxu1 %v5909_v26  ;;  %v2030_v12 = vadd.f32 %v2029_v20, %v2016_v62  ;;  %v6712_v46 = vld [vmem:[#allocation9 + $0x360] sm:$0xf]  ;;  %v7988_v26 = vld [vmem:[#allocation9 + $0x36c] sm:$0xf0] }
 0x15b   :  { %2300 = vmatpush.bf16.msrb.mxu2 %v6037_v44  ;;  %2313 = vmatpush.bf16.msrb.mxu3 %v6165_v35  ;;  %v6329_v44 = vor.u32 %v7892_v10, %v6328_v29  ;;  %v6457_v35 = vor.u32 %v7924_v37, %v6456_v36  ;;  %v7980_v62 = vld [vmem:[#allocation9 + $0x32c] sm:$0xf0]  ;;  %v6904_v29 = vld [vmem:[#allocation9 + $0x4e0] sm:$0xf]  ;;  %v7906_v36 = vld [vmem:[#allocation9 + $0xe4] sm:$0xf] }
 0x15c   :  { %v8036_v10 = vld [vmem:[#allocation9 + $0x4ec] sm:$0xf0] }
 0x15d   :  { %2275 = vmatmul.bf16.vlgmr.msrb.gmra.mxu0 %v9232_v19  ;;  %2288 = vmatmul.bf16.vlgmr.msrb.gmra.mxu1 %v9234_v30  ;;  %v6617_v19 = vor.u32 %v7964_v55, %v6616_v54  ;;  %v6745_v30 = vor.u32 %v7996_v9, %v6744_v7  ;;  %v7948_v7 = vld [vmem:[#allocation9 + $0x22c] sm:$0xf0]  ;;  %v6680_v9 = vld [vmem:[#allocation9 + $0x320] sm:$0xf] }
 0x15e   :  { %3279 = vmatpush.bf16.msra.mxu0 %v6393_v45  ;;  %3292 = vmatpush.bf16.msra.mxu1 %v6521_v39  ;;  %v6312_v45 = vld [vmem:[#allocation9 + $0x40] sm:$0xf]  ;;  %v7888_v39 = vld [vmem:[#allocation9 + $0x4c] sm:$0xf0]  ;;  %v6553_v22 = vor.u32 %v7948_v7, %v6552_v1  ;;  %v6681_v14 = vor.u32 %v7980_v62, %v6680_v9  ;;  %v7898_v7 = vld [vmem:[#allocation9 + $0xa4] sm:$0xf] }
 0x15f   :  { %3305 = vmatpush.bf16.msra.mxu2 %v6649_v51  ;;  %3318 = vmatpush.bf16.msra.mxu3 %v6777_v52  ;;  %v6713_v51 = vor.u32 %v7988_v26, %v6712_v46  ;;  %v6440_v52 = vld [vmem:[#allocation9 + $0x140] sm:$0xf]  ;;  %v6313_v34 = vor.u32 %v7888_v39, %v6312_v45  ;;  %v8032_v45 = vld [vmem:[#allocation9 + $0x4cc] sm:$0xf0]  ;;  %v7930_v9 = vld [vmem:[#allocation9 + $0x1a4] sm:$0xf] }
 0x160   :  { %2301 = vmatmul.bf16.vlgmr.msrb.gmra.mxu2 %v9240_v23  ;;  %2314 = vmatmul.bf16.vlgmr.msrb.gmra.mxu3 %v9242_v24  ;;  %v6728_v23 = vld [vmem:[#allocation9 + $0x380] sm:$0xf]  ;;  %v6345_v24 = vor.u32 %v7896_v16, %v6344_v8  ;;  %v2042_v40 = vpop.f32.mrf.mxu2  ;;  %v2055_v41 = vpop.f32.mrf.mxu3  ;;  %v6490_v62 = vld [vmem:[#allocation9 + $0x1b0] sm:$0xf0] }
 0x161   :  { %v6729_v33 = vor.u32 %v7992_v17, %v6728_v23  ;;  %v2043_v27 = vadd.f32 %v2042_v40, %v2030_v12  ;;  %v2018_v18 = vpop.f32.mrf.mxu0  ;;  %v2031_v43 = vpop.f32.mrf.mxu1  ;;  %v7944_v23 = vld [vmem:[#allocation9 + $0x20c] sm:$0xf0]  ;;  %v6664_v17 = vld [vmem:[#allocation9 + $0x300] sm:$0xf]  ;;  %v6394_v40 = vld [vmem:[#allocation9 + $0xf0] sm:$0xf0] }
 0x162   :  { %3280 = vmatpush.bf16.msra.mxu0 %v6377_v60  ;;  %3293 = vmatpush.bf16.msra.mxu1 %v6505_v61  ;;  %v6441_v60 = vor.u32 %v7920_v56, %v6440_v52  ;;  %v6296_v61 = vld [vmem:[#allocation9 + $0x20] sm:$0xf]  ;;  %v6537_v46 = vor.u32 %v7944_v23, %v6536_v25  ;;  %v6397_v39 = vor.u32 %v7906_v36, %v6394_v40  ;;  %v7926_v25 = vld [vmem:[#allocation9 + $0x184] sm:$0xf]  ;;  %v6474_v23 = vld [vmem:[#allocation9 + $0x190] sm:$0xf0] }
 0x163   :  { %3306 = vmatpush.bf16.msra.mxu2 %v6633_v31  ;;  %3319 = vmatpush.bf16.msra.mxu3 %v6761_v48  ;;  %v2056_v50 = vadd.f32 %v2055_v41, %v2043_v27  ;;  %v6697_v31 = vor.u32 %v7984_v47, %v6696_v59  ;;  %v6424_v48 = vld [vmem:[#allocation9 + $0x120] sm:$0xf]  ;;  %v6297_v12 = vor.u32 %v7884_v63, %v6296_v61  ;;  %v7938_v41 = vld [vmem:[#allocation9 + $0x1e4] sm:$0xf]  ;;  %v6378_v59 = vld [vmem:[#allocation9 + $0xd0] sm:$0xf0] }
 0x164   :  { %v6425_v8 = vor.u32 %v7916_v53, %v6424_v48  ;;  %v6905_v27 = vor.u32 %v8036_v10, %v6904_v29  ;;  %v7016_v56 = vld [vmem:[#allocation9 + $0x5c0] sm:$0xf]  ;;  %v7934_v47 = vld [vmem:[#allocation9 + $0x1c4] sm:$0xf]  ;;  %v9272_v61 = vpack.c.bf16 %v9218_v3, %v9218_v3  ;;  %v9276_v63 = vpack.c.bf16 %v9220_v4, %v9220_v4  ;;  %v8028_v53 = vld [vmem:[#allocation9 + $0x4ac] sm:$0xf0] }
 0x165   :  { %v6872_v48 = vld [vmem:[#allocation9 + $0x4a0] sm:$0xf]  ;;  %v6381_v1 = vor.u32 %v7902_v58, %v6378_v59  ;;  %v6362_v4 = vld [vmem:[#allocation9 + $0xb0] sm:$0xf0]  ;;  %v8020_v36 = vld [vmem:[#allocation9 + $0x46c] sm:$0xf0] }
 0x166   :  { %3281 = vmatpush.bf16.msra.mxu0 %v6361_v6  ;;  %3294 = vmatpush.bf16.msra.mxu1 %v6489_v11  ;;  %v6280_v11 = vld [vmem:[#allocation9] sm:$0xf]  ;;  %v6314_v58 = vld [vmem:[#allocation9 + $0x50] sm:$0xf0]  ;;  %v7918_v59 = vld [vmem:[#allocation9 + $0x144] sm:$0xf] }
 0x167   :  { %3307 = vmatpush.bf16.msra.mxu2 %v6617_v19  ;;  %3320 = vmatpush.bf16.msra.mxu3 %v6745_v30  ;;  %v7880_v19 = vld [vmem:[#allocation9 + $0xc] sm:$0xf0]  ;;  %v6408_v30 = vld [vmem:[#allocation9 + $0x100] sm:$0xf] }
 0x168   :  { %v2044_v54 = vpop.f32.mrf.mxu2  ;;  %v2057_v55 = vpop.f32.mrf.mxu3  ;;  %v6281_v37 = vor.u32 %v7880_v19, %v6280_v11  ;;  %v6409_v38 = vor.u32 %v7912_v21, %v6408_v30  ;;  %v7000_v3 = vld [vmem:[#allocation9 + $0x5a0] sm:$0xf]  ;;  %v6493_v19 = vor.u32 %v7930_v9, %v6490_v62  ;;  %v8056_v21 = vld [vmem:[#allocation9 + $0x58c] sm:$0xf0]  ;;  %v7882_v62 = vld [vmem:[#allocation9 + $0x24] sm:$0xf] }
 0x169   :  { %v2068_v20 = vpop.f32.mrf.mxu0  ;;  %v2081_v6 = vpop.f32.mrf.mxu1  ;;  %v8060_v55 = vld [vmem:[#allocation9 + $0x5ac] sm:$0xf0]  ;;  %v6984_v30 = vld [vmem:[#allocation9 + $0x580] sm:$0xf] }
 0x16a   :  { %3282 = vmatpush.bf16.msra.mxu0 %v6345_v24  ;;  %3295 = vmatpush.bf16.msra.mxu1 %v6473_v28  ;;  %v2069_v16 = vadd.f32 %v2068_v20, %v2056_v50  ;;  %v7976_v28 = vld [vmem:[#allocation9 + $0x30c] sm:$0xf0]  ;;  %v6525_v50 = vor.u32 %v7938_v41, %v6522_v42  ;;  %v7001_v20 = vor.u32 %v8060_v55, %v7000_v3  ;;  %v6968_v40 = vld [vmem:[#allocation9 + $0x560] sm:$0xf]  ;;  %v7890_v42 = vld [vmem:[#allocation9 + $0x64] sm:$0xf] }
 0x16b   :  { %3308 = vmatpush.bf16.msra.mxu2 %v6601_v32  ;;  %3321 = vmatpush.bf16.msra.mxu3 %v6729_v33  ;;  %v7032_v32 = vld [vmem:[#allocation9 + $0x5e0] sm:$0xf]  ;;  %v8068_v33 = vld [vmem:[#allocation9 + $0x5ec] sm:$0xf0]  ;;  %v6665_v26 = vor.u32 %v7976_v28, %v6664_v17 }
 0x16c   :  { %v9264_v24 = vadd.f32 %v2081_v6, %v2069_v16  ;;  %v7033_v18 = vor.u32 %v8068_v33, %v7032_v32  ;;  %v6365_v16 = vor.u32 %v7898_v7, %v6362_v4  ;;  %v6985_v32 = vor.u32 %v8056_v21, %v6984_v30  ;;  %v6840_v33 = vld [vmem:[#allocation9 + $0x460] sm:$0xf]  ;;  %v8052_v41 = vld [vmem:[#allocation9 + $0x56c] sm:$0xf0] }
 0x16d   :  { %v6936_v4 = vld [vmem:[#allocation9 + $0x520] sm:$0xf]  ;;  %v8044_v9 = vld [vmem:[#allocation9 + $0x52c] sm:$0xf0] }
 0x16e   :  { %3283 = vmatpush.bf16.msra.mxu0 %v6329_v44  ;;  %3296 = vmatpush.bf16.msra.mxu1 %v6457_v35  ;;  %v6888_v35 = vld [vmem:[#allocation9 + $0x4c0] sm:$0xf]  ;;  %v8040_v30 = vld [vmem:[#allocation9 + $0x50c] sm:$0xf0] }
 0x16f   :  { %3309 = vmatpush.bf16.msra.mxu2 %v6585_v49  ;;  %3322 = vmatpush.bf16.msra.mxu3 %v6713_v51 }
 0x170   :  { %v2094_v43 = vpop.f32.mrf.mxu2  ;;  %v2107_v44 = vpop.f32.mrf.mxu3 }
 0x171   :  { %v2108_v49 = vadd.f32 %v2107_v44, %v2094_v43  ;;  %v2070_v51 = vpop.f32.mrf.mxu0  ;;  %v2083_v52 = vpop.f32.mrf.mxu1  ;;  %v6841_v43 = vor.u32 %v8020_v36, %v6840_v33  ;;  %v6969_v44 = vor.u32 %v8052_v41, %v6968_v40  ;;  %v8002_v33 = vld [vmem:[#allocation9 + $0x3e4] sm:$0xf]  ;;  %v6778_v36 = vld [vmem:[#allocation9 + $0x3f0] sm:$0xf0] }
 0x172   :  { %3284 = vmatpush.bf16.msra.mxu0 %v6313_v34  ;;  %3297 = vmatpush.bf16.msra.mxu1 %v6441_v60  ;;  %v6506_v34 = vld [vmem:[#allocation9 + $0x1d0] sm:$0xf0]  ;;  %v9268_v60 = vpack.c.bf16 %v9216_v2, %v9216_v2  ;;  %v9280_v2 = vpack.c.bf16 %v9222_v5, %v9222_v5  ;;  %v6873_v5 = vor.u32 %v8028_v53, %v6872_v48  ;;  %v8048_v51 = vld [vmem:[#allocation9 + $0x54c] sm:$0xf0]  ;;  %v7886_v52 = vld [vmem:[#allocation9 + $0x44] sm:$0xf] }
 0x173   :  { %3310 = vmatpush.bf16.msra.mxu2 %v6569_v0  ;;  %3323 = vmatpush.bf16.msra.mxu3 %v6697_v31  ;;  %v6889_v0 = vor.u32 %v8032_v45, %v6888_v35  ;;  %v7017_v31 = vor.u32 %v8064_v57, %v7016_v56  ;;  %v6509_v54 = vor.u32 %v7934_v47, %v6506_v34  ;;  %v6824_v35 = vld [vmem:[#allocation9 + $0x440] sm:$0xf]  ;;  %v8016_v45 = vld [vmem:[#allocation9 + $0x44c] sm:$0xf0]  ;;  %v6442_v47 = vld [vmem:[#allocation9 + $0x150] sm:$0xf0] }
 0x174   :  { %v6825_v48 = vor.u32 %v8016_v45, %v6824_v35  ;;  %v6317_v55 = vor.u32 %v7886_v52, %v6314_v58  ;;  %v6445_v7 = vor.u32 %v7918_v59, %v6442_v47  ;;  %v6906_v41 = vld [vmem:[#allocation9 + $0x4f0] sm:$0xf0]  ;;  %v9290_v58 = vpack.c.bf16 %v9224_v13, %v9224_v13 }
 0x175   :  { %v6634_v35 = vld [vmem:[#allocation9 + $0x2d0] sm:$0xf0]  ;;  %v9294_v59 = vpack.c.bf16 %v9226_v15, %v9226_v15 }
 0x176   :  { %3285 = vmatpush.bf16.msra.mxu0 %v6297_v12  ;;  %3298 = vmatpush.bf16.msra.mxu1 %v6425_v8  ;;  %v6856_v12 = vld [vmem:[#allocation9 + $0x480] sm:$0xf]  ;;  %v8024_v8 = vld [vmem:[#allocation9 + $0x48c] sm:$0xf0]  ;;  %v6890_v52 = vld [vmem:[#allocation9 + $0x4d0] sm:$0xf0] }
 0x177   :  { %3311 = vmatpush.bf16.msra.mxu2 %v6553_v22  ;;  %3324 = vmatpush.bf16.msra.mxu3 %v6681_v14  ;;  %v7894_v22 = vld [vmem:[#allocation9 + $0x84] sm:$0xf]  ;;  %v6346_v14 = vld [vmem:[#allocation9 + $0x90] sm:$0xf0]  ;;  %v6857_v10 = vor.u32 %v8024_v8, %v6856_v12  ;;  %v6937_v8 = vor.u32 %v8044_v9, %v6936_v4 }
 0x178   :  { %v2096_v6 = vpop.f32.mrf.mxu2  ;;  %v2109_v11 = vpop.f32.mrf.mxu3  ;;  %v6874_v13 = vld [vmem:[#allocation9 + $0x4b0] sm:$0xf0] }
 0x179   :  { %v6426_v6 = vld [vmem:[#allocation9 + $0x130] sm:$0xf0]  ;;  %v6792_v11 = vld [vmem:[#allocation9 + $0x400] sm:$0xf] }
 0x17a   :  { %3286 = vmatpush.bf16.msra.mxu0 %v6281_v37  ;;  %3299 = vmatpush.bf16.msra.mxu1 %v6409_v38  ;;  %v2120_v17 = vpop.f32.mrf.mxu0  ;;  %v2133_v28 = vpop.f32.mrf.mxu1  ;;  %v6349_v37 = vor.u32 %v7894_v22, %v6346_v14  ;;  %v6477_v38 = vor.u32 %v7926_v25, %v6474_v23  ;;  %v7878_v14 = vld [vmem:[#allocation9 + $0x4] sm:$0xf]  ;;  %v6282_v25 = vld [vmem:[#allocation9 + $0x10] sm:$0xf0] }
 0x17b   :  { %3312 = vmatpush.bf16.msra.mxu2 %v6537_v46  ;;  %3325 = vmatpush.bf16.msra.mxu3 %v6665_v26  ;;  %v2121_v29 = vadd.f32 %v2120_v17, %v2108_v49  ;;  %v6330_v26 = vld [vmem:[#allocation9 + $0x70] sm:$0xf0]  ;;  %v6952_v49 = vld [vmem:[#allocation9 + $0x540] sm:$0xf]  ;;  %v7910_v23 = vld [vmem:[#allocation9 + $0x104] sm:$0xf] }
 0x17c   :  { %v6953_v53 = vor.u32 %v8048_v51, %v6952_v49  ;;  %v6762_v49 = vld [vmem:[#allocation9 + $0x3d0] sm:$0xf0]  ;;  %v8030_v51 = vld [vmem:[#allocation9 + $0x4c4] sm:$0xf] }
 0x17d   :  { %3287 = vmatmul.bf16.vlgmr.msra.gmra.mxu0 %v9268_v60  ;;  %3300 = vmatmul.bf16.vlgmr.msra.gmra.mxu1 %v9272_v61  ;;  %v2134_v46 = vadd.f32 %v2133_v28, %v2121_v29  ;;  %v6410_v29 = vld [vmem:[#allocation9 + $0x110] sm:$0xf0] }
 0x17e   :  { %3331 = vmatpush.bf16.msrb.mxu0 %v6905_v27  ;;  %3344 = vmatpush.bf16.msrb.mxu1 %v7033_v18  ;;  %v7922_v27 = vld [vmem:[#allocation9 + $0x164] sm:$0xf]  ;;  %v6458_v18 = vld [vmem:[#allocation9 + $0x170] sm:$0xf0] }
 0x17f   :  { %3357 = vmatpush.bf16.msrb.mxu2 %v6397_v39  ;;  %3370 = vmatpush.bf16.msrb.mxu3 %v6525_v50  ;;  %v6333_v39 = vor.u32 %v7890_v42, %v6330_v26  ;;  %v6461_v50 = vor.u32 %v7922_v27, %v6458_v18  ;;  %v8066_v42 = vld [vmem:[#allocation9 + $0x5e4] sm:$0xf]  ;;  %v6285_v26 = vor.u32 %v7878_v14, %v6282_v25  ;;  %v7002_v4 = vld [vmem:[#allocation9 + $0x5b0] sm:$0xf0] }
 0x180   :  { %3313 = vmatmul.bf16.vlgmr.msra.gmra.mxu2 %v9276_v63  ;;  %3326 = vmatmul.bf16.vlgmr.msra.gmra.mxu3 %v9280_v2  ;;  %v6413_v27 = vor.u32 %v7910_v23, %v6410_v29 }
 0x182   :  { %3332 = vmatpush.bf16.msrb.mxu0 %v6889_v0  ;;  %3345 = vmatpush.bf16.msrb.mxu1 %v7017_v31  ;;  %v2122_v0 = vpop.f32.mrf.mxu0  ;;  %v2135_v31 = vpop.f32.mrf.mxu1 }
 0x183   :  { %3358 = vmatpush.bf16.msrb.mxu2 %v6381_v1  ;;  %3371 = vmatpush.bf16.msrb.mxu3 %v6509_v54  ;;  %v2146_v56 = vpop.f32.mrf.mxu2  ;;  %v2159_v57 = vpop.f32.mrf.mxu3  ;;  %v6808_v1 = vld [vmem:[#allocation9 + $0x420] sm:$0xf]  ;;  %v8012_v54 = vld [vmem:[#allocation9 + $0x42c] sm:$0xf0]  ;;  %v7962_v0 = vld [vmem:[#allocation9 + $0x2a4] sm:$0xf] }
 0x184   :  { %v2147_v34 = vadd.f32 %v2146_v56, %v2134_v46  ;;  %v6809_v12 = vor.u32 %v8012_v54, %v6808_v1  ;;  %v7034_v46 = vld [vmem:[#allocation9 + $0x5f0] sm:$0xf0]  ;;  %v8062_v56 = vld [vmem:[#allocation9 + $0x5c4] sm:$0xf] }
 0x185   :  { %v6618_v31 = vld [vmem:[#allocation9 + $0x2b0] sm:$0xf0]  ;;  %v7994_v1 = vld [vmem:[#allocation9 + $0x3a4] sm:$0xf] }
 0x186   :  { %3333 = vmatpush.bf16.msrb.mxu0 %v6873_v5  ;;  %3346 = vmatpush.bf16.msrb.mxu1 %v7001_v20  ;;  %v9286_v3 = vadd.f32 %v2159_v57, %v2147_v34  ;;  %v6298_v5 = vld [vmem:[#allocation9 + $0x30] sm:$0xf0]  ;;  %v7914_v20 = vld [vmem:[#allocation9 + $0x124] sm:$0xf]  ;;  %v6621_v15 = vor.u32 %v7962_v0, %v6618_v31 }
 0x187   :  { %3359 = vmatpush.bf16.msrb.mxu2 %v6365_v16  ;;  %3372 = vmatpush.bf16.msrb.mxu3 %v6493_v19  ;;  %v8008_v16 = vld [vmem:[#allocation9 + $0x40c] sm:$0xf0]  ;;  %v6920_v19 = vld [vmem:[#allocation9 + $0x500] sm:$0xf]  ;;  %v6301_v21 = vor.u32 %v7882_v62, %v6298_v5  ;;  %v6429_v22 = vor.u32 %v7914_v20, %v6426_v6  ;;  %v7018_v57 = vld [vmem:[#allocation9 + $0x5d0] sm:$0xf0] }
 0x188   :  { %v6921_v40 = vor.u32 %v8040_v30, %v6920_v19  ;;  %v6746_v54 = vld [vmem:[#allocation9 + $0x3b0] sm:$0xf0]  ;;  %v7958_v62 = vld [vmem:[#allocation9 + $0x284] sm:$0xf] }
 0x189   :  { %v6749_v9 = vor.u32 %v7994_v1, %v6746_v54  ;;  %v6602_v5 = vld [vmem:[#allocation9 + $0x290] sm:$0xf0]  ;;  %v8054_v19 = vld [vmem:[#allocation9 + $0x584] sm:$0xf] }
 0x18a   :  { %3334 = vmatpush.bf16.msrb.mxu0 %v6857_v10  ;;  %3347 = vmatpush.bf16.msrb.mxu1 %v6985_v32  ;;  %v7970_v10 = vld [vmem:[#allocation9 + $0x2e4] sm:$0xf]  ;;  %v6650_v32 = vld [vmem:[#allocation9 + $0x2f0] sm:$0xf0]  ;;  %v6605_v25 = vor.u32 %v7958_v62, %v6602_v5 }
 0x18b   :  { %3360 = vmatpush.bf16.msrb.mxu2 %v6349_v37  ;;  %3373 = vmatpush.bf16.msrb.mxu3 %v6477_v38  ;;  %v2148_v17 = vpop.f32.mrf.mxu2  ;;  %v2161_v28 = vpop.f32.mrf.mxu3  ;;  %v8034_v37 = vld [vmem:[#allocation9 + $0x4e4] sm:$0xf]  ;;  %v6793_v38 = vor.u32 %v8008_v16, %v6792_v11  ;;  %v6653_v18 = vor.u32 %v7970_v10, %v6650_v32  ;;  %v6858_v16 = vld [vmem:[#allocation9 + $0x490] sm:$0xf0] }
 0x18c   :  { %v6909_v45 = vor.u32 %v8034_v37, %v6906_v41  ;;  %v7990_v11 = vld [vmem:[#allocation9 + $0x384] sm:$0xf]  ;;  %v6986_v30 = vld [vmem:[#allocation9 + $0x590] sm:$0xf0] }
 0x18d   :  { %v7954_v17 = vld [vmem:[#allocation9 + $0x264] sm:$0xf]  ;;  %v6586_v28 = vld [vmem:[#allocation9 + $0x270] sm:$0xf0]  ;;  %v6989_v10 = vor.u32 %v8054_v19, %v6986_v30 }
 0x18e   :  { %3335 = vmatpush.bf16.msrb.mxu0 %v6841_v43  ;;  %3348 = vmatpush.bf16.msrb.mxu1 %v6969_v44  ;;  %v6781_v43 = vor.u32 %v8002_v33, %v6778_v36  ;;  %v7966_v44 = vld [vmem:[#allocation9 + $0x2c4] sm:$0xf]  ;;  %v6714_v33 = vld [vmem:[#allocation9 + $0x370] sm:$0xf0]  ;;  %v6589_v41 = vor.u32 %v7954_v17, %v6586_v28  ;;  %v6528_v17 = vld [vmem:[#allocation9 + $0x1e8] sm:$0xf] }
 0x18f   :  { %3361 = vmatpush.bf16.msrb.mxu2 %v6333_v39  ;;  %3374 = vmatpush.bf16.msrb.mxu3 %v6461_v50  ;;  %v7037_v39 = vor.u32 %v8066_v42, %v7034_v46  ;;  %v7998_v50 = vld [vmem:[#allocation9 + $0x3c4] sm:$0xf]  ;;  %v6637_v47 = vor.u32 %v7966_v44, %v6634_v35  ;;  %v6842_v37 = vld [vmem:[#allocation9 + $0x470] sm:$0xf0]  ;;  %v7941_v28 = vld [vmem:[#allocation9 + $0x1f4] sm:$0xf0] }
 0x190   :  { %v6765_v34 = vor.u32 %v7998_v50, %v6762_v49  ;;  %v7986_v32 = vld [vmem:[#allocation9 + $0x364] sm:$0xf]  ;;  %v6698_v44 = vld [vmem:[#allocation9 + $0x350] sm:$0xf0] }
 0x191   :  { %v8018_v36 = vld [vmem:[#allocation9 + $0x464] sm:$0xf]  ;;  %v6717_v42 = vor.u32 %v7986_v32, %v6714_v33  ;;  %v6826_v50 = vld [vmem:[#allocation9 + $0x450] sm:$0xf0]  ;;  %v7973_v33 = vld [vmem:[#allocation9 + $0x2f4] sm:$0xf0] }
 0x192   :  { %3336 = vmatpush.bf16.msrb.mxu0 %v6825_v48  ;;  %3349 = vmatpush.bf16.msrb.mxu1 %v6953_v53  ;;  %v6893_v48 = vor.u32 %v8030_v51, %v6890_v52  ;;  %v7021_v53 = vor.u32 %v8062_v56, %v7018_v57  ;;  %v7950_v46 = vld [vmem:[#allocation9 + $0x244] sm:$0xf]  ;;  %v6954_v51 = vld [vmem:[#allocation9 + $0x550] sm:$0xf0] }
 0x193   :  { %3362 = vmatpush.bf16.msrb.mxu2 %v6317_v55  ;;  %3375 = vmatpush.bf16.msrb.mxu3 %v6445_v7  ;;  %v8026_v55 = vld [vmem:[#allocation9 + $0x4a4] sm:$0xf]  ;;  %v6554_v31 = vld [vmem:[#allocation9 + $0x230] sm:$0xf0] }
 0x194   :  { %v8058_v7 = vld [vmem:[#allocation9 + $0x5a4] sm:$0xf]  ;;  %v6877_v20 = vor.u32 %v8026_v55, %v6874_v13  ;;  %v6682_v55 = vld [vmem:[#allocation9 + $0x330] sm:$0xf0] }
 0x195   :  { %v7005_v6 = vor.u32 %v8058_v7, %v7002_v4  ;;  %v8014_v35 = vld [vmem:[#allocation9 + $0x444] sm:$0xf]  ;;  %v6810_v7 = vld [vmem:[#allocation9 + $0x430] sm:$0xf0] }
 0x196   :  { %3337 = vmatpush.bf16.msrb.mxu0 %v6809_v12  ;;  %3350 = vmatpush.bf16.msrb.mxu1 %v6937_v8  ;;  %v6730_v12 = vld [vmem:[#allocation9 + $0x390] sm:$0xf0]  ;;  %v8022_v8 = vld [vmem:[#allocation9 + $0x484] sm:$0xf] }
 0x197   :  { %3363 = vmatpush.bf16.msrb.mxu2 %v6301_v21  ;;  %3376 = vmatpush.bf16.msrb.mxu3 %v6429_v22  ;;  %v6733_v23 = vor.u32 %v7990_v11, %v6730_v12  ;;  %v6861_v29 = vor.u32 %v8022_v8, %v6858_v16  ;;  %v8046_v49 = vld [vmem:[#allocation9 + $0x544] sm:$0xf]  ;;  %v6666_v11 = vld [vmem:[#allocation9 + $0x310] sm:$0xf0] }
 0x198   :  { %v7946_v0 = vld [vmem:[#allocation9 + $0x224] sm:$0xf]  ;;  %v6957_v1 = vor.u32 %v8046_v49, %v6954_v51  ;;  %v6794_v19 = vld [vmem:[#allocation9 + $0x410] sm:$0xf0] }
 0x199   :  { %v7978_v54 = vld [vmem:[#allocation9 + $0x324] sm:$0xf]  ;;  %v6557_v62 = vor.u32 %v7946_v0, %v6554_v31  ;;  %v7933_v0 = vld [vmem:[#allocation9 + $0x1b4] sm:$0xf0]  ;;  %v6624_v31 = vld [vmem:[#allocation9 + $0x2a8] sm:$0xf] }
 0x19a   :  { %3338 = vmatpush.bf16.msrb.mxu0 %v6793_v38  ;;  %3351 = vmatpush.bf16.msrb.mxu1 %v6921_v40  ;;  %v2172_v21 = vpop.f32.mrf.mxu0  ;;  %v2185_v22 = vpop.f32.mrf.mxu1  ;;  %v8050_v38 = vld [vmem:[#allocation9 + $0x564] sm:$0xf]  ;;  %v6970_v40 = vld [vmem:[#allocation9 + $0x570] sm:$0xf0]  ;;  %v6685_v5 = vor.u32 %v7978_v54, %v6682_v55  ;;  %v7997_v54 = vld [vmem:[#allocation9 + $0x3b4] sm:$0xf0] }
 0x19b   :  { %3364 = vmatpush.bf16.msrb.mxu2 %v6285_v26  ;;  %3377 = vmatpush.bf16.msrb.mxu3 %v6413_v27  ;;  %v2186_v14 = vadd.f32 %v2185_v22, %v2172_v21  ;;  %v6570_v26 = vld [vmem:[#allocation9 + $0x250] sm:$0xf0]  ;;  %v6845_v27 = vor.u32 %v8018_v36, %v6842_v37  ;;  %v8010_v13 = vld [vmem:[#allocation9 + $0x424] sm:$0xf]  ;;  %v6784_v36 = vld [vmem:[#allocation9 + $0x3e8] sm:$0xf] }
 0x19c   :  { %v8042_v4 = vld [vmem:[#allocation9 + $0x524] sm:$0xf]  ;;  %v6813_v12 = vor.u32 %v8010_v13, %v6810_v7  ;;  %v8005_v37 = vld [vmem:[#allocation9 + $0x3f4] sm:$0xf0]  ;;  %v6352_v7 = vld [vmem:[#allocation9 + $0x88] sm:$0xf] }
 0x19d   :  { %3339 = vmatmul.bf16.vlgmr.msrb.gmra.mxu0 %v9290_v58  ;;  %3352 = vmatmul.bf16.vlgmr.msrb.gmra.mxu1 %v9294_v59  ;;  %v8006_v16 = vld [vmem:[#allocation9 + $0x404] sm:$0xf] }
 0x19e   :  { %3383 = vmatpush.bf16.msra.mxu0 %v6653_v18  ;;  %3396 = vmatpush.bf16.msra.mxu1 %v6781_v43  ;;  %v6973_v18 = vor.u32 %v8050_v38, %v6970_v40  ;;  %v7982_v43 = vld [vmem:[#allocation9 + $0x344] sm:$0xf]  ;;  %v6797_v38 = vor.u32 %v8006_v16, %v6794_v19 }
 0x19f   :  { %3409 = vmatpush.bf16.msra.mxu2 %v6909_v45  ;;  %3422 = vmatpush.bf16.msra.mxu3 %v7037_v39  ;;  %v8038_v30 = vld [vmem:[#allocation9 + $0x504] sm:$0xf] }
 0x1a0   :  { %3365 = vmatmul.bf16.vlgmr.msrb.gmra.mxu2 %v9268_v60  ;;  %3378 = vmatmul.bf16.vlgmr.msrb.gmra.mxu3 %v9272_v61 }
 0x1a2   :  { %3384 = vmatpush.bf16.msra.mxu0 %v6637_v47  ;;  %3397 = vmatpush.bf16.msra.mxu1 %v6765_v34  ;;  %v2174_v56 = vpop.f32.mrf.mxu0  ;;  %v2187_v57 = vpop.f32.mrf.mxu1  ;;  %v6573_v47 = vor.u32 %v7950_v46, %v6570_v26  ;;  %v6701_v34 = vor.u32 %v7982_v43, %v6698_v44  ;;  %v6384_v46 = vld [vmem:[#allocation9 + $0xc8] sm:$0xf]  ;;  %v7905_v26 = vld [vmem:[#allocation9 + $0xd4] sm:$0xf0] }
 0x1a3   :  { %3410 = vmatpush.bf16.msra.mxu2 %v6893_v48  ;;  %3423 = vmatpush.bf16.msra.mxu3 %v7021_v53  ;;  %v2198_v45 = vpop.f32.mrf.mxu2  ;;  %v2211_v39 = vpop.f32.mrf.mxu3  ;;  %v6829_v53 = vor.u32 %v8014_v35, %v6826_v50  ;;  %v6512_v43 = vld [vmem:[#allocation9 + $0x1c8] sm:$0xf]  ;;  %v7937_v44 = vld [vmem:[#allocation9 + $0x1d4] sm:$0xf0]  ;;  %v6385_v49 = vor.u32 %v7905_v26, %v6384_v46 }
 0x1a4   :  { %v2199_v52 = vadd.f32 %v2198_v45, %v2186_v14  ;;  %v6922_v14 = vld [vmem:[#allocation9 + $0x510] sm:$0xf0]  ;;  %v6640_v35 = vld [vmem:[#allocation9 + $0x2c8] sm:$0xf]  ;;  %v7969_v45 = vld [vmem:[#allocation9 + $0x2d4] sm:$0xf0]  ;;  %v6513_v51 = vor.u32 %v7937_v44, %v6512_v43 }
 0x1a5   :  { %v6925_v40 = vor.u32 %v8038_v30, %v6922_v14  ;;  %v8001_v50 = vld [vmem:[#allocation9 + $0x3d4] sm:$0xf0]  ;;  %v6641_v57 = vor.u32 %v7969_v45, %v6640_v35  ;;  %v6448_v46 = vld [vmem:[#allocation9 + $0x148] sm:$0xf] }
 0x1a6   :  { %3385 = vmatpush.bf16.msra.mxu0 %v6621_v15  ;;  %3398 = vmatpush.bf16.msra.mxu1 %v6749_v9  ;;  %v9300_v48 = vadd.f32 %v2211_v39, %v2199_v52  ;;  %v6938_v15 = vld [vmem:[#allocation9 + $0x530] sm:$0xf0]  ;;  %v7942_v9 = vld [vmem:[#allocation9 + $0x204] sm:$0xf]  ;;  %v6768_v39 = vld [vmem:[#allocation9 + $0x3c8] sm:$0xf] }
 0x1a7   :  { %3411 = vmatpush.bf16.msra.mxu2 %v6877_v20  ;;  %3424 = vmatpush.bf16.msra.mxu3 %v7005_v6  ;;  %v6538_v20 = vld [vmem:[#allocation9 + $0x210] sm:$0xf0]  ;;  %v7974_v6 = vld [vmem:[#allocation9 + $0x304] sm:$0xf]  ;;  %v6941_v8 = vor.u32 %v8042_v4, %v6938_v15  ;;  %v6368_v52 = vld [vmem:[#allocation9 + $0xa8] sm:$0xf] }
 0x1a8   :  { %v6669_v32 = vor.u32 %v7974_v6, %v6666_v11  ;;  %v7901_v56 = vld [vmem:[#allocation9 + $0xb4] sm:$0xf0]  ;;  %v6736_v11 = vld [vmem:[#allocation9 + $0x388] sm:$0xf] }
 0x1a9   :  { %v6369_v55 = vor.u32 %v7901_v56, %v6368_v52  ;;  %v7897_v4 = vld [vmem:[#allocation9 + $0x94] sm:$0xf0]  ;;  %v6704_v35 = vld [vmem:[#allocation9 + $0x348] sm:$0xf] }
 0x1aa   :  { %3386 = vmatpush.bf16.msra.mxu0 %v6605_v25  ;;  %3399 = vmatpush.bf16.msra.mxu1 %v6733_v23  ;;  %v6400_v25 = vld [vmem:[#allocation9 + $0xe8] sm:$0xf]  ;;  %v7909_v23 = vld [vmem:[#allocation9 + $0xf4] sm:$0xf0]  ;;  %v6353_v30 = vor.u32 %v7897_v4, %v6352_v7 }
 0x1ab   :  { %3412 = vmatpush.bf16.msra.mxu2 %v6861_v29  ;;  %3425 = vmatpush.bf16.msra.mxu3 %v6989_v10  ;;  %v2200_v21 = vpop.f32.mrf.mxu2  ;;  %v2213_v22 = vpop.f32.mrf.mxu3  ;;  %v6656_v29 = vld [vmem:[#allocation9 + $0x2e8] sm:$0xf]  ;;  %v6541_v10 = vor.u32 %v7942_v9, %v6538_v20  ;;  %v7961_v6 = vld [vmem:[#allocation9 + $0x294] sm:$0xf0] }
 0x1ac   :  { %v6608_v20 = vld [vmem:[#allocation9 + $0x288] sm:$0xf]  ;;  %v7893_v14 = vld [vmem:[#allocation9 + $0x74] sm:$0xf0] }
 0x1ad   :  { %v6336_v22 = vld [vmem:[#allocation9 + $0x68] sm:$0xf]  ;;  %v7921_v26 = vld [vmem:[#allocation9 + $0x154] sm:$0xf0] }
 0x1ae   :  { %3387 = vmatpush.bf16.msra.mxu0 %v6589_v41  ;;  %3400 = vmatpush.bf16.msra.mxu1 %v6717_v42  ;;  %v6401_v41 = vor.u32 %v7909_v23, %v6400_v25  ;;  %v6529_v42 = vor.u32 %v7941_v28, %v6528_v17  ;;  %v6609_v25 = vor.u32 %v7961_v6, %v6608_v20  ;;  %v6464_v17 = vld [vmem:[#allocation9 + $0x168] sm:$0xf]  ;;  %v7925_v28 = vld [vmem:[#allocation9 + $0x174] sm:$0xf0] }
 0x1af   :  { %3413 = vmatpush.bf16.msra.mxu2 %v6845_v27  ;;  %3426 = vmatpush.bf16.msra.mxu3 %v6973_v18  ;;  %v6657_v27 = vor.u32 %v7973_v33, %v6656_v29  ;;  %v6785_v18 = vor.u32 %v8005_v37, %v6784_v36  ;;  %v6592_v29 = vld [vmem:[#allocation9 + $0x268] sm:$0xf]  ;;  %v7989_v36 = vld [vmem:[#allocation9 + $0x374] sm:$0xf0]  ;;  %v6337_v37 = vor.u32 %v7893_v14, %v6336_v22 }
 0x1b0   :  { %v6720_v33 = vld [vmem:[#allocation9 + $0x368] sm:$0xf]  ;;  %v7953_v44 = vld [vmem:[#allocation9 + $0x254] sm:$0xf0]  ;;  %v6449_v52 = vor.u32 %v7921_v26, %v6448_v46 }
 0x1b1   :  { %v7985_v45 = vld [vmem:[#allocation9 + $0x354] sm:$0xf0]  ;;  %v6304_v56 = vld [vmem:[#allocation9 + $0x28] sm:$0xf] }
 0x1b2   :  { %3388 = vmatpush.bf16.msra.mxu0 %v6573_v47  ;;  %3401 = vmatpush.bf16.msra.mxu1 %v6701_v34  ;;  %v6769_v47 = vor.u32 %v8001_v50, %v6768_v39  ;;  %v6496_v34 = vld [vmem:[#allocation9 + $0x1a8] sm:$0xf]  ;;  %v8069_v14 = vld [vmem:[#allocation9 + $0x5f4] sm:$0xf0] }
 0x1b3   :  { %3414 = vmatpush.bf16.msra.mxu2 %v6829_v53  ;;  %3427 = vmatpush.bf16.msra.mxu3 %v6957_v1  ;;  %v7965_v53 = vld [vmem:[#allocation9 + $0x2b4] sm:$0xf0]  ;;  %v6752_v1 = vld [vmem:[#allocation9 + $0x3a8] sm:$0xf]  ;;  %v6497_v13 = vor.u32 %v7933_v0, %v6496_v34  ;;  %v6705_v34 = vor.u32 %v7985_v45, %v6704_v35 }
 0x1b4   :  { %v6625_v15 = vor.u32 %v7965_v53, %v6624_v31  ;;  %v6753_v9 = vor.u32 %v7997_v54, %v6752_v1  ;;  %v6432_v0 = vld [vmem:[#allocation9 + $0x128] sm:$0xf]  ;;  %v7917_v31 = vld [vmem:[#allocation9 + $0x134] sm:$0xf0] }
 0x1b5   :  { %v6560_v53 = vld [vmem:[#allocation9 + $0x228] sm:$0xf]  ;;  %v7949_v1 = vld [vmem:[#allocation9 + $0x234] sm:$0xf0]  ;;  %v6433_v4 = vor.u32 %v7917_v31, %v6432_v0  ;;  %v7931_v0 = vld [vmem:[#allocation9 + $0x1ac] sm:$0xf] }
 0x1b6   :  { %3389 = vmatpush.bf16.msra.mxu0 %v6557_v62  ;;  %3402 = vmatpush.bf16.msra.mxu1 %v6685_v5  ;;  %v6480_v62 = vld [vmem:[#allocation9 + $0x188] sm:$0xf]  ;;  %v7929_v5 = vld [vmem:[#allocation9 + $0x194] sm:$0xf0]  ;;  %v6498_v31 = vld [vmem:[#allocation9 + $0x1b8] sm:$0xf0] }
 0x1b7   :  { %3415 = vmatpush.bf16.msra.mxu2 %v6813_v12  ;;  %3428 = vmatpush.bf16.msra.mxu3 %v6941_v8  ;;  %v7993_v12 = vld [vmem:[#allocation9 + $0x394] sm:$0xf0]  ;;  %v6481_v21 = vor.u32 %v7929_v5, %v6480_v62  ;;  %v6688_v54 = vld [vmem:[#allocation9 + $0x328] sm:$0xf]  ;;  %v6561_v5 = vor.u32 %v7949_v1, %v6560_v53 }
 0x1b8   :  { %v6737_v23 = vor.u32 %v7993_v12, %v6736_v11  ;;  %v7913_v62 = vld [vmem:[#allocation9 + $0x114] sm:$0xf0]  ;;  %v6544_v6 = vld [vmem:[#allocation9 + $0x208] sm:$0xf] }
 0x1b9   :  { %v7945_v11 = vld [vmem:[#allocation9 + $0x214] sm:$0xf0]  ;;  %v6672_v12 = vld [vmem:[#allocation9 + $0x308] sm:$0xf] }
 0x1ba   :  { %3390 = vmatpush.bf16.msra.mxu0 %v6541_v10  ;;  %3403 = vmatpush.bf16.msra.mxu1 %v6669_v32  ;;  %v2224_v8 = vpop.f32.mrf.mxu0  ;;  %v2237_v16 = vpop.f32.mrf.mxu1  ;;  %v7957_v32 = vld [vmem:[#allocation9 + $0x274] sm:$0xf0]  ;;  %v7040_v22 = vld [vmem:[#allocation9 + $0x5e8] sm:$0xf] }
 0x1bb   :  { %3416 = vmatpush.bf16.msra.mxu2 %v6797_v38  ;;  %3429 = vmatpush.bf16.msra.mxu3 %v6925_v40  ;;  %v2225_v19 = vadd.f32 %v2224_v8, %v9300_v48  ;;  %v6465_v48 = vor.u32 %v7925_v28, %v6464_v17  ;;  %v6320_v38 = vld [vmem:[#allocation9 + $0x48] sm:$0xf]  ;;  %v7889_v40 = vld [vmem:[#allocation9 + $0x54] sm:$0xf0]  ;;  %v6402_v28 = vld [vmem:[#allocation9 + $0xf8] sm:$0xf0] }
 0x1bc   :  { %v7024_v46 = vld [vmem:[#allocation9 + $0x5c8] sm:$0xf]  ;;  %v8065_v26 = vld [vmem:[#allocation9 + $0x5d4] sm:$0xf0] }
 0x1bd   :  { %3391 = vmatmul.bf16.vlgmr.msra.gmra.mxu0 %v9276_v63  ;;  %3404 = vmatmul.bf16.vlgmr.msra.gmra.mxu1 %v9280_v2  ;;  %v9307_v10 = vadd.f32 %v2237_v16, %v2225_v19  ;;  %v7977_v19 = vld [vmem:[#allocation9 + $0x314] sm:$0xf0]  ;;  %v7025_v45 = vor.u32 %v8065_v26, %v7024_v46 }
 0x1be   :  { %3435 = vmatpush.bf16.msrb.mxu0 %v6401_v41  ;;  %3448 = vmatpush.bf16.msrb.mxu1 %v6529_v42  ;;  %v6593_v41 = vor.u32 %v7957_v32, %v6592_v29  ;;  %v6721_v42 = vor.u32 %v7989_v36, %v6720_v33  ;;  %v7939_v29 = vld [vmem:[#allocation9 + $0x1ec] sm:$0xf]  ;;  %v6530_v32 = vld [vmem:[#allocation9 + $0x1f8] sm:$0xf0]  ;;  %v6545_v33 = vor.u32 %v7945_v11, %v6544_v6 }
 0x1bf   :  { %3461 = vmatpush.bf16.msrb.mxu2 %v6657_v27  ;;  %3474 = vmatpush.bf16.msrb.mxu3 %v6785_v18  ;;  %v6576_v27 = vld [vmem:[#allocation9 + $0x248] sm:$0xf]  ;;  %v6673_v36 = vor.u32 %v7977_v19, %v6672_v12 }
 0x1c0   :  { %3417 = vmatmul.bf16.vlgmr.msra.gmra.mxu2 %v9290_v58  ;;  %3430 = vmatmul.bf16.vlgmr.msra.gmra.mxu3 %v9294_v59  ;;  %v6848_v19 = vld [vmem:[#allocation9 + $0x468] sm:$0xf] }
 0x1c2   :  { %3436 = vmatpush.bf16.msrb.mxu0 %v6385_v49  ;;  %3449 = vmatpush.bf16.msrb.mxu1 %v6513_v51  ;;  %v2226_v50 = vpop.f32.mrf.mxu0  ;;  %v2239_v49 = vpop.f32.mrf.mxu1  ;;  %v6321_v51 = vor.u32 %v7889_v40, %v6320_v38  ;;  %v6896_v38 = vld [vmem:[#allocation9 + $0x4c8] sm:$0xf]  ;;  %v8033_v40 = vld [vmem:[#allocation9 + $0x4d4] sm:$0xf0] }
 0x1c3   :  { %3462 = vmatpush.bf16.msrb.mxu2 %v6641_v57  ;;  %3475 = vmatpush.bf16.msrb.mxu3 %v6769_v47  ;;  %v2250_v18 = vpop.f32.mrf.mxu2  ;;  %v2263_v43 = vpop.f32.mrf.mxu3  ;;  %v7885_v57 = vld [vmem:[#allocation9 + $0x34] sm:$0xf0]  ;;  %v6577_v47 = vor.u32 %v7953_v44, %v6576_v27  ;;  %v7903_v27 = vld [vmem:[#allocation9 + $0xcc] sm:$0xf]  ;;  %v6514_v44 = vld [vmem:[#allocation9 + $0x1d8] sm:$0xf0]  ;;  %v6897_v35 = vor.u32 %v8033_v40, %v6896_v38 }
 0x1c4   :  { %v9309_v39 = vadd.f32 %v2263_v43, %v2250_v18  ;;  %v6305_v7 = vor.u32 %v7885_v57, %v6304_v56  ;;  %v6386_v18 = vld [vmem:[#allocation9 + $0xd8] sm:$0xf0]  ;;  %v7935_v43 = vld [vmem:[#allocation9 + $0x1cc] sm:$0xf]  ;;  %v6880_v50 = vld [vmem:[#allocation9 + $0x4a8] sm:$0xf] }
 0x1c5   :  { %v8029_v49 = vld [vmem:[#allocation9 + $0x4b4] sm:$0xf0]  ;;  %v7008_v56 = vld [vmem:[#allocation9 + $0x5a8] sm:$0xf] }
 0x1c6   :  { %3437 = vmatpush.bf16.msrb.mxu0 %v6369_v55  ;;  %3450 = vmatpush.bf16.msrb.mxu1 %v6497_v13  ;;  %v7981_v55 = vld [vmem:[#allocation9 + $0x334] sm:$0xf0]  ;;  %v6288_v13 = vld [vmem:[#allocation9 + $0x8] sm:$0xf]  ;;  %v6881_v53 = vor.u32 %v8029_v49, %v6880_v50 }
 0x1c7   :  { %3463 = vmatpush.bf16.msrb.mxu2 %v6625_v15  ;;  %3476 = vmatpush.bf16.msrb.mxu3 %v6753_v9  ;;  %v7881_v15 = vld [vmem:[#allocation9 + $0x14] sm:$0xf0]  ;;  %v6416_v9 = vld [vmem:[#allocation9 + $0x108] sm:$0xf]  ;;  %v6689_v20 = vor.u32 %v7981_v55, %v6688_v54 }
 0x1c8   :  { %v6417_v17 = vor.u32 %v7913_v62, %v6416_v9  ;;  %v8061_v57 = vld [vmem:[#allocation9 + $0x5b4] sm:$0xf0]  ;;  %v6864_v54 = vld [vmem:[#allocation9 + $0x488] sm:$0xf]  ;;  %v7895_v9 = vld [vmem:[#allocation9 + $0x8c] sm:$0xf] }
 0x1c9   :  { %v7009_v1 = vor.u32 %v8061_v57, %v7008_v56  ;;  %v8025_v55 = vld [vmem:[#allocation9 + $0x494] sm:$0xf0]  ;;  %v6354_v62 = vld [vmem:[#allocation9 + $0x98] sm:$0xf0]  ;;  %v6960_v40 = vld [vmem:[#allocation9 + $0x548] sm:$0xf] }
 0x1ca   :  { %3438 = vmatpush.bf16.msrb.mxu0 %v6353_v30  ;;  %3451 = vmatpush.bf16.msrb.mxu1 %v6481_v21  ;;  %v6912_v30 = vld [vmem:[#allocation9 + $0x4e8] sm:$0xf]  ;;  %v8037_v21 = vld [vmem:[#allocation9 + $0x4f4] sm:$0xf0] }
 0x1cb   :  { %3464 = vmatpush.bf16.msrb.mxu2 %v6609_v25  ;;  %3477 = vmatpush.bf16.msrb.mxu3 %v6737_v23  ;;  %v2252_v8 = vpop.f32.mrf.mxu2  ;;  %v2265_v16 = vpop.f32.mrf.mxu3  ;;  %v7907_v25 = vld [vmem:[#allocation9 + $0xec] sm:$0xf]  ;;  %v6289_v23 = vor.u32 %v7881_v15, %v6288_v13  ;;  %v8057_v15 = vld [vmem:[#allocation9 + $0x594] sm:$0xf0] }
 0x1cc   :  { %v6865_v8 = vor.u32 %v8025_v55, %v6864_v54  ;;  %v6434_v54 = vld [vmem:[#allocation9 + $0x138] sm:$0xf0]  ;;  %v6800_v55 = vld [vmem:[#allocation9 + $0x408] sm:$0xf] }
 0x1ce   :  { %3439 = vmatpush.bf16.msrb.mxu0 %v6337_v37  ;;  %3452 = vmatpush.bf16.msrb.mxu1 %v6465_v48  ;;  %v6913_v37 = vor.u32 %v8037_v21, %v6912_v30  ;;  %v7041_v48 = vor.u32 %v8069_v14, %v7040_v22  ;;  %v8021_v30 = vld [vmem:[#allocation9 + $0x474] sm:$0xf0]  ;;  %v6357_v21 = vor.u32 %v7895_v9, %v6354_v62  ;;  %v6976_v14 = vld [vmem:[#allocation9 + $0x568] sm:$0xf] }
 0x1cf   :  { %3465 = vmatpush.bf16.msrb.mxu2 %v6593_v41  ;;  %3478 = vmatpush.bf16.msrb.mxu3 %v6721_v42  ;;  %v6405_v41 = vor.u32 %v7907_v25, %v6402_v28  ;;  %v6533_v42 = vor.u32 %v7939_v29, %v6530_v32  ;;  %v8053_v25 = vld [vmem:[#allocation9 + $0x574] sm:$0xf0]  ;;  %v6338_v28 = vld [vmem:[#allocation9 + $0x78] sm:$0xf0]  ;;  %v7923_v29 = vld [vmem:[#allocation9 + $0x16c] sm:$0xf] }
 0x1d0   :  { %v6466_v32 = vld [vmem:[#allocation9 + $0x178] sm:$0xf0]  ;;  %v8041_v9 = vld [vmem:[#allocation9 + $0x514] sm:$0xf0] }
 0x1d1   :  { %v6469_v38 = vor.u32 %v7923_v29, %v6466_v32  ;;  %v7042_v29 = vld [vmem:[#allocation9 + $0x5f8] sm:$0xf0] }
 0x1d2   :  { %3440 = vmatpush.bf16.msrb.mxu0 %v6321_v51  ;;  %3453 = vmatpush.bf16.msrb.mxu1 %v6449_v52  ;;  %v6389_v51 = vor.u32 %v7903_v27, %v6386_v18  ;;  %v6517_v52 = vor.u32 %v7935_v43, %v6514_v44  ;;  %v6322_v27 = vld [vmem:[#allocation9 + $0x58] sm:$0xf0]  ;;  %v7919_v18 = vld [vmem:[#allocation9 + $0x14c] sm:$0xf] }
 0x1d3   :  { %3466 = vmatpush.bf16.msrb.mxu2 %v6577_v47  ;;  %3479 = vmatpush.bf16.msrb.mxu3 %v6705_v34  ;;  %v7899_v47 = vld [vmem:[#allocation9 + $0xac] sm:$0xf]  ;;  %v6370_v34 = vld [vmem:[#allocation9 + $0xb8] sm:$0xf0] }
 0x1d4   :  { %v6373_v13 = vor.u32 %v7899_v47, %v6370_v34  ;;  %v6450_v43 = vld [vmem:[#allocation9 + $0x158] sm:$0xf0]  ;;  %v6944_v34 = vld [vmem:[#allocation9 + $0x528] sm:$0xf] }
 0x1d5   :  { %v6453_v47 = vor.u32 %v7919_v18, %v6450_v43  ;;  %v7026_v18 = vld [vmem:[#allocation9 + $0x5d8] sm:$0xf0] }
 0x1d6   :  { %3441 = vmatpush.bf16.msrb.mxu0 %v6305_v7  ;;  %3454 = vmatpush.bf16.msrb.mxu1 %v6433_v4  ;;  %v6501_v7 = vor.u32 %v7931_v0, %v6498_v31  ;;  %v6992_v4 = vld [vmem:[#allocation9 + $0x588] sm:$0xf]  ;;  %v8045_v0 = vld [vmem:[#allocation9 + $0x534] sm:$0xf0]  ;;  %v7883_v31 = vld [vmem:[#allocation9 + $0x2c] sm:$0xf] }
 0x1d7   :  { %3467 = vmatpush.bf16.msrb.mxu2 %v6561_v5  ;;  %3480 = vmatpush.bf16.msrb.mxu3 %v6689_v20  ;;  %v7927_v5 = vld [vmem:[#allocation9 + $0x18c] sm:$0xf]  ;;  %v6482_v20 = vld [vmem:[#allocation9 + $0x198] sm:$0xf0]  ;;  %v6993_v16 = vor.u32 %v8057_v15, %v6992_v4  ;;  %v8009_v4 = vld [vmem:[#allocation9 + $0x414] sm:$0xf0] }
 0x1d8   :  { %v6485_v22 = vor.u32 %v7927_v5, %v6482_v20  ;;  %v6928_v15 = vld [vmem:[#allocation9 + $0x508] sm:$0xf]  ;;  %v7879_v20 = vld [vmem:[#allocation9 + $0xc] sm:$0xf] }
 0x1da   :  { %3442 = vmatpush.bf16.msrb.mxu0 %v6289_v23  ;;  %3455 = vmatpush.bf16.msrb.mxu1 %v6417_v17  ;;  %v2276_v6 = vpop.f32.mrf.mxu0  ;;  %v2289_v11 = vpop.f32.mrf.mxu1  ;;  %v7891_v23 = vld [vmem:[#allocation9 + $0x6c] sm:$0xf] }
 0x1db   :  { %3468 = vmatpush.bf16.msrb.mxu2 %v6545_v33  ;;  %3481 = vmatpush.bf16.msrb.mxu3 %v6673_v36  ;;  %v2277_v12 = vadd.f32 %v2276_v6, %v9309_v39  ;;  %v6849_v33 = vor.u32 %v8021_v30, %v6848_v19  ;;  %v6977_v36 = vor.u32 %v8053_v25, %v6976_v14  ;;  %v6832_v39 = vld [vmem:[#allocation9 + $0x448] sm:$0xf]  ;;  %v6290_v6 = vld [vmem:[#allocation9 + $0x18] sm:$0xf0]  ;;  %v7971_v19 = vld [vmem:[#allocation9 + $0x2ec] sm:$0xf] }
 0x1dc   :  { %v6658_v30 = vld [vmem:[#allocation9 + $0x2f8] sm:$0xf0]  ;;  %v8035_v14 = vld [vmem:[#allocation9 + $0x4ec] sm:$0xf]  ;;  %v6801_v25 = vor.u32 %v8009_v4, %v6800_v55  ;;  %v6293_v32 = vor.u32 %v7879_v20, %v6290_v6 }
 0x1dd   :  { %3443 = vmatmul.bf16.vlgmr.msrb.gmra.mxu0 %v9268_v60  ;;  %3456 = vmatmul.bf16.vlgmr.msrb.gmra.mxu1 %v9272_v61  ;;  %v2290_v17 = vadd.f32 %v2289_v11, %v2277_v12  ;;  %v7911_v11 = vld [vmem:[#allocation9 + $0x10c] sm:$0xf]  ;;  %v6738_v4 = vld [vmem:[#allocation9 + $0x398] sm:$0xf0] }
 0x1de   :  { %3487 = vmatpush.bf16.msra.mxu0 %v6913_v37  ;;  %3500 = vmatpush.bf16.msra.mxu1 %v7041_v48  ;;  %v8017_v37 = vld [vmem:[#allocation9 + $0x454] sm:$0xf0]  ;;  %v6341_v48 = vor.u32 %v7891_v23, %v6338_v28  ;;  %v6929_v23 = vor.u32 %v8041_v9, %v6928_v15  ;;  %v8067_v28 = vld [vmem:[#allocation9 + $0x5ec] sm:$0xf]  ;;  %v6866_v9 = vld [vmem:[#allocation9 + $0x498] sm:$0xf0] }
 0x1df   :  { %3513 = vmatpush.bf16.msra.mxu2 %v6405_v41  ;;  %3526 = vmatpush.bf16.msra.mxu3 %v6533_v42  ;;  %v8049_v41 = vld [vmem:[#allocation9 + $0x554] sm:$0xf0]  ;;  %v7887_v42 = vld [vmem:[#allocation9 + $0x4c] sm:$0xf]  ;;  %v6833_v50 = vor.u32 %v8017_v37, %v6832_v39 }
 0x1e0   :  { %3469 = vmatmul.bf16.vlgmr.msrb.gmra.mxu2 %v9276_v63  ;;  %3482 = vmatmul.bf16.vlgmr.msrb.gmra.mxu3 %v9280_v2  ;;  %v6961_v49 = vor.u32 %v8049_v41, %v6960_v40  ;;  %v6325_v57 = vor.u32 %v7887_v42, %v6322_v27  ;;  %v7967_v37 = vld [vmem:[#allocation9 + $0x2cc] sm:$0xf]  ;;  %v7045_v40 = vor.u32 %v8067_v28, %v7042_v29  ;;  %v6770_v42 = vld [vmem:[#allocation9 + $0x3d8] sm:$0xf0] }
 0x1e1   :  { %v7999_v41 = vld [vmem:[#allocation9 + $0x3cc] sm:$0xf] }
 0x1e2   :  { %3488 = vmatpush.bf16.msra.mxu0 %v6897_v35  ;;  %3501 = vmatpush.bf16.msra.mxu1 %v7025_v45  ;;  %v2278_v35 = vpop.f32.mrf.mxu0  ;;  %v2291_v45 = vpop.f32.mrf.mxu1  ;;  %v8063_v27 = vld [vmem:[#allocation9 + $0x5cc] sm:$0xf] }
 0x1e3   :  { %3514 = vmatpush.bf16.msra.mxu2 %v6389_v51  ;;  %3527 = vmatpush.bf16.msra.mxu3 %v6517_v52  ;;  %v2302_v46 = vpop.f32.mrf.mxu2  ;;  %v2315_v26 = vpop.f32.mrf.mxu3  ;;  %v6816_v51 = vld [vmem:[#allocation9 + $0x428] sm:$0xf]  ;;  %v8013_v52 = vld [vmem:[#allocation9 + $0x434] sm:$0xf0]  ;;  %v7963_v35 = vld [vmem:[#allocation9 + $0x2ac] sm:$0xf] }
 0x1e4   :  { %v2303_v44 = vadd.f32 %v2302_v46, %v2290_v17  ;;  %v6914_v17 = vld [vmem:[#allocation9 + $0x4f8] sm:$0xf0]  ;;  %v8031_v46 = vld [vmem:[#allocation9 + $0x4cc] sm:$0xf] }
 0x1e5   :  { %v6626_v45 = vld [vmem:[#allocation9 + $0x2b8] sm:$0xf0]  ;;  %v8023_v15 = vld [vmem:[#allocation9 + $0x48c] sm:$0xf] }
 0x1e6   :  { %3489 = vmatpush.bf16.msra.mxu0 %v6881_v53  ;;  %3502 = vmatpush.bf16.msra.mxu1 %v7009_v1  ;;  %v9316_v56 = vadd.f32 %v2315_v26, %v2303_v44  ;;  %v6306_v53 = vld [vmem:[#allocation9 + $0x38] sm:$0xf0]  ;;  %v7915_v1 = vld [vmem:[#allocation9 + $0x12c] sm:$0xf]  ;;  %v6773_v44 = vor.u32 %v7999_v41, %v6770_v42 }
 0x1e7   :  { %3515 = vmatpush.bf16.msra.mxu2 %v6373_v13  ;;  %3528 = vmatpush.bf16.msra.mxu3 %v6501_v7  ;;  %v6817_v13 = vor.u32 %v8013_v52, %v6816_v51  ;;  %v6945_v7 = vor.u32 %v8045_v0, %v6944_v34  ;;  %v6309_v62 = vor.u32 %v7883_v31, %v6306_v53  ;;  %v6898_v26 = vld [vmem:[#allocation9 + $0x4d8] sm:$0xf0]  ;;  %v7995_v51 = vld [vmem:[#allocation9 + $0x3ac] sm:$0xf] }
 0x1e8   :  { %v6437_v5 = vor.u32 %v7915_v1, %v6434_v54  ;;  %v6754_v52 = vld [vmem:[#allocation9 + $0x3b8] sm:$0xf0]  ;;  %v8059_v34 = vld [vmem:[#allocation9 + $0x5ac] sm:$0xf]  ;;  %v6629_v31 = vor.u32 %v7963_v35, %v6626_v45 }
 0x1e9   :  { %v7010_v0 = vld [vmem:[#allocation9 + $0x5b8] sm:$0xf0]  ;;  %v6757_v53 = vor.u32 %v7995_v51, %v6754_v52  ;;  %v7959_v1 = vld [vmem:[#allocation9 + $0x28c] sm:$0xf] }
 0x1ea   :  { %3490 = vmatpush.bf16.msra.mxu0 %v6865_v8  ;;  %3503 = vmatpush.bf16.msra.mxu1 %v6993_v16  ;;  %v6418_v16 = vld [vmem:[#allocation9 + $0x118] sm:$0xf0]  ;;  %v8047_v42 = vld [vmem:[#allocation9 + $0x54c] sm:$0xf] }
 0x1eb   :  { %3516 = vmatpush.bf16.msra.mxu2 %v6357_v21  ;;  %3529 = vmatpush.bf16.msra.mxu3 %v6485_v22  ;;  %v2304_v12 = vpop.f32.mrf.mxu2  ;;  %v2317_v8 = vpop.f32.mrf.mxu3  ;;  %v8003_v21 = vld [vmem:[#allocation9 + $0x3ec] sm:$0xf]  ;;  %v6786_v22 = vld [vmem:[#allocation9 + $0x3f8] sm:$0xf0] }
 0x1ec   :  { %v6789_v39 = vor.u32 %v8003_v21, %v6786_v22  ;;  %v6610_v54 = vld [vmem:[#allocation9 + $0x298] sm:$0xf0]  ;;  %v7955_v12 = vld [vmem:[#allocation9 + $0x26c] sm:$0xf] }
 0x1ed   :  { %v6613_v6 = vor.u32 %v7959_v1, %v6610_v54  ;;  %v6594_v8 = vld [vmem:[#allocation9 + $0x278] sm:$0xf0]  ;;  %v8019_v22 = vld [vmem:[#allocation9 + $0x46c] sm:$0xf] }
 0x1ee   :  { %3491 = vmatpush.bf16.msra.mxu0 %v6849_v33  ;;  %3504 = vmatpush.bf16.msra.mxu1 %v6977_v36  ;;  %v6421_v33 = vor.u32 %v7911_v11, %v6418_v16  ;;  %v6661_v36 = vor.u32 %v7971_v19, %v6658_v30  ;;  %v6869_v16 = vor.u32 %v8023_v15, %v6866_v9  ;;  %v7987_v30 = vld [vmem:[#allocation9 + $0x36c] sm:$0xf]  ;;  %v6722_v21 = vld [vmem:[#allocation9 + $0x378] sm:$0xf0] }
 0x1ef   :  { %3517 = vmatpush.bf16.msra.mxu2 %v6341_v48  ;;  %3530 = vmatpush.bf16.msra.mxu3 %v6469_v38  ;;  %v6642_v48 = vld [vmem:[#allocation9 + $0x2d8] sm:$0xf0]  ;;  %v6917_v38 = vor.u32 %v8035_v14, %v6914_v17  ;;  %v6597_v28 = vor.u32 %v7955_v12, %v6594_v8  ;;  %v6725_v29 = vor.u32 %v7987_v30, %v6722_v21  ;;  %v7947_v35 = vld [vmem:[#allocation9 + $0x22c] sm:$0xf] }
 0x1f0   :  { %v6645_v43 = vor.u32 %v7967_v37, %v6642_v48  ;;  %v6978_v17 = vld [vmem:[#allocation9 + $0x578] sm:$0xf0]  ;;  %v8015_v48 = vld [vmem:[#allocation9 + $0x44c] sm:$0xf] }
 0x1f1   :  { %v6706_v37 = vld [vmem:[#allocation9 + $0x358] sm:$0xf0]  ;;  %v7979_v52 = vld [vmem:[#allocation9 + $0x32c] sm:$0xf] }
 0x1f2   :  { %3492 = vmatpush.bf16.msra.mxu0 %v6833_v50  ;;  %3505 = vmatpush.bf16.msra.mxu1 %v6961_v49  ;;  %v6901_v50 = vor.u32 %v8031_v46, %v6898_v26  ;;  %v7029_v49 = vor.u32 %v8063_v27, %v7026_v18  ;;  %v6834_v41 = vld [vmem:[#allocation9 + $0x458] sm:$0xf0]  ;;  %v7943_v54 = vld [vmem:[#allocation9 + $0x20c] sm:$0xf] }
 0x1f3   :  { %3518 = vmatpush.bf16.msra.mxu2 %v6325_v57  ;;  %3531 = vmatpush.bf16.msra.mxu3 %v6453_v47  ;;  %v8027_v57 = vld [vmem:[#allocation9 + $0x4ac] sm:$0xf]  ;;  %v6882_v47 = vld [vmem:[#allocation9 + $0x4b8] sm:$0xf0] }
 0x1f4   :  { %v6885_v55 = vor.u32 %v8027_v57, %v6882_v47  ;;  %v6962_v46 = vld [vmem:[#allocation9 + $0x558] sm:$0xf0]  ;;  %v8011_v47 = vld [vmem:[#allocation9 + $0x42c] sm:$0xf] }
 0x1f5   :  { %v6562_v45 = vld [vmem:[#allocation9 + $0x238] sm:$0xf0]  ;;  %v6965_v51 = vor.u32 %v8047_v42, %v6962_v46  ;;  %v8007_v9 = vld [vmem:[#allocation9 + $0x40c] sm:$0xf] }
 0x1f6   :  { %3493 = vmatpush.bf16.msra.mxu0 %v6817_v13  ;;  %3506 = vmatpush.bf16.msra.mxu1 %v6945_v7  ;;  %v7013_v13 = vor.u32 %v8059_v34, %v7010_v0  ;;  %v7991_v7 = vld [vmem:[#allocation9 + $0x38c] sm:$0xf]  ;;  %v6690_v57 = vld [vmem:[#allocation9 + $0x338] sm:$0xf0] }
 0x1f7   :  { %3519 = vmatpush.bf16.msra.mxu2 %v6309_v62  ;;  %3532 = vmatpush.bf16.msra.mxu3 %v6437_v5  ;;  %v8055_v62 = vld [vmem:[#allocation9 + $0x58c] sm:$0xf]  ;;  %v6994_v5 = vld [vmem:[#allocation9 + $0x598] sm:$0xf0]  ;;  %v6741_v11 = vor.u32 %v7991_v7, %v6738_v4  ;;  %v6693_v1 = vor.u32 %v7979_v52, %v6690_v57 }
 0x1f8   :  { %v6997_v19 = vor.u32 %v8055_v62, %v6994_v5  ;;  %v6818_v34 = vld [vmem:[#allocation9 + $0x438] sm:$0xf0]  ;;  %v8043_v0 = vld [vmem:[#allocation9 + $0x52c] sm:$0xf] }
 0x1f9   :  { %v7975_v4 = vld [vmem:[#allocation9 + $0x30c] sm:$0xf]  ;;  %v6674_v15 = vld [vmem:[#allocation9 + $0x318] sm:$0xf0] }
 0x1fa   :  { %3494 = vmatpush.bf16.msra.mxu0 %v6801_v25  ;;  %3507 = vmatpush.bf16.msra.mxu1 %v6929_v23  ;;  %v3288_v20 = vpop.f32.mrf.mxu0  ;;  %v6850_v25 = vld [vmem:[#allocation9 + $0x478] sm:$0xf0]  ;;  %v8051_v23 = vld [vmem:[#allocation9 + $0x56c] sm:$0xf] }
 0x1fb   :  { %3520 = vmatpush.bf16.msra.mxu2 %v6293_v32  ;;  %3533 = vmatpush.bf16.msra.mxu3 %v6421_v33  ;;  %v6578_v32 = vld [vmem:[#allocation9 + $0x258] sm:$0xf0]  ;;  %v6853_v33 = vor.u32 %v8019_v22, %v6850_v25 }
 0x1fd   :  { %3495 = vmatmul.bf16.vlgmr.msra.gmra.mxu0 %v9290_v58  ;;  %3508 = vmatmul.bf16.vlgmr.msra.gmra.mxu1 %v9294_v59 }
 0x1fe   :  { %3539 = vmatpush.bf16.msrb.mxu0 %v6661_v36  ;;  %3552 = vmatpush.bf16.msrb.mxu1 %v6789_v39  ;;  %v6981_v36 = vor.u32 %v8051_v23, %v6978_v17  ;;  %v7983_v39 = vld [vmem:[#allocation9 + $0x34c] sm:$0xf] }
 0x1ff   :  { %3565 = vmatpush.bf16.msrb.mxu2 %v6917_v38  ;;  %3578 = vmatpush.bf16.msrb.mxu3 %v7045_v40 }
 0x200   :  { %3521 = vmatmul.bf16.vlgmr.msra.gmra.mxu2 %v9268_v60  ;;  %3534 = vmatmul.bf16.vlgmr.msra.gmra.mxu3 %v9272_v61  ;;  %v3301_v60 = vpop.f32.mrf.mxu1  ;;  %v3289_v61 = vadd.f32 %v3288_v20, %v9264_v24  ;;  %v7951_v24 = vld [vmem:[#allocation9 + $0x24c] sm:$0xf]  ;;  %v6802_v20 = vld [vmem:[#allocation9 + $0x418] sm:$0xf0] }
 0x201   :  { %v6805_v12 = vor.u32 %v8007_v9, %v6802_v20 }
 0x202   :  { %3540 = vmatpush.bf16.msrb.mxu0 %v6645_v43  ;;  %3553 = vmatpush.bf16.msrb.mxu1 %v6773_v44  ;;  %v3302_v14 = vadd.f32 %v3301_v60, %v3289_v61  ;;  %v3290_v27 = vpop.f32.mrf.mxu0  ;;  %v6581_v43 = vor.u32 %v7951_v24, %v6578_v32  ;;  %v6709_v44 = vor.u32 %v7983_v39, %v6706_v37  ;;  %v8039_v60 = vld [vmem:[#allocation9 + $0x50c] sm:$0xf]  ;;  %v6930_v61 = vld [vmem:[#allocation9 + $0x518] sm:$0xf0] }
 0x203   :  { %3566 = vmatpush.bf16.msrb.mxu2 %v6901_v50  ;;  %3579 = vmatpush.bf16.msrb.mxu3 %v7029_v49  ;;  %v3314_v38 = vpop.f32.mrf.mxu2  ;;  %v3327_v40 = vpop.f32.mrf.mxu3  ;;  %v6837_v49 = vor.u32 %v8015_v48, %v6834_v41  ;;  %v6933_v8 = vor.u32 %v8039_v60, %v6930_v61 }
 0x204   :  { %v3315_v26 = vadd.f32 %v3314_v38, %v3302_v14 }
 0x206   :  { %3541 = vmatpush.bf16.msrb.mxu0 %v6629_v31  ;;  %3554 = vmatpush.bf16.msrb.mxu1 %v6757_v53  ;;  %v3328_v50 = vadd.f32 %v3327_v40, %v3315_v26  ;;  %v6946_v31 = vld [vmem:[#allocation9 + $0x538] sm:$0xf0]  ;;  %v6565_v53 = vor.u32 %v7947_v35, %v6562_v45 }
 0x207   :  { %3567 = vmatpush.bf16.msrb.mxu2 %v6885_v55  ;;  %3580 = vmatpush.bf16.msrb.mxu3 %v7013_v13  ;;  %v6546_v55 = vld [vmem:[#allocation9 + $0x218] sm:$0xf0]  ;;  %v6821_v13 = vor.u32 %v8011_v47, %v6818_v34  ;;  %v6949_v7 = vor.u32 %v8043_v0, %v6946_v31 }
 0x208   :  { %v3303_v18 = vpop.f32.mrf.mxu1 }
 0x20a   :  { %3542 = vmatpush.bf16.msrb.mxu0 %v6613_v6  ;;  %3555 = vmatpush.bf16.msrb.mxu1 %v6741_v11  ;;  %v6549_v6 = vor.u32 %v7943_v54, %v6546_v55  ;;  %v6677_v11 = vor.u32 %v7975_v4, %v6674_v15  ;;  %v3591_v54 = vld [vmem:[#allocation10] sm:$0xf] }
 0x20b   :  { %3568 = vmatpush.bf16.msrb.mxu2 %v6869_v16  ;;  %3581 = vmatpush.bf16.msrb.mxu3 %v6997_v19  ;;  %v3316_v62 = vpop.f32.mrf.mxu2  ;;  %v3329_v5 = vpop.f32.mrf.mxu3  ;;  %v3594_v55 = vperm.slane %v3591_v54, 1  ;;  %v3593_v15 = vperm.slane %v3591_v54, 0 }
 0x20c   :  { %v3595_v62 = vperm.slane %v3591_v54, 2 }
 0x20e   :  { %3543 = vmatpush.bf16.msrb.mxu0 %v6597_v28  ;;  %3556 = vmatpush.bf16.msrb.mxu1 %v6725_v29 }
 0x20f   :  { %3569 = vmatpush.bf16.msrb.mxu2 %v6853_v33  ;;  %3582 = vmatpush.bf16.msrb.mxu3 %v6981_v36 }
 0x212   :  { %3544 = vmatpush.bf16.msrb.mxu0 %v6581_v43  ;;  %3557 = vmatpush.bf16.msrb.mxu1 %v6709_v44 }
 0x213   :  { %3570 = vmatpush.bf16.msrb.mxu2 %v6837_v49  ;;  %3583 = vmatpush.bf16.msrb.mxu3 %v6965_v51 }
 0x216   :  { %3545 = vmatpush.bf16.msrb.mxu0 %v6565_v53  ;;  %3558 = vmatpush.bf16.msrb.mxu1 %v6693_v1 }
 0x217   :  { %3571 = vmatpush.bf16.msrb.mxu2 %v6821_v13  ;;  %3584 = vmatpush.bf16.msrb.mxu3 %v6949_v7 }
 0x21a   :  { %3546 = vmatpush.bf16.msrb.mxu0 %v6549_v6  ;;  %3559 = vmatpush.bf16.msrb.mxu1 %v6677_v11  ;;  %v3340_v16 = vpop.f32.mrf.mxu0  ;;  %v3353_v19 = vpop.f32.mrf.mxu1 }
 0x21b   :  { %3572 = vmatpush.bf16.msrb.mxu2 %v6805_v12  ;;  %3585 = vmatpush.bf16.msrb.mxu3 %v6933_v8  ;;  %v3341_v30 = vadd.f32 %v3340_v16, %v3328_v50  ;;  %v3596_v8 = vperm.slane %v3591_v54, 3  ;;  %v8348_v54 = vld [vmem:[#allocation15 + $0x2ac] sm:$0xf0] }
 0x21d   :  { %3547 = vmatmul.bf16.vlgmr.msrb.gmra.mxu0 %v9276_v63  ;;  %3560 = vmatmul.bf16.vlgmr.msrb.gmra.mxu1 %v9280_v2  ;;  %v3354_v21 = vadd.f32 %v3353_v19, %v3341_v30 }
 0x21e   :  { %3573 = vmatmul.bf16.vlgmr.msrb.gmra.mxu2 %v9290_v58  ;;  %3586 = vmatmul.bf16.vlgmr.msrb.gmra.mxu3 %v9294_v59 }
 0x222   :  { %v3342_v23 = vpop.f32.mrf.mxu0  ;;  %v3355_v17 = vpop.f32.mrf.mxu1 }
 0x223   :  { %v3366_v22 = vpop.f32.mrf.mxu2  ;;  %v3379_v14 = vpop.f32.mrf.mxu3 }
 0x224   :  { %v3367_v25 = vadd.f32 %v3366_v22, %v9286_v3 }
 0x226   :  { %v3380_v28 = vadd.f32 %v3379_v14, %v3367_v25 }
 0x22b   :  { %v3368_v29 = vpop.f32.mrf.mxu2  ;;  %v3381_v24 = vpop.f32.mrf.mxu3 }
 0x23a   :  { %v3392_v63 = vpop.f32.mrf.mxu0  ;;  %v3405_v32 = vpop.f32.mrf.mxu1 }
 0x23b   :  { %v3393_v2 = vadd.f32 %v3392_v63, %v3380_v28  ;;  %v8967_v63 = vmov 512.0  }
 0x23c   :  { %8502 = vrcp.f32 %v8967_v63  ;;  %v7480_v63 = vld [vmem:[#allocation15 + $0x360] sm:$0xf] }
 0x23d   :  { %v3406_v33 = vadd.f32 %v3405_v32, %v3393_v2 }
 0x242   :  { %v3394_v39 = vpop.f32.mrf.mxu0  ;;  %v3407_v37 = vpop.f32.mrf.mxu1 }
 0x243   :  { %v3418_v58 = vpop.f32.mrf.mxu2  ;;  %v3431_v36 = vpop.f32.mrf.mxu3  ;;  %v8324_v37 = vld [vmem:[#allocation15 + $0x1ec] sm:$0xf0] }
 0x244   :  { %v3419_v59 = vadd.f32 %v3418_v58, %v3406_v33  ;;  %v9346_v32 = vpop.eup %8502  ;;  %v7160_v58 = vld [vmem:[#allocation15 + $0xe0] sm:$0xf] }
 0x245   :  { %v3617_v2 = vmul.f32 512.0, %v9346_v32  ;;  %vm3621_vm7 = vweird.f32 %v9346_v32 }
 0x246   :  { %v3432_v48 = vadd.f32 %v3431_v36, %v3419_v59  ;;  %v8292_v36 = vld [vmem:[#allocation15 + $0xec] sm:$0xf0]  ;;  %v7288_v59 = vld [vmem:[#allocation15 + $0x1e0] sm:$0xf] }
 0x247   :  { %v3618_v33 = vsub.f32 1.0, %v3617_v2  ;;  %v7161_v39 = vor.u32 %v8292_v36, %v7160_v58  ;;  %v8372_v2 = vld [vmem:[#allocation15 + $0x36c] sm:$0xf0]  ;;  %v7080_v58 = vld [vmem:[#allocation15 + $0x40] sm:$0xf] }
 0x248   :  { %v9330_v20 = vadd.f32 %v3594_v55, %v3432_v48  ;;  %v7416_v48 = vld [vmem:[#allocation15 + $0x2e0] sm:$0xf]  ;;  %v8272_v36 = vld [vmem:[#allocation15 + $0x4c] sm:$0xf0] }
 0x249   :  { %4477 = vmatpush.bf16.msra.mxu0 %v7161_v39  ;;  %v7512_v55 = vld [vmem:[#allocation15 + $0x3a0] sm:$0xf] }
 0x24b   :  { %v3420_v38 = vpop.f32.mrf.mxu2  ;;  %v3433_v40 = vpop.f32.mrf.mxu3 }
 0x24c   :  { %v8356_v38 = vld [vmem:[#allocation15 + $0x2ec] sm:$0xf0]  ;;  %v7289_v40 = vor.u32 %v8324_v37, %v7288_v59 }
 0x24e   :  { %4490 = vmatpush.bf16.msra.mxu1 %v7289_v40  ;;  %v7336_v40 = vld [vmem:[#allocation15 + $0x240] sm:$0xf] }
 0x25a   :  { %v3444_v41 = vpop.f32.mrf.mxu0  ;;  %v3457_v42 = vpop.f32.mrf.mxu1 }
 0x25b   :  { %v3445_v52 = vadd.f32 %v3444_v41, %v9307_v10  ;;  %v9332_v10 = vadd.f32 %v3593_v15, %v3354_v21  ;;  %v7417_v41 = vor.u32 %v8356_v38, %v7416_v48  ;;  %v7208_v48 = vld [vmem:[#allocation15 + $0x140] sm:$0xf]  ;;  %v8304_v38 = vld [vmem:[#allocation15 + $0x14c] sm:$0xf0] }
 0x25d   :  { %v3458_v34 = vadd.f32 %v3457_v42, %v3445_v52  ;;  %v3607_v30 = vsel %vm427_vm0, %v9332_v10, 0.0  ;;  %v7544_v42 = vld [vmem:[#allocation15 + $0x3e0] sm:$0xf]  ;;  %4503 = vmatpush.bf16.msra.mxu2 %v7417_v41  ;;  %v8384_v52 = vld [vmem:[#allocation15 + $0x3cc] sm:$0xf0]  ;;  %v7481_v41 = vor.u32 %v8372_v2, %v7480_v63 }
 0x262   :  { %v3446_v26 = vpop.f32.mrf.mxu0  ;;  %v3459_v27 = vpop.f32.mrf.mxu1 }
 0x263   :  { %v3470_v3 = vpop.f32.mrf.mxu2  ;;  %v3483_v46 = vpop.f32.mrf.mxu3  ;;  %v8288_v27 = vld [vmem:[#allocation15 + $0xcc] sm:$0xf0] }
 0x264   :  { %v3471_v0 = vadd.f32 %v3470_v3, %v3458_v34  ;;  %v8388_v3 = vld [vmem:[#allocation15 + $0x3ec] sm:$0xf0] }
 0x265   :  { %v7545_v26 = vor.u32 %v8388_v3, %v7544_v42  ;;  %v8336_v42 = vld [vmem:[#allocation15 + $0x24c] sm:$0xf0]  ;;  %v7464_v3 = vld [vmem:[#allocation15 + $0x340] sm:$0xf] }
 0x266   :  { %v3484_v31 = vadd.f32 %v3483_v46, %v3471_v0  ;;  %v7144_v46 = vld [vmem:[#allocation15 + $0xc0] sm:$0xf] }
 0x267   :  { %4516 = vmatpush.bf16.msra.mxu3 %v7545_v26  ;;  %v7256_v0 = vld [vmem:[#allocation15 + $0x1a0] sm:$0xf] }
 0x26b   :  { %v3472_v18 = vpop.f32.mrf.mxu2  ;;  %v3485_v43 = vpop.f32.mrf.mxu3 }
 0x26c   :  { %v7272_v18 = vld [vmem:[#allocation15 + $0x1c0] sm:$0xf]  ;;  %v8320_v43 = vld [vmem:[#allocation15 + $0x1cc] sm:$0xf0] }
 0x27a   :  { %v3496_v44 = vpop.f32.mrf.mxu0  ;;  %v3509_v35 = vpop.f32.mrf.mxu1 }
 0x27b   :  { %v3497_v1 = vadd.f32 %v3496_v44, %v3484_v31  ;;  %v7145_v44 = vor.u32 %v8288_v27, %v7144_v46  ;;  %v8316_v31 = vld [vmem:[#allocation15 + $0x1ac] sm:$0xf0] }
 0x27c   :  { %v8368_v46 = vld [vmem:[#allocation15 + $0x34c] sm:$0xf0] }
 0x27d   :  { %v3510_v9 = vadd.f32 %v3509_v35, %v3497_v1  ;;  %v7273_v35 = vor.u32 %v8320_v43, %v7272_v18  ;;  %4478 = vmatpush.bf16.msra.mxu0 %v7145_v44  ;;  %v7081_v18 = vor.u32 %v8272_v36, %v7080_v58  ;;  %v7337_v43 = vor.u32 %v8336_v42, %v7336_v40  ;;  %v7418_v58 = vld [vmem:[#allocation15 + $0x2f0] sm:$0xf0]  ;;  %v8386_v36 = vld [vmem:[#allocation15 + $0x3e4] sm:$0xf] }
 0x27e   :  { %v7465_v44 = vor.u32 %v8368_v46, %v7464_v3  ;;  %v8318_v42 = vld [vmem:[#allocation15 + $0x1c4] sm:$0xf]  ;;  %v7274_v3 = vld [vmem:[#allocation15 + $0x1d0] sm:$0xf0] }
 0x27f   :  { %v9334_v60 = vadd.f32 %v3595_v62, %v3510_v9  ;;  %4491 = vmatpush.bf16.msra.mxu1 %v7273_v35  ;;  %v7112_v9 = vld [vmem:[#allocation15 + $0x80] sm:$0xf]  ;;  %v8280_v62 = vld [vmem:[#allocation15 + $0x8c] sm:$0xf0]  ;;  %v8350_v46 = vld [vmem:[#allocation15 + $0x2c4] sm:$0xf] }
 0x280   :  { %v7064_v35 = vld [vmem:[#allocation15 + $0x20] sm:$0xf] }
 0x281   :  { %v3610_v21 = vsel %vm427_vm0, %v9334_v60, 0.0 }
 0x282   :  { %v3498_v49 = vpop.f32.mrf.mxu0  ;;  %v3511_v51 = vpop.f32.mrf.mxu1 }
 0x283   :  { %v3522_v45 = vpop.f32.mrf.mxu2  ;;  %v3535_v50 = vpop.f32.mrf.mxu3  ;;  %v7528_v49 = vld [vmem:[#allocation15 + $0x3c0] sm:$0xf] }
 0x284   :  { %v3523_v53 = vadd.f32 %v3522_v45, %v9316_v56  ;;  %v3608_v56 = vsel %vm427_vm0, %v9330_v20, 0.0  ;;  %v7400_v45 = vld [vmem:[#allocation15 + $0x2c0] sm:$0xf]  ;;  %v7529_v34 = vor.u32 %v8384_v52, %v7528_v49 }
 0x285   :  { %v3609_v14 = vadd.f32 %v3608_v56, %v3607_v30  ;;  %v8344_v56 = vld [vmem:[#allocation15 + $0x28c] sm:$0xf0] }
 0x286   :  { %v3536_v13 = vadd.f32 %v3535_v50, %v3523_v53  ;;  %v8352_v50 = vld [vmem:[#allocation15 + $0x2cc] sm:$0xf0]  ;;  %v7384_v53 = vld [vmem:[#allocation15 + $0x2a0] sm:$0xf]  ;;  %4517 = vmatpush.bf16.msra.mxu3 %v7529_v34 }
 0x287   :  { %v3611_v23 = vadd.f32 %v3610_v21, %v3609_v14  ;;  %v7401_v51 = vor.u32 %v8352_v50, %v7400_v45  ;;  %v7385_v15 = vor.u32 %v8348_v54, %v7384_v53  ;;  %v7096_v21 = vld [vmem:[#allocation15 + $0x60] sm:$0xf]  ;;  %v8276_v14 = vld [vmem:[#allocation15 + $0x6c] sm:$0xf0] }
 0x288   :  { %v8268_v45 = vld [vmem:[#allocation15 + $0x2c] sm:$0xf0]  ;;  %v7192_v50 = vld [vmem:[#allocation15 + $0x120] sm:$0xf] }
 0x289   :  { %4504 = vmatpush.bf16.msra.mxu2 %v7401_v51  ;;  %v7320_v34 = vld [vmem:[#allocation15 + $0x220] sm:$0xf]  ;;  %v8364_v53 = vld [vmem:[#allocation15 + $0x32c] sm:$0xf0] }
 0x28b   :  { %v3524_v57 = vpop.f32.mrf.mxu2  ;;  %v3537_v47 = vpop.f32.mrf.mxu3 }
 0x28c   :  { %v7128_v57 = vld [vmem:[#allocation15 + $0xa0] sm:$0xf]  ;;  %v8284_v47 = vld [vmem:[#allocation15 + $0xac] sm:$0xf0] }
 0x28d   :  { %v7129_v1 = vor.u32 %v8284_v47, %v7128_v57  ;;  %4505 = vmatpush.bf16.msra.mxu2 %v7385_v15  ;;  %v8300_v47 = vld [vmem:[#allocation15 + $0x12c] sm:$0xf0] }
 0x28f   :  { %4479 = vmatpush.bf16.msra.mxu0 %v7129_v1 }
 0x29a   :  { %v3548_v7 = vpop.f32.mrf.mxu0  ;;  %v3561_v4 = vpop.f32.mrf.mxu1 }
 0x29b   :  { %v3549_v5 = vadd.f32 %v3548_v7, %v3536_v13  ;;  %v8380_v13 = vld [vmem:[#allocation15 + $0x3ac] sm:$0xf0]  ;;  %v3619_v7 = vmul.f32 %v9346_v32, %v3618_v33  ;;  %v7097_v33 = vor.u32 %v8276_v14, %v7096_v21  ;;  %v7432_v21 = vld [vmem:[#allocation15 + $0x300] sm:$0xf] }
 0x29c   :  { %v8360_v14 = vld [vmem:[#allocation15 + $0x30c] sm:$0xf0] }
 0x29d   :  { %v3562_v61 = vadd.f32 %v3561_v4, %v3549_v5  ;;  %v7257_v4 = vor.u32 %v8316_v31, %v7256_v0  ;;  %v7240_v5 = vld [vmem:[#allocation15 + $0x180] sm:$0xf]  ;;  %v8332_v0 = vld [vmem:[#allocation15 + $0x22c] sm:$0xf0] }
 0x29e   :  { %v7448_v31 = vld [vmem:[#allocation15 + $0x320] sm:$0xf]  ;;  %v7321_v54 = vor.u32 %v8332_v0, %v7320_v34  ;;  %v7258_v34 = vld [vmem:[#allocation15 + $0x1b0] sm:$0xf0]  ;;  %v8346_v0 = vld [vmem:[#allocation15 + $0x2a4] sm:$0xf] }
 0x29f   :  { %4492 = vmatpush.bf16.msra.mxu1 %v7257_v4  ;;  %v7449_v4 = vor.u32 %v8364_v53, %v7448_v31  ;;  %v7386_v31 = vld [vmem:[#allocation15 + $0x2b0] sm:$0xf0] }
 0x2a1   :  { %v3574_v6 = vpop.f32.mrf.mxu2  ;;  %v3587_v11 = vpop.f32.mrf.mxu3 }
 0x2a2   :  { %v3575_v12 = vadd.f32 %v3574_v6, %v3562_v61  ;;  %v3550_v16 = vpop.f32.mrf.mxu0  ;;  %v3563_v19 = vpop.f32.mrf.mxu1  ;;  %v7513_v61 = vor.u32 %v8380_v13, %v7512_v55  ;;  %v8312_v6 = vld [vmem:[#allocation15 + $0x18c] sm:$0xf0] }
 0x2a3   :  { %v7113_v16 = vor.u32 %v8280_v62, %v7112_v9  ;;  %v3620_v19 = vadd.f32 %v9346_v32, %v3619_v7  ;;  %v7241_v30 = vor.u32 %v8312_v6, %v7240_v5  ;;  %v7048_v6 = vld [vmem:[#allocation15] sm:$0xf] }
 0x2a4   :  { %v3588_v22 = vadd.f32 %v3587_v11, %v3575_v12  ;;  %v7368_v11 = vld [vmem:[#allocation15 + $0x280] sm:$0xf]  ;;  %4518 = vmatpush.bf16.msra.mxu3 %v7513_v61 }
 0x2a5   :  { %v7496_v12 = vld [vmem:[#allocation15 + $0x380] sm:$0xf]  ;;  %4480 = vmatpush.bf16.msra.mxu0 %v7113_v16  ;;  %v9353_v59 = vsel %vm3621_vm7, %v9346_v32, %v3620_v19  ;;  %4493 = vmatpush.bf16.msra.mxu1 %v7241_v30  ;;  %v7209_v32 = vor.u32 %v8304_v38, %v7208_v48  ;;  %v8328_v19 = vld [vmem:[#allocation15 + $0x20c] sm:$0xf0]  ;;  %v8286_v48 = vld [vmem:[#allocation15 + $0xc4] sm:$0xf] }
 0x2a6   :  { %v9342_v25 = vadd.f32 %v3596_v8, %v3588_v22  ;;  %v8376_v8 = vld [vmem:[#allocation15 + $0x38c] sm:$0xf0]  ;;  %v7369_v22 = vor.u32 %v8344_v56, %v7368_v11  ;;  %v7176_v56 = vld [vmem:[#allocation15 + $0x100] sm:$0xf]  ;;  %v7146_v38 = vld [vmem:[#allocation15 + $0xd0] sm:$0xf0] }
 0x2a7   :  { %v8264_v11 = vld [vmem:[#allocation15 + $0xc] sm:$0xf0]  ;;  %v7304_v16 = vld [vmem:[#allocation15 + $0x200] sm:$0xf] }
 0x2a8   :  { %v3612_v17 = vsel %vm427_vm0, %v9342_v25, 0.0  ;;  %4506 = vmatpush.bf16.msra.mxu2 %v7369_v22  ;;  %v7305_v22 = vor.u32 %v8328_v19, %v7304_v16  ;;  %v7226_v16 = vld [vmem:[#allocation15 + $0x170] sm:$0xf0]  ;;  %v8338_v19 = vld [vmem:[#allocation15 + $0x264] sm:$0xf] }
 0x2a9   :  { %v3576_v28 = vpop.f32.mrf.mxu2  ;;  %v3589_v29 = vpop.f32.mrf.mxu3  ;;  %v3613_v24 = vadd.f32 %v3612_v17, %v3611_v23  ;;  %v7224_v23 = vld [vmem:[#allocation15 + $0x160] sm:$0xf]  ;;  %v7497_v17 = vor.u32 %v8376_v8, %v7496_v12  ;;  %4481 = vmatpush.bf16.msra.mxu0 %v7097_v33  ;;  %v7049_v12 = vor.u32 %v8264_v11, %v7048_v6  ;;  %v8296_v8 = vld [vmem:[#allocation15 + $0x10c] sm:$0xf0]  ;;  %v8354_v33 = vld [vmem:[#allocation15 + $0x2e4] sm:$0xf] }
 0x2aa   :  { %v8308_v28 = vld [vmem:[#allocation15 + $0x16c] sm:$0xf0]  ;;  %v7352_v29 = vld [vmem:[#allocation15 + $0x260] sm:$0xf]  ;;  %v7177_v30 = vor.u32 %v8296_v8, %v7176_v56  ;;  %v8274_v11 = vld [vmem:[#allocation15 + $0x64] sm:$0xf] }
 0x2ab   :  { %3614 = vadd.xlane.f32.xlu1 %v3613_v24  ;;  %v8340_v24 = vld [vmem:[#allocation15 + $0x26c] sm:$0xf0]  ;;  %v7225_v39 = vor.u32 %v8308_v28, %v7224_v23  ;;  %4519 = vmatpush.bf16.msra.mxu3 %v7497_v17  ;;  %v8290_v23 = vld [vmem:[#allocation15 + $0xe4] sm:$0xf]  ;;  %v7433_v17 = vor.u32 %v8360_v14, %v7432_v21  ;;  %v7162_v28 = vld [vmem:[#allocation15 + $0xf0] sm:$0xf0] }
 0x2ac   :  { %v7353_v37 = vor.u32 %v8340_v24, %v7352_v29  ;;  %v8322_v29 = vld [vmem:[#allocation15 + $0x1e4] sm:$0xf]  ;;  %v7290_v24 = vld [vmem:[#allocation15 + $0x1f0] sm:$0xf0]  ;;  %v7165_v63 = vor.u32 %v8290_v23, %v7162_v28 }
 0x2ad   :  { %4494 = vmatpush.bf16.msra.mxu1 %v7225_v39  ;;  %4482 = vmatpush.bf16.msra.mxu0 %v7081_v18  ;;  %v7293_v2 = vor.u32 %v8322_v29, %v7290_v24  ;;  %v7421_v39 = vor.u32 %v8354_v33, %v7418_v58  ;;  %v8382_v18 = vld [vmem:[#allocation15 + $0x3c4] sm:$0xf]  ;;  %v7098_v56 = vld [vmem:[#allocation15 + $0x70] sm:$0xf0] }
 0x2ae   :  { %4507 = vmatpush.bf16.msra.mxu2 %v7353_v37  ;;  %v7546_v37 = vld [vmem:[#allocation15 + $0x3f0] sm:$0xf0]  ;;  %v7101_v8 = vor.u32 %v8274_v11, %v7098_v56  ;;  %v8370_v14 = vld [vmem:[#allocation15 + $0x364] sm:$0xf] }
 0x2af   :  { %4520 = vmatpush.bf16.msra.mxu3 %v7481_v41  ;;  %v7549_v40 = vor.u32 %v8386_v36, %v7546_v37  ;;  %v7149_v41 = vor.u32 %v8286_v48, %v7146_v38  ;;  %v7482_v23 = vld [vmem:[#allocation15 + $0x370] sm:$0xf0]  ;;  %v8270_v28 = vld [vmem:[#allocation15 + $0x44] sm:$0xf] }
 0x2b0   :  { %v7082_v29 = vld [vmem:[#allocation15 + $0x50] sm:$0xf0]  ;;  %v8302_v24 = vld [vmem:[#allocation15 + $0x144] sm:$0xf] }
 0x2b1   :  { %4495 = vmatpush.bf16.msra.mxu1 %v7209_v32  ;;  %v7530_v32 = vld [vmem:[#allocation15 + $0x3d0] sm:$0xf0]  ;;  %v8334_v33 = vld [vmem:[#allocation15 + $0x244] sm:$0xf] }
 0x2b2   :  { %4508 = vmatpush.bf16.msra.mxu2 %v7337_v43  ;;  %v7338_v58 = vld [vmem:[#allocation15 + $0x250] sm:$0xf0]  ;;  %v8366_v37 = vld [vmem:[#allocation15 + $0x344] sm:$0xf] }
 0x2b3   :  { %4521 = vmatpush.bf16.msra.mxu3 %v7465_v44  ;;  %v7533_v44 = vor.u32 %v8382_v18, %v7530_v32  ;;  %v7466_v48 = vld [vmem:[#allocation15 + $0x350] sm:$0xf0]  ;;  %v8362_v32 = vld [vmem:[#allocation15 + $0x324] sm:$0xf] }
 0x2b4   :  { %v7469_v38 = vor.u32 %v8366_v37, %v7466_v48  ;;  %v8293_v48 = vld [vmem:[#allocation15 + $0xf4] sm:$0xf0] }
 0x2b6   :  { %4509 = vmatpush.bf16.msra.mxu2 %v7321_v54  ;;  %v7114_v54 = vld [vmem:[#allocation15 + $0x90] sm:$0xf0] }
 0x2b7   :  { %4522 = vmatpush.bf16.msra.mxu3 %v7449_v4  ;;  %v8342_v4 = vld [vmem:[#allocation15 + $0x284] sm:$0xf] }
 0x2ba   :  { %4510 = vmatpush.bf16.msra.mxu2 %v7305_v22 }
 0x2bb   :  { %4523 = vmatpush.bf16.msra.mxu3 %v7433_v17  ;;  %v7485_v17 = vor.u32 %v8370_v14, %v7482_v23 }
 0x2be   :  { %4555 = vmatpush.bf16.msrb.mxu2 %v7421_v39  ;;  %v7341_v39 = vor.u32 %v8334_v33, %v7338_v58  ;;  %v7168_v33 = vld [vmem:[#allocation15 + $0xe8] sm:$0xf] }
 0x2bf   :  { %4568 = vmatpush.bf16.msrb.mxu3 %v7549_v40  ;;  %v8266_v40 = vld [vmem:[#allocation15 + $0x24] sm:$0xf] }
 0x2c3   :  { %4569 = vmatpush.bf16.msrb.mxu3 %v7533_v44  ;;  %v8262_v44 = vld [vmem:[#allocation15 + $0x4] sm:$0xf] }
 0x31e   :  { %v3615_v26 = vpop.xlane.xlu1 %3614 }
 0x31f   :  { %v3623_v27 = vmul.f32 %v9353_v59, %v3615_v26  ;;  %v7277_v26 = vor.u32 %v8318_v42, %v7274_v3  ;;  %v8298_v42 = vld [vmem:[#allocation15 + $0x124] sm:$0xf]  ;;  %v7194_v3 = vld [vmem:[#allocation15 + $0x130] sm:$0xf0] }
 0x320   :  { %v7197_v18 = vor.u32 %v8298_v42, %v7194_v3  ;;  %v7552_v42 = vld [vmem:[#allocation15 + $0x3e8] sm:$0xf] }
 0x321   :  { %v9357_v49 = vsub.f32 %v9332_v10, %v3623_v27  ;;  %v9360_v51 = vsub.f32 %v9330_v20, %v3623_v27  ;;  %v9363_v52 = vsub.f32 %v9334_v60, %v3623_v27  ;;  %v9366_v57 = vsub.f32 %v9342_v25, %v3623_v27  ;;  %v7402_v27 = vld [vmem:[#allocation15 + $0x2d0] sm:$0xf0] }
 0x322   :  { %v7065_v60 = vor.u32 %v8268_v45, %v7064_v35  ;;  %v7193_v25 = vor.u32 %v8300_v47, %v7192_v50  ;;  %v7405_v43 = vor.u32 %v8350_v46, %v7402_v27  ;;  %v8282_v35 = vld [vmem:[#allocation15 + $0xa4] sm:$0xf]  ;;  %v7130_v45 = vld [vmem:[#allocation15 + $0xb0] sm:$0xf0] }
 0x323   :  { %v3628_v1 = vmul.f32 %v9357_v49, %v9357_v49  ;;  %v3629_v10 = vmul.f32 %v9360_v51, %v9360_v51  ;;  %v3630_v20 = vmul.f32 %v9363_v52, %v9363_v52  ;;  %v3631_v55 = vmul.f32 %v9366_v57, %v9366_v57  ;;  %v8314_v50 = vld [vmem:[#allocation15 + $0x1a4] sm:$0xf] }
 0x324   :  { %4483 = vmatpush.bf16.msra.mxu0 %v7065_v60  ;;  %4496 = vmatpush.bf16.msra.mxu1 %v7193_v25  ;;  %v7133_v47 = vor.u32 %v8282_v35, %v7130_v45  ;;  %v7261_v53 = vor.u32 %v8314_v50, %v7258_v34  ;;  %v8278_v25 = vld [vmem:[#allocation15 + $0x84] sm:$0xf]  ;;  %v7050_v45 = vld [vmem:[#allocation15 + $0x10] sm:$0xf0] }
 0x325   :  { %v3632_v13 = vsel %vm427_vm0, %v3628_v1, 0.0  ;;  %v3633_v7 = vsel %vm427_vm0, %v3629_v10, 0.0  ;;  %v3635_v9 = vsel %vm427_vm0, %v3630_v20, 0.0  ;;  %v3637_v5 = vsel %vm427_vm0, %v3631_v55, 0.0  ;;  %4556 = vmatpush.bf16.msrb.mxu2 %v7405_v43  ;;  %v8378_v10 = vld [vmem:[#allocation15 + $0x3a4] sm:$0xf] }
 0x326   :  { %v3634_v15 = vadd.f32 %v3633_v7, %v3632_v13  ;;  %v7389_v1 = vor.u32 %v8346_v0, %v7386_v31  ;;  %v7514_v20 = vld [vmem:[#allocation15 + $0x3b0] sm:$0xf0]  ;;  %v8310_v55 = vld [vmem:[#allocation15 + $0x184] sm:$0xf]  ;;  %v7117_v13 = vor.u32 %v8278_v25, %v7114_v54 }
 0x327   :  { %v7517_v60 = vor.u32 %v8378_v10, %v7514_v20  ;;  %v7242_v7 = vld [vmem:[#allocation15 + $0x190] sm:$0xf0]  ;;  %v8330_v46 = vld [vmem:[#allocation15 + $0x224] sm:$0xf]  ;;  %v7053_v10 = vor.u32 %v8262_v44, %v7050_v45 }
 0x328   :  { %v3636_v62 = vadd.f32 %v3635_v9, %v3634_v15  ;;  %4484 = vmatpush.bf16.msra.mxu0 %v7049_v12  ;;  %4497 = vmatpush.bf16.msra.mxu1 %v7177_v30  ;;  %v7370_v15 = vld [vmem:[#allocation15 + $0x290] sm:$0xf0]  ;;  %v7245_v9 = vor.u32 %v8310_v55, %v7242_v7  ;;  %v8306_v12 = vld [vmem:[#allocation15 + $0x164] sm:$0xf] }
 0x329   :  { %4557 = vmatpush.bf16.msrb.mxu2 %v7389_v1  ;;  %4570 = vmatpush.bf16.msrb.mxu3 %v7517_v60  ;;  %v7354_v30 = vld [vmem:[#allocation15 + $0x270] sm:$0xf0]  ;;  %v7229_v22 = vor.u32 %v8306_v12, %v7226_v16  ;;  %v8294_v50 = vld [vmem:[#allocation15 + $0x104] sm:$0xf] }
 0x32a   :  { %v3638_v61 = vadd.f32 %v3637_v5, %v3636_v62  ;;  %v7373_v62 = vor.u32 %v8342_v4, %v7370_v15  ;;  %v8374_v5 = vld [vmem:[#allocation15 + $0x384] sm:$0xf]  ;;  %v7357_v21 = vor.u32 %v8338_v19, %v7354_v30  ;;  %v7450_v43 = vld [vmem:[#allocation15 + $0x330] sm:$0xf0] }
 0x32b   :  { %v7453_v34 = vor.u32 %v8362_v32, %v7450_v43  ;;  %v8326_v0 = vld [vmem:[#allocation15 + $0x204] sm:$0xf]  ;;  %v7306_v31 = vld [vmem:[#allocation15 + $0x210] sm:$0xf0] }
 0x32c   :  { %3639 = vadd.xlane.f32.xlu1 %v3638_v61  ;;  %4529 = vmatpush.bf16.msrb.mxu0 %v7165_v63  ;;  %v7498_v61 = vld [vmem:[#allocation15 + $0x390] sm:$0xf0]  ;;  %v7085_v63 = vor.u32 %v8270_v28, %v7082_v29  ;;  %v7309_v25 = vor.u32 %v8326_v0, %v7306_v31 }
 0x32d   :  { %4542 = vmatpush.bf16.msrb.mxu1 %v7293_v2  ;;  %v7501_v6 = vor.u32 %v8374_v5, %v7498_v61  ;;  %4558 = vmatpush.bf16.msrb.mxu2 %v7373_v62  ;;  %v7210_v2 = vld [vmem:[#allocation15 + $0x150] sm:$0xf0]  ;;  %v3605_v62 = vld [vmem:[#allocation12] sm:$0xf]  ;;  %v3606_v61 = vld [vmem:[#allocation13] sm:$0xf] }
 0x32e   :  { %v7213_v36 = vor.u32 %v8302_v24, %v7210_v2  ;;  %v7434_v1 = vld [vmem:[#allocation15 + $0x310] sm:$0xf0]  ;;  %v3659_v56 = vperm.slane %v3605_v62, 1  ;;  %v3660_v12 = vperm.slane %v3605_v62, 2  ;;  %v3671_v16 = vperm.slane %v3606_v61, 0 }
 0x32f   :  { %4571 = vmatpush.bf16.msrb.mxu3 %v7501_v6  ;;  %v3658_v6 = vperm.slane %v3605_v62, 0  ;;  %v3672_v30 = vperm.slane %v3606_v61, 1 }
 0x330   :  { %4530 = vmatpush.bf16.msrb.mxu0 %v7149_v41  ;;  %v7066_v41 = vld [vmem:[#allocation15 + $0x30] sm:$0xf0] }
 0x331   :  { %4543 = vmatpush.bf16.msrb.mxu1 %v7277_v26  ;;  %4559 = vmatpush.bf16.msrb.mxu2 %v7357_v21  ;;  %v7322_v26 = vld [vmem:[#allocation15 + $0x230] sm:$0xf0]  ;;  %v7069_v27 = vor.u32 %v8266_v40, %v7066_v41  ;;  %v3674_v21 = vperm.slane %v3606_v61, 3  ;;  %v8325_v40 = vld [vmem:[#allocation15 + $0x1f4] sm:$0xf0] }
 0x332   :  { %v7325_v35 = vor.u32 %v8330_v46, %v7322_v26  ;;  %v7424_v41 = vld [vmem:[#allocation15 + $0x2e8] sm:$0xf] }
 0x333   :  { %4572 = vmatpush.bf16.msrb.mxu3 %v7485_v17 }
 0x334   :  { %4531 = vmatpush.bf16.msrb.mxu0 %v7133_v47  ;;  %v7178_v47 = vld [vmem:[#allocation15 + $0x110] sm:$0xf0] }
 0x335   :  { %4544 = vmatpush.bf16.msrb.mxu1 %v7261_v53  ;;  %4560 = vmatpush.bf16.msrb.mxu2 %v7341_v39  ;;  %v8358_v53 = vld [vmem:[#allocation15 + $0x304] sm:$0xf]  ;;  %v7181_v20 = vor.u32 %v8294_v50, %v7178_v47  ;;  %v7152_v50 = vld [vmem:[#allocation15 + $0xc8] sm:$0xf]  ;;  %v8289_v47 = vld [vmem:[#allocation15 + $0xd4] sm:$0xf0] }
 0x336   :  { %v7437_v55 = vor.u32 %v8358_v53, %v7434_v1  ;;  %v7280_v1 = vld [vmem:[#allocation15 + $0x1c8] sm:$0xf] }
 0x337   :  { %4573 = vmatpush.bf16.msrb.mxu3 %v7469_v38  ;;  %v7296_v38 = vld [vmem:[#allocation15 + $0x1e8] sm:$0xf] }
 0x338   :  { %4532 = vmatpush.bf16.msrb.mxu0 %v7117_v13  ;;  %v7297_v32 = vor.u32 %v8325_v40, %v7296_v38  ;;  %v8341_v38 = vld [vmem:[#allocation15 + $0x274] sm:$0xf0]  ;;  %v7488_v40 = vld [vmem:[#allocation15 + $0x368] sm:$0xf] }
 0x339   :  { %4545 = vmatpush.bf16.msrb.mxu1 %v7245_v9  ;;  %4561 = vmatpush.bf16.msrb.mxu2 %v7325_v35 }
 0x33b   :  { %4574 = vmatpush.bf16.msrb.mxu3 %v7453_v34 }
 0x33c   :  { %4533 = vmatpush.bf16.msrb.mxu0 %v7101_v8  ;;  %v3661_v8 = vperm.slane %v3605_v62, 3  ;;  %v7264_v62 = vld [vmem:[#allocation15 + $0x1a8] sm:$0xf] }
 0x33d   :  { %4546 = vmatpush.bf16.msrb.mxu1 %v7229_v22  ;;  %4562 = vmatpush.bf16.msrb.mxu2 %v7309_v25  ;;  %v3673_v22 = vperm.slane %v3606_v61, 2  ;;  %v7536_v25 = vld [vmem:[#allocation15 + $0x3c8] sm:$0xf] }
 0x33e   :  { %v7392_v61 = vld [vmem:[#allocation15 + $0x2a8] sm:$0xf] }
 0x33f   :  { %4575 = vmatpush.bf16.msrb.mxu3 %v7437_v55  ;;  %v7153_v55 = vor.u32 %v8289_v47, %v7152_v50  ;;  %v7072_v47 = vld [vmem:[#allocation15 + $0x28] sm:$0xf] }
 0x340   :  { %4534 = vmatpush.bf16.msrb.mxu0 %v7085_v63 }
 0x341   :  { %4547 = vmatpush.bf16.msrb.mxu1 %v7213_v36 }
 0x344   :  { %4535 = vmatpush.bf16.msrb.mxu0 %v7069_v27 }
 0x345   :  { %4548 = vmatpush.bf16.msrb.mxu1 %v7197_v18  ;;  %v7169_v18 = vor.u32 %v8293_v48, %v7168_v33  ;;  %v8277_v33 = vld [vmem:[#allocation15 + $0x74] sm:$0xf0]  ;;  %v7360_v48 = vld [vmem:[#allocation15 + $0x268] sm:$0xf] }
 0x348   :  { %4536 = vmatpush.bf16.msrb.mxu0 %v7053_v10  ;;  %v8321_v10 = vld [vmem:[#allocation15 + $0x1d4] sm:$0xf0] }
 0x349   :  { %4549 = vmatpush.bf16.msrb.mxu1 %v7181_v20  ;;  %v7408_v20 = vld [vmem:[#allocation15 + $0x2c8] sm:$0xf] }
 0x39f   :  { %v3640_v60 = vpop.xlane.xlu1 %3639 }
 0x3a0   :  { %v3641_v54 = vmul.f32 %v3640_v60, %v9353_v59  ;;  %v8353_v60 = vld [vmem:[#allocation15 + $0x2d4] sm:$0xf0] }
 0x3a2   :  { %v3642_v13 = vadd.f32 1e-05, %v3641_v54  ;;  %v8385_v54 = vld [vmem:[#allocation15 + $0x3d4] sm:$0xf0] }
 0x3a4   :  { %8504 = vrsqrt.f32 %v3642_v13  ;;  %vm3649_vm9 = vweird.f32 %v3642_v13 }
 0x3aa   :  { %v8505_v7 = vpop.eup %8504 }
 0x3ab   :  { %v3644_v4 = vmul.f32 %v8505_v7, %v3642_v13  ;;  %vm3650_vm8 = vweird.f32 %v8505_v7  ;;  %v7281_v13 = vor.u32 %v8321_v10, %v7280_v1  ;;  %v7200_v10 = vld [vmem:[#allocation15 + $0x128] sm:$0xf] }
 0x3ac   :  { %vm3651_vm10 = vmor %vm3649_vm9, %vm3650_vm8 }
 0x3ad   :  { %v3645_v15 = vmul.f32 %v8505_v7, %v3644_v4  ;;  %v8285_v4 = vld [vmem:[#allocation15 + $0xb4] sm:$0xf0] }
 0x3af   :  { %v3646_v9 = vmul.f32 0.5, %v3645_v15  ;;  %v7409_v15 = vor.u32 %v8353_v60, %v7408_v20  ;;  %v8301_v20 = vld [vmem:[#allocation15 + $0x134] sm:$0xf0]  ;;  %v7328_v60 = vld [vmem:[#allocation15 + $0x228] sm:$0xf] }
 0x3b1   :  { %v3647_v5 = vsub.f32 1.5, %v3646_v9  ;;  %v7537_v9 = vor.u32 %v8385_v54, %v7536_v25  ;;  %v8333_v25 = vld [vmem:[#allocation15 + $0x234] sm:$0xf0]  ;;  %v7456_v54 = vld [vmem:[#allocation15 + $0x328] sm:$0xf] }
 0x3b3   :  { %v3648_v11 = vmul.f32 %v8505_v7, %v3647_v5  ;;  %v8317_v5 = vld [vmem:[#allocation15 + $0x1b4] sm:$0xf0] }
 0x3b5   :  { %v3652_v19 = vsel %vm3651_vm10, %v8505_v7, %v3648_v11  ;;  %v7136_v7 = vld [vmem:[#allocation15 + $0xa8] sm:$0xf] }
 0x3b6   :  { %v3653_v14 = vmul.f32 %v3652_v19, %v9357_v49  ;;  %v3654_v23 = vmul.f32 %v3652_v19, %v9360_v51  ;;  %v3655_v17 = vmul.f32 %v3652_v19, %v9363_v52  ;;  %v3656_v28 = vmul.f32 %v3652_v19, %v9366_v57  ;;  %v8357_v49 = vld [vmem:[#allocation15 + $0x2f4] sm:$0xf0]  ;;  %v7520_v11 = vld [vmem:[#allocation15 + $0x3a8] sm:$0xf] }
 0x3b7   :  { %v8389_v51 = vld [vmem:[#allocation15 + $0x3f4] sm:$0xf0]  ;;  %v7425_v31 = vor.u32 %v8357_v49, %v7424_v41 }
 0x3b8   :  { %v3666_v29 = vmul.f32 %v3658_v6, %v3653_v14  ;;  %v3667_v24 = vmul.f32 %v3659_v56, %v3654_v23  ;;  %v3668_v63 = vmul.f32 %v3660_v12, %v3655_v17  ;;  %v3669_v2 = vmul.f32 %v3661_v8, %v3656_v28  ;;  %v8349_v6 = vld [vmem:[#allocation15 + $0x2b4] sm:$0xf0]  ;;  %v7376_v23 = vld [vmem:[#allocation15 + $0x288] sm:$0xf] }
 0x3b9   :  { %v7553_v53 = vor.u32 %v8389_v51, %v7552_v42  ;;  %v8381_v56 = vld [vmem:[#allocation15 + $0x3b4] sm:$0xf0]  ;;  %v7137_v12 = vor.u32 %v8285_v4, %v7136_v7  ;;  %v7265_v8 = vor.u32 %v8317_v5, %v7264_v62  ;;  %v7504_v28 = vld [vmem:[#allocation15 + $0x388] sm:$0xf]  ;;  %v7201_v4 = vor.u32 %v8301_v20, %v7200_v10  ;;  %v8311_v20 = vld [vmem:[#allocation15 + $0x18c] sm:$0xf] }
 0x3ba   :  { %v3679_v58 = vadd.f32 %v3671_v16, %v3666_v29  ;;  %v3680_v36 = vadd.f32 %v3672_v30, %v3667_v24  ;;  %v3681_v39 = vadd.f32 %v3673_v22, %v3668_v63  ;;  %v3682_v37 = vadd.f32 %v3674_v21, %v3669_v2  ;;  %v7120_v16 = vld [vmem:[#allocation15 + $0x88] sm:$0xf]  ;;  %v8281_v19 = vld [vmem:[#allocation15 + $0x94] sm:$0xf0] }
 0x3bb   :  { %v7393_v30 = vor.u32 %v8349_v6, %v7392_v61  ;;  %v7521_v22 = vor.u32 %v8381_v56, %v7520_v11  ;;  %v7248_v21 = vld [vmem:[#allocation15 + $0x188] sm:$0xf]  ;;  %v8313_v14 = vld [vmem:[#allocation15 + $0x194] sm:$0xf0]  ;;  %v7121_v24 = vor.u32 %v8281_v19, %v7120_v16  ;;  %v7329_v5 = vor.u32 %v8333_v25, %v7328_v60  ;;  %v7170_v16 = vld [vmem:[#allocation15 + $0xf8] sm:$0xf0] }
 0x3bc   :  { %vm3683_vm11 = vcmp.gt.f32.partialorder %v3679_v58, 0.0  ;;  %v3687_v52 = vmul.f32 0.01, %v3679_v58  ;;  %vm3684_vm12 = vcmp.gt.f32.partialorder %v3680_v36, 0.0  ;;  %v3688_v57 = vmul.f32 0.01, %v3680_v36 }
 0x3bd   :  { %vm3685_vm13 = vcmp.gt.f32.partialorder %v3681_v39, 0.0  ;;  %v3689_v3 = vmul.f32 0.01, %v3681_v39  ;;  %vm3686_vm14 = vcmp.gt.f32.partialorder %v3682_v37, 0.0  ;;  %v3690_v46 = vmul.f32 0.01, %v3682_v37 }
 0x3be   :  { %v3691_v26 = vsel %vm3683_vm11, %v3679_v58, %v3687_v52  ;;  %v3692_v27 = vsel %vm3684_vm12, %v3680_v36, %v3688_v57  ;;  %v8345_v17 = vld [vmem:[#allocation15 + $0x294] sm:$0xf0]  ;;  %v7249_v63 = vor.u32 %v8313_v14, %v7248_v21  ;;  %v7104_v2 = vld [vmem:[#allocation15 + $0x68] sm:$0xf]  ;;  %v7361_v57 = vor.u32 %v8341_v38, %v7360_v48  ;;  %v8323_v19 = vld [vmem:[#allocation15 + $0x1ec] sm:$0xf] }
 0x3bf   :  { %v9385_v43 = vpack.c.bf16 %v3691_v26, %v3691_v26  ;;  %v9387_v44 = vpack.c.bf16 %v3692_v27, %v3692_v27  ;;  %v3693_v35 = vsel %vm3685_vm13, %v3681_v39, %v3689_v3  ;;  %v3694_v45 = vsel %vm3686_vm14, %v3682_v37, %v3690_v46  ;;  %v8377_v29 = vld [vmem:[#allocation15 + $0x394] sm:$0xf0]  ;;  %v7232_v39 = vld [vmem:[#allocation15 + $0x168] sm:$0xf]  ;;  %v7282_v48 = vld [vmem:[#allocation15 + $0x1d8] sm:$0xf0] }
 0x3c0   :  { %v9389_v34 = vpack.c.bf16 %v3693_v35, %v3693_v35  ;;  %v9391_v0 = vpack.c.bf16 %v3694_v45, %v3694_v45  ;;  %v7377_v58 = vor.u32 %v8345_v17, %v7376_v23  ;;  %v7505_v36 = vor.u32 %v8377_v29, %v7504_v28  ;;  %v8309_v37 = vld [vmem:[#allocation15 + $0x174] sm:$0xf0]  ;;  %v7088_v51 = vld [vmem:[#allocation15 + $0x48] sm:$0xf]  ;;  %v7426_v23 = vld [vmem:[#allocation15 + $0x2f8] sm:$0xf0] }
 0x3c1   :  { %4485 = vmatmul.bf16.vlgmr.msra.gmra.mxu0 %v9385_v43  ;;  %4498 = vmatmul.bf16.vlgmr.msra.gmra.mxu1 %v9387_v44  ;;  %v8373_v41 = vld [vmem:[#allocation15 + $0x374] sm:$0xf0]  ;;  %v7105_v49 = vor.u32 %v8277_v33, %v7104_v2  ;;  %v7233_v42 = vor.u32 %v8309_v37, %v7232_v39  ;;  %v7216_v46 = vld [vmem:[#allocation15 + $0x148] sm:$0xf]  ;;  %v8387_v17 = vld [vmem:[#allocation15 + $0x3ec] sm:$0xf] }
 0x3c2   :  { %4511 = vmatmul.bf16.vlgmr.msra.gmra.mxu2 %v9389_v34  ;;  %4524 = vmatmul.bf16.vlgmr.msra.gmra.mxu3 %v9391_v0  ;;  %v8273_v52 = vld [vmem:[#allocation15 + $0x54] sm:$0xf0]  ;;  %v7489_v3 = vor.u32 %v8373_v41, %v7488_v40  ;;  %v7344_v27 = vld [vmem:[#allocation15 + $0x248] sm:$0xf]  ;;  %v7554_v28 = vld [vmem:[#allocation15 + $0x3f8] sm:$0xf0] }
 0x3c3   :  { %4581 = vmatpush.bf16.msra.mxu0 %v7169_v18  ;;  %4594 = vmatpush.bf16.msra.mxu1 %v7297_v32  ;;  %v8305_v26 = vld [vmem:[#allocation15 + $0x154] sm:$0xf0]  ;;  %v7472_v32 = vld [vmem:[#allocation15 + $0x348] sm:$0xf]  ;;  %v7089_v45 = vor.u32 %v8273_v52, %v7088_v51  ;;  %v8287_v33 = vld [vmem:[#allocation15 + $0xcc] sm:$0xf]  ;;  %v7557_v39 = vor.u32 %v8387_v17, %v7554_v28 }
 0x3c4   :  { %4607 = vmatpush.bf16.msra.mxu2 %v7425_v31  ;;  %4620 = vmatpush.bf16.msra.mxu3 %v7553_v53  ;;  %v8337_v18 = vld [vmem:[#allocation15 + $0x254] sm:$0xf0]  ;;  %v7217_v50 = vor.u32 %v8305_v26, %v7216_v46  ;;  %v7312_v6 = vld [vmem:[#allocation15 + $0x208] sm:$0xf]  ;;  %v8319_v37 = vld [vmem:[#allocation15 + $0x1cc] sm:$0xf] }
 0x3c5   :  { %v8369_v35 = vld [vmem:[#allocation15 + $0x354] sm:$0xf0]  ;;  %v7345_v53 = vor.u32 %v8337_v18, %v7344_v27  ;;  %v7440_v56 = vld [vmem:[#allocation15 + $0x308] sm:$0xf]  ;;  %v8351_v38 = vld [vmem:[#allocation15 + $0x2cc] sm:$0xf]  ;;  %v7285_v51 = vor.u32 %v8319_v37, %v7282_v48 }
 0x3c6   :  { %v8269_v31 = vld [vmem:[#allocation15 + $0x34] sm:$0xf0]  ;;  %v7473_v1 = vor.u32 %v8369_v35, %v7472_v32  ;;  %v7410_v40 = vld [vmem:[#allocation15 + $0x2d8] sm:$0xf0]  ;;  %v8383_v41 = vld [vmem:[#allocation15 + $0x3cc] sm:$0xf] }
 0x3c7   :  { %4582 = vmatpush.bf16.msra.mxu0 %v7153_v55  ;;  %4595 = vmatpush.bf16.msra.mxu1 %v7281_v13  ;;  %v8365_v55 = vld [vmem:[#allocation15 + $0x334] sm:$0xf0]  ;;  %v7056_v13 = vld [vmem:[#allocation15 + $0x8] sm:$0xf]  ;;  %v7073_v7 = vor.u32 %v8269_v31, %v7072_v47  ;;  %v8283_v52 = vld [vmem:[#allocation15 + $0xac] sm:$0xf] }
 0x3c8   :  { %4608 = vmatpush.bf16.msra.mxu2 %v7409_v15  ;;  %4621 = vmatpush.bf16.msra.mxu3 %v7537_v9  ;;  %v8265_v15 = vld [vmem:[#allocation15 + $0x14] sm:$0xf0]  ;;  %v7184_v9 = vld [vmem:[#allocation15 + $0x108] sm:$0xf]  ;;  %v7457_v61 = vor.u32 %v8365_v55, %v7456_v54  ;;  %v8315_v26 = vld [vmem:[#allocation15 + $0x1ac] sm:$0xf] }
 0x3c9   :  { %v8297_v62 = vld [vmem:[#allocation15 + $0x114] sm:$0xf0]  ;;  %v7057_v21 = vor.u32 %v8265_v15, %v7056_v13  ;;  %v7266_v27 = vld [vmem:[#allocation15 + $0x1b8] sm:$0xf0]  ;;  %v8347_v18 = vld [vmem:[#allocation15 + $0x2ac] sm:$0xf] }
 0x3ca   :  { %v8329_v11 = vld [vmem:[#allocation15 + $0x214] sm:$0xf0]  ;;  %v7185_v14 = vor.u32 %v8297_v62, %v7184_v9  ;;  %v7394_v32 = vld [vmem:[#allocation15 + $0x2b8] sm:$0xf0]  ;;  %v8379_v35 = vld [vmem:[#allocation15 + $0x3ac] sm:$0xf]  ;;  %v7269_v47 = vor.u32 %v8315_v26, %v7266_v27 }
 0x3cb   :  { %4583 = vmatpush.bf16.msra.mxu0 %v7137_v12  ;;  %4596 = vmatpush.bf16.msra.mxu1 %v7265_v8  ;;  %v8361_v12 = vld [vmem:[#allocation15 + $0x314] sm:$0xf0]  ;;  %v8291_v8 = vld [vmem:[#allocation15 + $0xec] sm:$0xf]  ;;  %v7313_v29 = vor.u32 %v8329_v11, %v7312_v6  ;;  %v7250_v60 = vld [vmem:[#allocation15 + $0x198] sm:$0xf0] }
 0x3cc   :  { %4609 = vmatpush.bf16.msra.mxu2 %v7393_v30  ;;  %4622 = vmatpush.bf16.msra.mxu3 %v7521_v22  ;;  %v7298_v30 = vld [vmem:[#allocation15 + $0x1f8] sm:$0xf0]  ;;  %v8355_v22 = vld [vmem:[#allocation15 + $0x2ec] sm:$0xf] }
 0x3cd   :  { %v7301_v2 = vor.u32 %v8323_v19, %v7298_v30  ;;  %v8279_v31 = vld [vmem:[#allocation15 + $0x8c] sm:$0xf]  ;;  %v7378_v54 = vld [vmem:[#allocation15 + $0x298] sm:$0xf0] }
 0x3ce   :  { %v8343_v25 = vld [vmem:[#allocation15 + $0x28c] sm:$0xf]  ;;  %v7506_v13 = vld [vmem:[#allocation15 + $0x398] sm:$0xf0] }
 0x3cf   :  { %4584 = vmatpush.bf16.msra.mxu0 %v7121_v24  ;;  %4597 = vmatpush.bf16.msra.mxu1 %v7249_v63  ;;  %v7441_v24 = vor.u32 %v8361_v12, %v7440_v56  ;;  %v7173_v63 = vor.u32 %v8291_v8, %v7170_v16  ;;  %v8375_v55 = vld [vmem:[#allocation15 + $0x38c] sm:$0xf]  ;;  %v7106_v9 = vld [vmem:[#allocation15 + $0x78] sm:$0xf0]  ;;  %v7381_v62 = vor.u32 %v8343_v25, %v7378_v54 }
 0x3d0   :  { %4610 = vmatpush.bf16.msra.mxu2 %v7377_v58  ;;  %4623 = vmatpush.bf16.msra.mxu3 %v7505_v36  ;;  %v7154_v58 = vld [vmem:[#allocation15 + $0xd8] sm:$0xf0]  ;;  %v7429_v36 = vor.u32 %v8355_v22, %v7426_v23  ;;  %v8275_v15 = vld [vmem:[#allocation15 + $0x6c] sm:$0xf] }
 0x3d1   :  { %4537 = vmatmul.bf16.vlgmr.msrb.gmra.mxu0 %v9385_v43  ;;  %4550 = vmatmul.bf16.vlgmr.msrb.gmra.mxu1 %v9387_v44  ;;  %v7234_v6 = vld [vmem:[#allocation15 + $0x178] sm:$0xf0]  ;;  %v8339_v11 = vld [vmem:[#allocation15 + $0x26c] sm:$0xf]  ;;  %v7109_v16 = vor.u32 %v8275_v15, %v7106_v9 }
 0x3d2   :  { %4563 = vmatmul.bf16.vlgmr.msrb.gmra.mxu2 %v9389_v34  ;;  %4576 = vmatmul.bf16.vlgmr.msrb.gmra.mxu3 %v9391_v0  ;;  %v7362_v56 = vld [vmem:[#allocation15 + $0x278] sm:$0xf0]  ;;  %v8371_v12 = vld [vmem:[#allocation15 + $0x36c] sm:$0xf] }
 0x3d3   :  { %4585 = vmatpush.bf16.msra.mxu0 %v7105_v49  ;;  %4598 = vmatpush.bf16.msra.mxu1 %v7233_v42  ;;  %v7538_v49 = vld [vmem:[#allocation15 + $0x3d8] sm:$0xf0]  ;;  %v7157_v42 = vor.u32 %v8287_v33, %v7154_v58  ;;  %v8271_v30 = vld [vmem:[#allocation15 + $0x4c] sm:$0xf] }
 0x3d4   :  { %4611 = vmatpush.bf16.msra.mxu2 %v7361_v57  ;;  %4624 = vmatpush.bf16.msra.mxu3 %v7489_v3  ;;  %v7138_v57 = vld [vmem:[#allocation15 + $0xb8] sm:$0xf0]  ;;  %v7413_v3 = vor.u32 %v8351_v38, %v7410_v40  ;;  %v7541_v46 = vor.u32 %v8383_v41, %v7538_v49  ;;  %v8303_v23 = vld [vmem:[#allocation15 + $0x14c] sm:$0xf] }
 0x3d5   :  { %v7490_v8 = vld [vmem:[#allocation15 + $0x378] sm:$0xf0]  ;;  %v8335_v28 = vld [vmem:[#allocation15 + $0x24c] sm:$0xf] }
 0x3d6   :  { %v7090_v22 = vld [vmem:[#allocation15 + $0x58] sm:$0xf0]  ;;  %v8267_v58 = vld [vmem:[#allocation15 + $0x2c] sm:$0xf] }
 0x3d7   :  { %4586 = vmatpush.bf16.msra.mxu0 %v7089_v45  ;;  %4599 = vmatpush.bf16.msra.mxu1 %v7217_v50  ;;  %v7522_v45 = vld [vmem:[#allocation15 + $0x3b8] sm:$0xf0]  ;;  %v7141_v50 = vor.u32 %v8283_v52, %v7138_v57  ;;  %v8299_v48 = vld [vmem:[#allocation15 + $0x12c] sm:$0xf] }
 0x3d8   :  { %4612 = vmatpush.bf16.msra.mxu2 %v7345_v53  ;;  %4625 = vmatpush.bf16.msra.mxu3 %v7473_v1  ;;  %v7122_v53 = vld [vmem:[#allocation15 + $0x98] sm:$0xf0]  ;;  %v7397_v1 = vor.u32 %v8347_v18, %v7394_v32  ;;  %v7525_v10 = vor.u32 %v8379_v35, %v7522_v45  ;;  %v8331_v40 = vld [vmem:[#allocation15 + $0x22c] sm:$0xf] }
 0x3d9   :  { %v7218_v17 = vld [vmem:[#allocation15 + $0x158] sm:$0xf0]  ;;  %v8363_v49 = vld [vmem:[#allocation15 + $0x32c] sm:$0xf] }
 0x3da   :  { %v7221_v33 = vor.u32 %v8303_v23, %v7218_v17  ;;  %v7202_v38 = vld [vmem:[#allocation15 + $0x138] sm:$0xf0]  ;;  %v8263_v57 = vld [vmem:[#allocation15 + $0xc] sm:$0xf] }
 0x3db   :  { %4587 = vmatpush.bf16.msra.mxu0 %v7073_v7  ;;  %4600 = vmatpush.bf16.msra.mxu1 %v7201_v4  ;;  %v7125_v7 = vor.u32 %v8279_v31, %v7122_v53  ;;  %v7253_v4 = vor.u32 %v8311_v20, %v7250_v60  ;;  %v7330_v41 = vld [vmem:[#allocation15 + $0x238] sm:$0xf0]  ;;  %v7205_v52 = vor.u32 %v8299_v48, %v7202_v38  ;;  %v8295_v27 = vld [vmem:[#allocation15 + $0x10c] sm:$0xf] }
 0x3dc   :  { %4613 = vmatpush.bf16.msra.mxu2 %v7329_v5  ;;  %4626 = vmatpush.bf16.msra.mxu3 %v7457_v61  ;;  %v7509_v5 = vor.u32 %v8375_v55, %v7506_v13  ;;  %v8307_v61 = vld [vmem:[#allocation15 + $0x16c] sm:$0xf]  ;;  %v7186_v18 = vld [vmem:[#allocation15 + $0x118] sm:$0xf0] }
 0x3dd   :  { %v7237_v19 = vor.u32 %v8307_v61, %v7234_v6  ;;  %v8327_v32 = vld [vmem:[#allocation15 + $0x20c] sm:$0xf]  ;;  %v7314_v35 = vld [vmem:[#allocation15 + $0x218] sm:$0xf0]  ;;  %v7189_v31 = vor.u32 %v8295_v27, %v7186_v18 }
 0x3de   :  { %v8359_v45 = vld [vmem:[#allocation15 + $0x30c] sm:$0xf]  ;;  %v7317_v53 = vor.u32 %v8327_v32, %v7314_v35 }
 0x3df   :  { %4588 = vmatpush.bf16.msra.mxu0 %v7057_v21  ;;  %4601 = vmatpush.bf16.msra.mxu1 %v7185_v14  ;;  %v7365_v21 = vor.u32 %v8339_v11, %v7362_v56  ;;  %v7493_v14 = vor.u32 %v8371_v12, %v7490_v8 }
 0x3e0   :  { %4614 = vmatpush.bf16.msra.mxu2 %v7313_v29  ;;  %4627 = vmatpush.bf16.msra.mxu3 %v7441_v24  ;;  %v7346_v29 = vld [vmem:[#allocation15 + $0x258] sm:$0xf0]  ;;  %v8367_v24 = vld [vmem:[#allocation15 + $0x34c] sm:$0xf] }
 0x3e2   :  { %4589 = vmatmul.bf16.vlgmr.msra.gmra.mxu0 %v9385_v43  ;;  %4602 = vmatmul.bf16.vlgmr.msra.gmra.mxu1 %v9387_v44 }
 0x3e3   :  { %4633 = vmatpush.bf16.msrb.mxu0 %v7173_v63  ;;  %4646 = vmatpush.bf16.msrb.mxu1 %v7301_v2  ;;  %v7474_v63 = vld [vmem:[#allocation15 + $0x358] sm:$0xf0]  ;;  %v7093_v2 = vor.u32 %v8271_v30, %v7090_v22 }
 0x3e4   :  { %4659 = vmatpush.bf16.msrb.mxu2 %v7429_v36  ;;  %4672 = vmatpush.bf16.msrb.mxu3 %v7557_v39  ;;  %v7074_v36 = vld [vmem:[#allocation15 + $0x38] sm:$0xf0]  ;;  %v7349_v39 = vor.u32 %v8335_v28, %v7346_v29  ;;  %v7477_v37 = vor.u32 %v8367_v24, %v7474_v63 }
 0x3e5   :  { %4615 = vmatmul.bf16.vlgmr.msra.gmra.mxu2 %v9389_v34  ;;  %4628 = vmatmul.bf16.vlgmr.msra.gmra.mxu3 %v9391_v0 }
 0x3e7   :  { %4634 = vmatpush.bf16.msrb.mxu0 %v7157_v42  ;;  %4647 = vmatpush.bf16.msrb.mxu1 %v7285_v51  ;;  %v7458_v42 = vld [vmem:[#allocation15 + $0x338] sm:$0xf0]  ;;  %v7077_v51 = vor.u32 %v8267_v58, %v7074_v36 }
 0x3e8   :  { %4660 = vmatpush.bf16.msrb.mxu2 %v7413_v3  ;;  %4673 = vmatpush.bf16.msrb.mxu3 %v7541_v46  ;;  %v7058_v3 = vld [vmem:[#allocation15 + $0x18] sm:$0xf0]  ;;  %v7333_v46 = vor.u32 %v8331_v40, %v7330_v41  ;;  %v7461_v26 = vor.u32 %v8363_v49, %v7458_v42 }
 0x3eb   :  { %4635 = vmatpush.bf16.msrb.mxu0 %v7141_v50  ;;  %4648 = vmatpush.bf16.msrb.mxu1 %v7269_v47  ;;  %v7442_v50 = vld [vmem:[#allocation15 + $0x318] sm:$0xf0]  ;;  %v7061_v47 = vor.u32 %v8263_v57, %v7058_v3 }
 0x3ec   :  { %4661 = vmatpush.bf16.msrb.mxu2 %v7397_v1  ;;  %4674 = vmatpush.bf16.msrb.mxu3 %v7525_v10  ;;  %v7445_v1 = vor.u32 %v8359_v45, %v7442_v50 }
 0x3ef   :  { %4636 = vmatpush.bf16.msrb.mxu0 %v7125_v7  ;;  %4649 = vmatpush.bf16.msrb.mxu1 %v7253_v4 }
 0x3f0   :  { %4662 = vmatpush.bf16.msrb.mxu2 %v7381_v62  ;;  %4675 = vmatpush.bf16.msrb.mxu3 %v7509_v5 }
 0x3f3   :  { %4637 = vmatpush.bf16.msrb.mxu0 %v7109_v16  ;;  %4650 = vmatpush.bf16.msrb.mxu1 %v7237_v19  ;;  %v3827_v19 = vld [vmem:[#allocation16] sm:$0xf] }
 0x3f4   :  { %4663 = vmatpush.bf16.msrb.mxu2 %v7365_v21  ;;  %4676 = vmatpush.bf16.msrb.mxu3 %v7493_v14  ;;  %v3830_v30 = vperm.slane %v3827_v19, 1  ;;  %v3829_v22 = vperm.slane %v3827_v19, 0  ;;  %v3831_v21 = vperm.slane %v3827_v19, 2 }
 0x3f7   :  { %4638 = vmatpush.bf16.msrb.mxu0 %v7093_v2  ;;  %4651 = vmatpush.bf16.msrb.mxu1 %v7221_v33  ;;  %v3832_v2 = vperm.slane %v3827_v19, 3  ;;  %v8417_v19 = vld [vmem:[#allocation21 + $0xd4] sm:$0xf0] }
 0x3f8   :  { %4664 = vmatpush.bf16.msrb.mxu2 %v7349_v39  ;;  %4677 = vmatpush.bf16.msrb.mxu3 %v7477_v37 }
 0x3fb   :  { %4639 = vmatpush.bf16.msrb.mxu0 %v7077_v51  ;;  %4652 = vmatpush.bf16.msrb.mxu1 %v7205_v52 }
 0x3fc   :  { %4665 = vmatpush.bf16.msrb.mxu2 %v7333_v46  ;;  %4678 = vmatpush.bf16.msrb.mxu3 %v7461_v26 }
 0x3ff   :  { %4640 = vmatpush.bf16.msrb.mxu0 %v7061_v47  ;;  %4653 = vmatpush.bf16.msrb.mxu1 %v7189_v31  ;;  %v7616_v31 = vld [vmem:[#allocation21 + $0x70] sm:$0xf] }
 0x400   :  { %4666 = vmatpush.bf16.msrb.mxu2 %v7317_v53  ;;  %4679 = vmatpush.bf16.msrb.mxu3 %v7445_v1  ;;  %v8405_v53 = vld [vmem:[#allocation21 + $0x74] sm:$0xf0]  ;;  %v7680_v1 = vld [vmem:[#allocation21 + $0xf0] sm:$0xf] }
 0x402   :  { %4641 = vmatmul.bf16.vlgmr.msrb.gmra.mxu0 %v9385_v43  ;;  %4654 = vmatmul.bf16.vlgmr.msrb.gmra.mxu1 %v9387_v44 }
 0x403   :  { %4667 = vmatmul.bf16.vlgmr.msrb.gmra.mxu2 %v9389_v34  ;;  %4680 = vmatmul.bf16.vlgmr.msrb.gmra.mxu3 %v9391_v0 }
 0x43e   :  { %v4486_v10 = vpop.f32.mrf.mxu0  ;;  %v4499_v20 = vpop.f32.mrf.mxu1 }
 0x43f   :  { %v4487_v23 = vadd.f32 %v4486_v10, %v3829_v22  ;;  %v7617_v10 = vor.u32 %v8405_v53, %v7616_v31  ;;  %v8447_v31 = vld [vmem:[#allocation21 + $0x1c4] sm:$0xf0] }
 0x441   :  { %v4500_v29 = vadd.f32 %v4499_v20, %v4487_v23  ;;  %v8421_v20 = vld [vmem:[#allocation21 + $0xf4] sm:$0xf0]  ;;  %5162 = vmatpush.bf16.msra.mxu0 %v7617_v10 }
 0x442   :  { %v8449_v23 = vld [vmem:[#allocation21 + $0x1d4] sm:$0xf0] }
 0x443   :  { %v8397_v10 = vld [vmem:[#allocation21 + $0x34] sm:$0xf0] }
 0x445   :  { %v4512_v60 = vpop.f32.mrf.mxu2  ;;  %v4525_v25 = vpop.f32.mrf.mxu3 }
 0x446   :  { %v4488_v54 = vpop.f32.mrf.mxu0  ;;  %v4501_v55 = vpop.f32.mrf.mxu1  ;;  %v4513_v33 = vadd.f32 %v4512_v60, %v4500_v29  ;;  %v7744_v60 = vld [vmem:[#allocation21 + $0x170] sm:$0xf] }
 0x447   :  { %v7681_v54 = vor.u32 %v8421_v20, %v7680_v1  ;;  %v7584_v1 = vld [vmem:[#allocation21 + $0x30] sm:$0xf] }
 0x448   :  { %v9411_v38 = vadd.f32 %v4525_v25, %v4513_v33  ;;  %v8437_v25 = vld [vmem:[#allocation21 + $0x174] sm:$0xf0]  ;;  %v7648_v20 = vld [vmem:[#allocation21 + $0xb0] sm:$0xf] }
 0x449   :  { %v7745_v55 = vor.u32 %v8437_v25, %v7744_v60  ;;  %5175 = vmatpush.bf16.msra.mxu1 %v7681_v54  ;;  %v7585_v60 = vor.u32 %v8397_v10, %v7584_v1  ;;  %v8413_v25 = vld [vmem:[#allocation21 + $0xb4] sm:$0xf0]  ;;  %v7712_v54 = vld [vmem:[#allocation21 + $0x130] sm:$0xf]  ;;  %v8402_v1 = vld [vmem:[#allocation21 + $0x64] sm:$0xf] }
 0x44a   :  { %v4687_v52 = vsel %vm427_vm0, %v9411_v38, 0.0  ;;  %v7610_v10 = vld [vmem:[#allocation21 + $0x68] sm:$0xf0] }
 0x44b   :  { %5188 = vmatpush.bf16.msra.mxu2 %v7745_v55  ;;  %v8429_v55 = vld [vmem:[#allocation21 + $0x134] sm:$0xf0] }
 0x44d   :  { %v4514_v13 = vpop.f32.mrf.mxu2  ;;  %v4527_v7 = vpop.f32.mrf.mxu3 }
 0x44e   :  { %v4538_v4 = vpop.f32.mrf.mxu0  ;;  %v4551_v15 = vpop.f32.mrf.mxu1  ;;  %v7808_v13 = vld [vmem:[#allocation21 + $0x1f0] sm:$0xf]  ;;  %v8453_v7 = vld [vmem:[#allocation21 + $0x1f4] sm:$0xf0] }
 0x44f   :  { %v4539_v14 = vadd.f32 %v4538_v4, %v3830_v30  ;;  %v7608_v4 = vld [vmem:[#allocation21 + $0x60] sm:$0xf]  ;;  %v7728_v30 = vld [vmem:[#allocation21 + $0x150] sm:$0xf] }
 0x451   :  { %v4552_v28 = vadd.f32 %v4551_v15, %v4539_v14  ;;  %v7809_v15 = vor.u32 %v8453_v7, %v7808_v13  ;;  %v7792_v14 = vld [vmem:[#allocation21 + $0x1d0] sm:$0xf]  ;;  %v7649_v13 = vor.u32 %v8413_v25, %v7648_v20  ;;  %v7713_v7 = vor.u32 %v8429_v55, %v7712_v54  ;;  %v8418_v25 = vld [vmem:[#allocation21 + $0xe4] sm:$0xf]  ;;  %v7674_v54 = vld [vmem:[#allocation21 + $0xe8] sm:$0xf0] }
 0x452   :  { %v7793_v29 = vor.u32 %v8449_v23, %v7792_v14  ;;  %v7696_v14 = vld [vmem:[#allocation21 + $0x110] sm:$0xf]  ;;  %v8425_v23 = vld [vmem:[#allocation21 + $0x114] sm:$0xf0]  ;;  %v8434_v55 = vld [vmem:[#allocation21 + $0x164] sm:$0xf] }
 0x453   :  { %5201 = vmatpush.bf16.msra.mxu3 %v7809_v15  ;;  %v8445_v15 = vld [vmem:[#allocation21 + $0x1b4] sm:$0xf0] }
 0x455   :  { %v4564_v9 = vpop.f32.mrf.mxu2  ;;  %v4577_v62 = vpop.f32.mrf.mxu3 }
 0x456   :  { %v4540_v5 = vpop.f32.mrf.mxu0  ;;  %v4553_v43 = vpop.f32.mrf.mxu1  ;;  %v4565_v24 = vadd.f32 %v4564_v9, %v4552_v28  ;;  %v8403_v9 = vld [vmem:[#allocation21 + $0x64] sm:$0xf0] }
 0x457   :  { %v8419_v5 = vld [vmem:[#allocation21 + $0xe4] sm:$0xf0]  ;;  %v7609_v43 = vor.u32 %v8403_v9, %v7608_v4  ;;  %v7776_v4 = vld [vmem:[#allocation21 + $0x1b0] sm:$0xf] }
 0x458   :  { %v9409_v37 = vadd.f32 %v4577_v62, %v4565_v24  ;;  %v7672_v62 = vld [vmem:[#allocation21 + $0xe0] sm:$0xf]  ;;  %v7777_v9 = vor.u32 %v8445_v15, %v7776_v4  ;;  %v8450_v4 = vld [vmem:[#allocation21 + $0x1e4] sm:$0xf]  ;;  %v7802_v15 = vld [vmem:[#allocation21 + $0x1e8] sm:$0xf0] }
 0x459   :  { %5163 = vmatpush.bf16.msra.mxu0 %v7609_v43  ;;  %v7640_v43 = vld [vmem:[#allocation21 + $0xa0] sm:$0xf] }
 0x45a   :  { %v4688_v41 = vsel %vm427_vm0, %v9409_v37, 0.0 }
 0x45b   :  { %v4689_v27 = vadd.f32 %v4688_v41, %v4687_v52 }
 0x45d   :  { %v4566_v61 = vpop.f32.mrf.mxu2  ;;  %v4579_v44 = vpop.f32.mrf.mxu3 }
 0x45e   :  { %v7673_v61 = vor.u32 %v8419_v5, %v7672_v62  ;;  %v7736_v44 = vld [vmem:[#allocation21 + $0x160] sm:$0xf]  ;;  %v8395_v5 = vld [vmem:[#allocation21 + $0x24] sm:$0xf0] }
 0x45f   :  { %v4590_v6 = vpop.f32.mrf.mxu0  ;;  %v4603_v34 = vpop.f32.mrf.mxu1  ;;  %v7576_v62 = vld [vmem:[#allocation21 + $0x20] sm:$0xf] }
 0x460   :  { %v4591_v17 = vadd.f32 %v4590_v6, %v3831_v21  ;;  %v8435_v6 = vld [vmem:[#allocation21 + $0x164] sm:$0xf0]  ;;  %v8433_v21 = vld [vmem:[#allocation21 + $0x154] sm:$0xf0]  ;;  %5176 = vmatpush.bf16.msra.mxu1 %v7673_v61  ;;  %v7577_v61 = vor.u32 %v8395_v5, %v7576_v62  ;;  %v7805_v62 = vor.u32 %v8450_v4, %v7802_v15  ;;  %v8400_v5 = vld [vmem:[#allocation21 + $0x54] sm:$0xf] }
 0x461   :  { %v7729_v28 = vor.u32 %v8433_v21, %v7728_v30  ;;  %v7632_v30 = vld [vmem:[#allocation21 + $0x90] sm:$0xf]  ;;  %v8409_v21 = vld [vmem:[#allocation21 + $0x94] sm:$0xf0]  ;;  %v7698_v4 = vld [vmem:[#allocation21 + $0x118] sm:$0xf0] }
 0x462   :  { %v4604_v63 = vadd.f32 %v4603_v34, %v4591_v17  ;;  %v7800_v34 = vld [vmem:[#allocation21 + $0x1e0] sm:$0xf]  ;;  %v8440_v15 = vld [vmem:[#allocation21 + $0x194] sm:$0xf] }
 0x467   :  { %v4592_v56 = vpop.f32.mrf.mxu0  ;;  %v4605_v12 = vpop.f32.mrf.mxu1 }
 0x468   :  { %v4616_v11 = vpop.f32.mrf.mxu2  ;;  %v4629_v0 = vpop.f32.mrf.mxu3  ;;  %v7600_v56 = vld [vmem:[#allocation21 + $0x50] sm:$0xf]  ;;  %v8401_v12 = vld [vmem:[#allocation21 + $0x54] sm:$0xf0] }
 0x469   :  { %v4617_v58 = vadd.f32 %v4616_v11, %v4604_v63  ;;  %v7737_v11 = vor.u32 %v8435_v6, %v7736_v44  ;;  %v7601_v22 = vor.u32 %v8401_v12, %v7600_v56  ;;  %v8411_v44 = vld [vmem:[#allocation21 + $0xa4] sm:$0xf0]  ;;  %v7704_v6 = vld [vmem:[#allocation21 + $0x120] sm:$0xf] }
 0x46a   :  { %v7768_v56 = vld [vmem:[#allocation21 + $0x1a0] sm:$0xf]  ;;  %v8443_v12 = vld [vmem:[#allocation21 + $0x1a4] sm:$0xf0] }
 0x46b   :  { %v9413_v40 = vadd.f32 %v4629_v0, %v4617_v58  ;;  %v8451_v0 = vld [vmem:[#allocation21 + $0x1e4] sm:$0xf0]  ;;  %5189 = vmatpush.bf16.msra.mxu2 %v7737_v11  ;;  %5164 = vmatpush.bf16.msra.mxu0 %v7601_v22  ;;  %v7641_v11 = vor.u32 %v8411_v44, %v7640_v43  ;;  %v7602_v43 = vld [vmem:[#allocation21 + $0x58] sm:$0xf0] }
 0x46c   :  { %v7605_v44 = vor.u32 %v8400_v5, %v7602_v43  ;;  %v7762_v5 = vld [vmem:[#allocation21 + $0x198] sm:$0xf0]  ;;  %v8390_v43 = vld [vmem:[#allocation21 + $0x4] sm:$0xf] }
 0x46d   :  { %v4690_v57 = vsel %vm427_vm0, %v9413_v40, 0.0 }
 0x46e   :  { %v4691_v32 = vadd.f32 %v4690_v57, %v4689_v27 }
 0x46f   :  { %5190 = vmatpush.bf16.msra.mxu2 %v7729_v28  ;;  %v7697_v28 = vor.u32 %v8425_v23, %v7696_v14  ;;  %v8430_v14 = vld [vmem:[#allocation21 + $0x144] sm:$0xf]  ;;  %v7722_v23 = vld [vmem:[#allocation21 + $0x148] sm:$0xf0] }
 0x470   :  { %v4618_v8 = vpop.f32.mrf.mxu2  ;;  %v4631_v16 = vpop.f32.mrf.mxu3 }
 0x471   :  { %v7801_v8 = vor.u32 %v8451_v0, %v7800_v34  ;;  %v7664_v16 = vld [vmem:[#allocation21 + $0xd0] sm:$0xf]  ;;  %v8427_v34 = vld [vmem:[#allocation21 + $0x124] sm:$0xf0] }
 0x472   :  { %v7665_v17 = vor.u32 %v8417_v19, %v7664_v16  ;;  %v7705_v0 = vor.u32 %v8427_v34, %v7704_v6  ;;  %v7568_v16 = vld [vmem:[#allocation21 + $0x10] sm:$0xf]  ;;  %v8393_v19 = vld [vmem:[#allocation21 + $0x14] sm:$0xf0]  ;;  %v7666_v6 = vld [vmem:[#allocation21 + $0xd8] sm:$0xf0] }
 0x473   :  { %5202 = vmatpush.bf16.msra.mxu3 %v7801_v8  ;;  %v7769_v8 = vor.u32 %v8443_v12, %v7768_v56  ;;  %v7569_v22 = vor.u32 %v8393_v19, %v7568_v16  ;;  %v8432_v34 = vld [vmem:[#allocation21 + $0x154] sm:$0xf]  ;;  %v8398_v16 = vld [vmem:[#allocation21 + $0x44] sm:$0xf] }
 0x474   :  { %5177 = vmatpush.bf16.msra.mxu1 %v7665_v17  ;;  %v7633_v17 = vor.u32 %v8409_v21, %v7632_v30  ;;  %v8448_v12 = vld [vmem:[#allocation21 + $0x1d4] sm:$0xf]  ;;  %v7594_v30 = vld [vmem:[#allocation21 + $0x48] sm:$0xf0] }
 0x475   :  { %v7658_v21 = vld [vmem:[#allocation21 + $0xc8] sm:$0xf0] }
 0x477   :  { %5203 = vmatpush.bf16.msra.mxu3 %v7793_v29  ;;  %v7760_v29 = vld [vmem:[#allocation21 + $0x190] sm:$0xf] }
 0x47f   :  { %v4642_v36 = vpop.f32.mrf.mxu0  ;;  %v4655_v39 = vpop.f32.mrf.mxu1 }
 0x480   :  { %v4643_v48 = vadd.f32 %v4642_v36, %v3832_v2 }
 0x482   :  { %v4656_v49 = vadd.f32 %v4655_v39, %v4643_v48 }
 0x486   :  { %v4668_v42 = vpop.f32.mrf.mxu2  ;;  %v4681_v51 = vpop.f32.mrf.mxu3 }
 0x487   :  { %v4669_v3 = vadd.f32 %v4668_v42, %v4656_v49  ;;  %v4644_v46 = vpop.f32.mrf.mxu0  ;;  %v4657_v26 = vpop.f32.mrf.mxu1 }
 0x488   :  { %v8399_v46 = vld [vmem:[#allocation21 + $0x44] sm:$0xf0]  ;;  %v7656_v26 = vld [vmem:[#allocation21 + $0xc0] sm:$0xf] }
 0x489   :  { %v4682_v18 = vadd.f32 %v4681_v51, %v4669_v3  ;;  %v7592_v3 = vld [vmem:[#allocation21 + $0x40] sm:$0xf] }
 0x48a   :  { %v7593_v27 = vor.u32 %v8399_v46, %v7592_v3  ;;  %v8404_v3 = vld [vmem:[#allocation21 + $0x74] sm:$0xf] }
 0x48b   :  { %v4692_v35 = vsel %vm427_vm0, %v4682_v18, 0.0 }
 0x48c   :  { %v4693_v45 = vadd.f32 %v4692_v35, %v4691_v32  ;;  %v7720_v32 = vld [vmem:[#allocation21 + $0x140] sm:$0xf]  ;;  %v8431_v35 = vld [vmem:[#allocation21 + $0x144] sm:$0xf0]  ;;  %5165 = vmatpush.bf16.msra.mxu0 %v7593_v27  ;;  %v8420_v27 = vld [vmem:[#allocation21 + $0xf4] sm:$0xf] }
 0x48e   :  { %v4670_v50 = vpop.f32.mrf.mxu2  ;;  %v4683_v47 = vpop.f32.mrf.mxu3  ;;  %4694 = vadd.xlane.f32.xlu2 %v4693_v45 }
 0x48f   :  { %v7721_v50 = vor.u32 %v8431_v35, %v7720_v32  ;;  %v7784_v47 = vld [vmem:[#allocation21 + $0x1c0] sm:$0xf] }
 0x490   :  { %v7785_v53 = vor.u32 %v8447_v31, %v7784_v47  ;;  %5166 = vmatpush.bf16.msra.mxu0 %v7585_v60  ;;  %v8452_v47 = vld [vmem:[#allocation21 + $0x1f4] sm:$0xf]  ;;  %v7613_v60 = vor.u32 %v8402_v1, %v7610_v10  ;;  %v8442_v10 = vld [vmem:[#allocation21 + $0x1a4] sm:$0xf] }
 0x491   :  { %5191 = vmatpush.bf16.msra.mxu2 %v7721_v50  ;;  %v7746_v50 = vld [vmem:[#allocation21 + $0x178] sm:$0xf0] }
 0x492   :  { %5204 = vmatpush.bf16.msra.mxu3 %v7785_v53  ;;  %v7810_v53 = vld [vmem:[#allocation21 + $0x1f8] sm:$0xf0] }
 0x493   :  { %v7813_v20 = vor.u32 %v8452_v47, %v7810_v53  ;;  %v8426_v47 = vld [vmem:[#allocation21 + $0x124] sm:$0xf] }
 0x494   :  { %5167 = vmatpush.bf16.msra.mxu0 %v7577_v61  ;;  %v8416_v61 = vld [vmem:[#allocation21 + $0xd4] sm:$0xf] }
 0x495   :  { %5192 = vmatpush.bf16.msra.mxu2 %v7713_v7  ;;  %v7738_v7 = vld [vmem:[#allocation21 + $0x168] sm:$0xf0] }
 0x496   :  { %5205 = vmatpush.bf16.msra.mxu3 %v7777_v9  ;;  %v7741_v9 = vor.u32 %v8434_v55, %v7738_v7  ;;  %v8408_v55 = vld [vmem:[#allocation21 + $0x94] sm:$0xf] }
 0x497   :  { %v8424_v7 = vld [vmem:[#allocation21 + $0x114] sm:$0xf] }
 0x498   :  { %5168 = vmatpush.bf16.msra.mxu0 %v7569_v22  ;;  %v8414_v22 = vld [vmem:[#allocation21 + $0xc4] sm:$0xf] }
 0x499   :  { %5193 = vmatpush.bf16.msra.mxu2 %v7705_v0  ;;  %v7669_v0 = vor.u32 %v8416_v61, %v7666_v6  ;;  %v7701_v61 = vor.u32 %v8424_v7, %v7698_v4  ;;  %v8406_v6 = vld [vmem:[#allocation21 + $0x84] sm:$0xf] }
 0x49a   :  { %5206 = vmatpush.bf16.msra.mxu3 %v7769_v8  ;;  %v7794_v8 = vld [vmem:[#allocation21 + $0x1d8] sm:$0xf0] }
 0x49b   :  { %v7797_v19 = vor.u32 %v8448_v12, %v7794_v8  ;;  %v7690_v12 = vld [vmem:[#allocation21 + $0x108] sm:$0xf0] }
 0x49d   :  { %5194 = vmatpush.bf16.msra.mxu2 %v7697_v28  ;;  %v7597_v28 = vor.u32 %v8398_v16, %v7594_v30  ;;  %v8438_v16 = vld [vmem:[#allocation21 + $0x184] sm:$0xf] }
 0x501   :  { %v4695_v24 = vpop.xlane.xlu2 %4694 }
 0x502   :  { %v4696_v63 = vmul.f32 %v4695_v24, %v9353_v59  ;;  %v8441_v24 = vld [vmem:[#allocation21 + $0x194] sm:$0xf0] }
 0x504   :  { %v9424_v2 = vsub.f32 %v9411_v38, %v4696_v63  ;;  %v9427_v33 = vsub.f32 %v9409_v37, %v4696_v63  ;;  %v9430_v58 = vsub.f32 %v9413_v40, %v4696_v63  ;;  %v9432_v36 = vsub.f32 %v4682_v18, %v4696_v63  ;;  %v8415_v18 = vld [vmem:[#allocation21 + $0xc4] sm:$0xf0] }
 0x505   :  { %v7657_v45 = vor.u32 %v8415_v18, %v7656_v26  ;;  %v7761_v63 = vor.u32 %v8441_v24, %v7760_v29  ;;  %v7618_v26 = vld [vmem:[#allocation21 + $0x78] sm:$0xf0]  ;;  %v7661_v29 = vor.u32 %v8414_v22, %v7658_v21  ;;  %v7786_v24 = vld [vmem:[#allocation21 + $0x1c8] sm:$0xf0] }
 0x506   :  { %v4701_v39 = vmul.f32 %v9424_v2, %v9424_v2  ;;  %v4702_v48 = vmul.f32 %v9427_v33, %v9427_v33  ;;  %v4703_v41 = vmul.f32 %v9430_v58, %v9430_v58  ;;  %v4704_v38 = vmul.f32 %v9432_v36, %v9432_v36  ;;  %v7682_v18 = vld [vmem:[#allocation21 + $0xf8] sm:$0xf0] }
 0x507   :  { %5178 = vmatpush.bf16.msra.mxu1 %v7657_v45  ;;  %5207 = vmatpush.bf16.msra.mxu3 %v7761_v63  ;;  %v7621_v32 = vor.u32 %v8404_v3, %v7618_v26  ;;  %v7685_v35 = vor.u32 %v8420_v27, %v7682_v18  ;;  %v8436_v45 = vld [vmem:[#allocation21 + $0x174] sm:$0xf]  ;;  %v7725_v63 = vor.u32 %v8430_v14, %v7722_v23  ;;  %v7778_v27 = vld [vmem:[#allocation21 + $0x1b8] sm:$0xf0] }
 0x508   :  { %v4705_v37 = vsel %vm427_vm0, %v4701_v39, 0.0  ;;  %v4706_v49 = vsel %vm427_vm0, %v4702_v48, 0.0  ;;  %v4708_v42 = vsel %vm427_vm0, %v4703_v41, 0.0  ;;  %v4710_v52 = vsel %vm427_vm0, %v4704_v38, 0.0  ;;  %v7560_v39 = vld [vmem:[#allocation21] sm:$0xf] }
 0x509   :  { %v4707_v40 = vadd.f32 %v4706_v49, %v4705_v37  ;;  %v8391_v48 = vld [vmem:[#allocation21 + $0x4] sm:$0xf0]  ;;  %v7624_v41 = vld [vmem:[#allocation21 + $0x80] sm:$0xf]  ;;  %v7749_v31 = vor.u32 %v8436_v45, %v7746_v50  ;;  %v8444_v26 = vld [vmem:[#allocation21 + $0x1b4] sm:$0xf] }
 0x50a   :  { %v7561_v38 = vor.u32 %v8391_v48, %v7560_v39  ;;  %v8407_v37 = vld [vmem:[#allocation21 + $0x84] sm:$0xf0]  ;;  %v7688_v49 = vld [vmem:[#allocation21 + $0x100] sm:$0xf]  ;;  %v7781_v18 = vor.u32 %v8444_v26, %v7778_v27  ;;  %v7642_v50 = vld [vmem:[#allocation21 + $0xa8] sm:$0xf0] }
 0x50b   :  { %v4709_v51 = vadd.f32 %v4708_v42, %v4707_v40  ;;  %5179 = vmatpush.bf16.msra.mxu1 %v7649_v13  ;;  %v8423_v40 = vld [vmem:[#allocation21 + $0x104] sm:$0xf0]  ;;  %v7625_v42 = vor.u32 %v8407_v37, %v7624_v41  ;;  %v7677_v13 = vor.u32 %v8418_v25, %v7674_v54  ;;  %v7586_v37 = vld [vmem:[#allocation21 + $0x38] sm:$0xf0] }
 0x50c   :  { %5169 = vmatpush.bf16.msra.mxu0 %v7561_v38  ;;  %v8396_v38 = vld [vmem:[#allocation21 + $0x34] sm:$0xf]  ;;  %v7570_v54 = vld [vmem:[#allocation21 + $0x18] sm:$0xf0] }
 0x50d   :  { %v4711_v57 = vadd.f32 %v4710_v52, %v4709_v51  ;;  %v7689_v51 = vor.u32 %v8423_v40, %v7688_v49  ;;  %v7752_v52 = vld [vmem:[#allocation21 + $0x180] sm:$0xf]  ;;  %v8412_v49 = vld [vmem:[#allocation21 + $0xb4] sm:$0xf]  ;;  %v7589_v40 = vor.u32 %v8396_v38, %v7586_v37 }
 0x50f   :  { %4712 = vadd.xlane.f32.xlu2 %v4711_v57  ;;  %5180 = vmatpush.bf16.msra.mxu1 %v7641_v11  ;;  %v8439_v57 = vld [vmem:[#allocation21 + $0x184] sm:$0xf0]  ;;  %v7730_v11 = vld [vmem:[#allocation21 + $0x158] sm:$0xf0] }
 0x510   :  { %v7753_v46 = vor.u32 %v8439_v57, %v7752_v52  ;;  %5195 = vmatpush.bf16.msra.mxu2 %v7689_v51  ;;  %5214 = vmatpush.bf16.msrb.mxu0 %v7621_v32  ;;  %v7733_v56 = vor.u32 %v8432_v34, %v7730_v11  ;;  %v8428_v51 = vld [vmem:[#allocation21 + $0x134] sm:$0xf]  ;;  %v7714_v52 = vld [vmem:[#allocation21 + $0x138] sm:$0xf0]  ;;  %v8394_v32 = vld [vmem:[#allocation21 + $0x24] sm:$0xf] }
 0x511   :  { %v7626_v34 = vld [vmem:[#allocation21 + $0x88] sm:$0xf0] }
 0x512   :  { %5208 = vmatpush.bf16.msra.mxu3 %v7753_v46  ;;  %v7717_v46 = vor.u32 %v8428_v51, %v7714_v52  ;;  %v7629_v22 = vor.u32 %v8406_v6, %v7626_v34 }
 0x513   :  { %5181 = vmatpush.bf16.msra.mxu1 %v7633_v17  ;;  %v8446_v17 = vld [vmem:[#allocation21 + $0x1c4] sm:$0xf] }
 0x514   :  { %5240 = vmatpush.bf16.msrb.mxu2 %v7749_v31  ;;  %5215 = vmatpush.bf16.msrb.mxu0 %v7613_v60  ;;  %v7789_v39 = vor.u32 %v8446_v17, %v7786_v24  ;;  %v7706_v31 = vld [vmem:[#allocation21 + $0x128] sm:$0xf0]  ;;  %v8392_v60 = vld [vmem:[#allocation21 + $0x14] sm:$0xf]  ;;  %v4686_v24 = vld [vmem:[#allocation19] sm:$0xf] }
 0x515   :  { %v7709_v1 = vor.u32 %v8426_v47, %v7706_v31  ;;  %v4744_v37 = vperm.slane %v4686_v24, 0  ;;  %v4747_v51 = vperm.slane %v4686_v24, 3 }
 0x516   :  { %5253 = vmatpush.bf16.msrb.mxu3 %v7813_v20  ;;  %v7770_v20 = vld [vmem:[#allocation21 + $0x1a8] sm:$0xf0] }
 0x517   :  { %5182 = vmatpush.bf16.msra.mxu1 %v7625_v42  ;;  %v7650_v42 = vld [vmem:[#allocation21 + $0xb8] sm:$0xf0]  ;;  %v7773_v25 = vor.u32 %v8442_v10, %v7770_v20 }
 0x518   :  { %5241 = vmatpush.bf16.msrb.mxu2 %v7741_v9  ;;  %5216 = vmatpush.bf16.msrb.mxu0 %v7605_v44  ;;  %v7653_v3 = vor.u32 %v8412_v49, %v7650_v42  ;;  %v7573_v9 = vor.u32 %v8392_v60, %v7570_v54  ;;  %v7562_v44 = vld [vmem:[#allocation21 + $0x8] sm:$0xf0]  ;;  %v4746_v42 = vperm.slane %v4686_v24, 2 }
 0x519   :  { %v7565_v30 = vor.u32 %v8390_v43, %v7562_v44 }
 0x51a   :  { %5254 = vmatpush.bf16.msrb.mxu3 %v7805_v62 }
 0x51b   :  { %5227 = vmatpush.bf16.msrb.mxu1 %v7685_v35  ;;  %v8410_v35 = vld [vmem:[#allocation21 + $0xa4] sm:$0xf] }
 0x51c   :  { %5242 = vmatpush.bf16.msrb.mxu2 %v7733_v56  ;;  %5217 = vmatpush.bf16.msrb.mxu0 %v7597_v28  ;;  %v7645_v53 = vor.u32 %v8410_v35, %v7642_v50  ;;  %v8422_v56 = vld [vmem:[#allocation21 + $0x104] sm:$0xf]  ;;  %v4685_v28 = vld [vmem:[#allocation18] sm:$0xf] }
 0x51d   :  { %v7693_v14 = vor.u32 %v8422_v56, %v7690_v12  ;;  %v4734_v38 = vperm.slane %v4685_v28, 3 }
 0x51e   :  { %5255 = vmatpush.bf16.msrb.mxu3 %v7797_v19  ;;  %v7754_v19 = vld [vmem:[#allocation21 + $0x188] sm:$0xf0] }
 0x51f   :  { %5228 = vmatpush.bf16.msrb.mxu1 %v7677_v13  ;;  %v7634_v13 = vld [vmem:[#allocation21 + $0x98] sm:$0xf0]  ;;  %v7757_v23 = vor.u32 %v8438_v16, %v7754_v19 }
 0x520   :  { %5243 = vmatpush.bf16.msrb.mxu2 %v7725_v63  ;;  %5218 = vmatpush.bf16.msrb.mxu0 %v7589_v40  ;;  %v7637_v62 = vor.u32 %v8408_v55, %v7634_v13  ;;  %v4731_v63 = vperm.slane %v4685_v28, 0  ;;  %v4745_v40 = vperm.slane %v4686_v24, 1  ;;  %v4836_v13 = vld [vmem:[#allocation22] sm:$0x3] }
 0x521   :  { %v4839_v43 = vperm.slane %v4836_v13, 1 }
 0x522   :  { %5256 = vmatpush.bf16.msrb.mxu3 %v7789_v39 }
 0x523   :  { %5229 = vmatpush.bf16.msrb.mxu1 %v7669_v0  ;;  %v7765_v0 = vor.u32 %v8440_v15, %v7762_v5 }
 0x524   :  { %5244 = vmatpush.bf16.msrb.mxu2 %v7717_v46 }
 0x526   :  { %5257 = vmatpush.bf16.msrb.mxu3 %v7781_v18 }
 0x527   :  { %5230 = vmatpush.bf16.msrb.mxu1 %v7661_v29 }
 0x528   :  { %5245 = vmatpush.bf16.msrb.mxu2 %v7709_v1 }
 0x52a   :  { %5258 = vmatpush.bf16.msrb.mxu3 %v7773_v25 }
 0x52b   :  { %5231 = vmatpush.bf16.msrb.mxu1 %v7653_v3 }
 0x52c   :  { %5246 = vmatpush.bf16.msrb.mxu2 %v7701_v61 }
 0x52e   :  { %5259 = vmatpush.bf16.msrb.mxu3 %v7765_v0 }
 0x52f   :  { %5232 = vmatpush.bf16.msrb.mxu1 %v7645_v53 }
 0x530   :  { %5247 = vmatpush.bf16.msrb.mxu2 %v7693_v14 }
 0x532   :  { %5260 = vmatpush.bf16.msrb.mxu3 %v7757_v23 }
 0x533   :  { %5233 = vmatpush.bf16.msrb.mxu1 %v7637_v62  ;;  %v4838_v62 = vperm.slane %v4836_v13, 0 }
 0x537   :  { %5234 = vmatpush.bf16.msrb.mxu1 %v7629_v22 }
 0x582   :  { %v4713_v48 = vpop.xlane.xlu2 %4712 }
 0x583   :  { %v4714_v41 = vmul.f32 %v4713_v48, %v9353_v59  ;;  %v7578_v59 = vld [vmem:[#allocation21 + $0x28] sm:$0xf0]  ;;  %v4732_v48 = vperm.slane %v4685_v28, 1 }
 0x584   :  { %v7581_v45 = vor.u32 %v8394_v32, %v7578_v59 }
 0x585   :  { %v9447_v57 = vadd.f32 1e-05, %v4714_v41  ;;  %v4733_v41 = vperm.slane %v4685_v28, 2 }
 0x586   :  { %5219 = vmatpush.bf16.msrb.mxu0 %v7581_v45 }
 0x587   :  { %8506 = vrsqrt.f32 %v9447_v57  ;;  %vm4722_vm1 = vweird.f32 %v9447_v57 }
 0x58a   :  { %5220 = vmatpush.bf16.msrb.mxu0 %v7573_v9 }
 0x58d   :  { %v8507_v11 = vpop.eup %8506 }
 0x58e   :  { %v4717_v8 = vmul.f32 %v8507_v11, %v9447_v57  ;;  %5221 = vmatpush.bf16.msrb.mxu0 %v7565_v30  ;;  %vm4723_vm15 = vweird.f32 %v8507_v11 }
 0x58f   :  { %vm4724_vm2 = vmor %vm4722_vm1, %vm4723_vm15 }
 0x590   :  { %v4718_v21 = vmul.f32 %v8507_v11, %v4717_v8 }
 0x592   :  { %v4719_v17 = vmul.f32 0.5, %v4718_v21 }
 0x594   :  { %v4720_v29 = vsub.f32 1.5, %v4719_v17 }
 0x596   :  { %v4721_v39 = vmul.f32 %v8507_v11, %v4720_v29 }
 0x598   :  { %v4725_v49 = vsel %vm4724_vm2, %v8507_v11, %v4721_v39 }
 0x599   :  { %v4726_v52 = vmul.f32 %v4725_v49, %v9424_v2  ;;  %v4727_v3 = vmul.f32 %v4725_v49, %v9427_v33  ;;  %v4728_v46 = vmul.f32 %v4725_v49, %v9430_v58  ;;  %v4729_v26 = vmul.f32 %v4725_v49, %v9432_v36 }
 0x59b   :  { %v4739_v27 = vmul.f32 %v4731_v63, %v4726_v52  ;;  %v4740_v18 = vmul.f32 %v4732_v48, %v4727_v3  ;;  %v4741_v57 = vmul.f32 %v4733_v41, %v4728_v46  ;;  %v4742_v32 = vmul.f32 %v4734_v38, %v4729_v26 }
 0x59c   :  { %v8968_v63 = vmov 256.0  }
 0x59d   :  { %v4752_v59 = vadd.f32 %v4744_v37, %v4739_v27  ;;  %v4753_v35 = vadd.f32 %v4745_v40, %v4740_v18  ;;  %v4754_v45 = vadd.f32 %v4746_v42, %v4741_v57  ;;  %v4755_v50 = vadd.f32 %v4747_v51, %v4742_v32  ;;  %v8461_v57 = vld [vmem:[#allocation27 + $0x38] sm:$0xff] }
 0x59e   :  { %8508 = vrcp.f32 %v8968_v63  ;;  %v8469_v32 = vld [vmem:[#allocation27 + $0x78] sm:$0xff] }
 0x59f   :  { %vm4756_vm3 = vcmp.gt.f32.partialorder %v4752_v59, 0.0  ;;  %v4760_v47 = vmul.f32 0.01, %v4752_v59  ;;  %vm4757_vm4 = vcmp.gt.f32.partialorder %v4753_v35, 0.0  ;;  %v4761_v31 = vmul.f32 0.01, %v4753_v35 }
 0x5a0   :  { %vm4758_vm5 = vcmp.gt.f32.partialorder %v4754_v45, 0.0  ;;  %v4762_v2 = vmul.f32 0.01, %v4754_v45  ;;  %vm4759_vm6 = vcmp.gt.f32.partialorder %v4755_v50, 0.0  ;;  %v4763_v33 = vmul.f32 0.01, %v4755_v50 }
 0x5a1   :  { %v4764_v53 = vsel %vm4756_vm3, %v4752_v59, %v4760_v47  ;;  %v4765_v58 = vsel %vm4757_vm4, %v4753_v35, %v4761_v31  ;;  %v8460_v59 = vld [vmem:[#allocation27 + $0x30] sm:$0xff]  ;;  %v8458_v47 = vld [vmem:[#allocation27 + $0x20] sm:$0xff] }
 0x5a2   :  { %v4768_v1 = vpack.c.bf16 %v4764_v53, %v4764_v53  ;;  %v4769_v36 = vpack.c.bf16 %v4765_v58, %v4765_v58  ;;  %v4766_v10 = vsel %vm4758_vm5, %v4754_v45, %v4762_v2  ;;  %v4767_v20 = vsel %vm4759_vm6, %v4755_v50, %v4763_v33  ;;  %v8468_v35 = vld [vmem:[#allocation27 + $0x70] sm:$0xff]  ;;  %v8459_v45 = vld [vmem:[#allocation27 + $0x28] sm:$0xff]  ;;  %v8466_v31 = vld [vmem:[#allocation27 + $0x60] sm:$0xff] }
 0x5a3   :  { %v4770_v60 = vpack.c.bf16 %v4766_v10, %v4766_v10  ;;  %v4771_v25 = vpack.c.bf16 %v4767_v20, %v4767_v20  ;;  %v8467_v50 = vld [vmem:[#allocation27 + $0x68] sm:$0xff]  ;;  %v8457_v2 = vld [vmem:[#allocation27 + $0x18] sm:$0xff]  ;;  %v8456_v53 = vld [vmem:[#allocation27 + $0x10] sm:$0xff] }
 0x5a4   :  { %5170 = vmatmul.bf16.vlgmr.msra.gmra.mxu0 %v4768_v1  ;;  %5183 = vmatmul.bf16.vlgmr.msra.gmra.mxu1 %v4769_v36  ;;  %v8509_v39 = vpop.eup %8508  ;;  %v8465_v33 = vld [vmem:[#allocation27 + $0x58] sm:$0xff]  ;;  %v8464_v58 = vld [vmem:[#allocation27 + $0x50] sm:$0xff]  ;;  %v8454_v10 = vld [vmem:[#allocation27] sm:$0xff] }
 0x5a5   :  { %5196 = vmatmul.bf16.vlgmr.msra.gmra.mxu2 %v4770_v60  ;;  %5209 = vmatmul.bf16.vlgmr.msra.gmra.mxu3 %v4771_v25  ;;  %v5274_v48 = vmul.f32 256.0, %v8509_v39  ;;  %vm5278_vm7 = vweird.f32 %v8509_v39  ;;  %v8462_v20 = vld [vmem:[#allocation27 + $0x40] sm:$0xff] }
 0x5a6   :  { %5458 = vmatpush.bf16.msra.mxu0 %v8461_v57  ;;  %5471 = vmatpush.bf16.msra.mxu1 %v8469_v32 }
 0x5a7   :  { %v5275_v41 = vsub.f32 1.0, %v5274_v48 }
 0x5a9   :  { %v5276_v38 = vmul.f32 %v8509_v39, %v5275_v41 }
 0x5aa   :  { %5459 = vmatpush.bf16.msra.mxu0 %v8460_v59  ;;  %5472 = vmatpush.bf16.msra.mxu1 %v8468_v35 }
 0x5ab   :  { %v5277_v37 = vadd.f32 %v8509_v39, %v5276_v38 }
 0x5ad   :  { %v5279_v49 = vsel %vm5278_vm7, %v8509_v39, %v5277_v37 }
 0x5ae   :  { %5460 = vmatpush.bf16.msra.mxu0 %v8459_v45  ;;  %5473 = vmatpush.bf16.msra.mxu1 %v8467_v50 }
 0x5b2   :  { %5461 = vmatpush.bf16.msra.mxu0 %v8458_v47  ;;  %5474 = vmatpush.bf16.msra.mxu1 %v8466_v31 }
 0x5b4   :  { %5222 = vmatmul.bf16.vlgmr.msrb.gmra.mxu0 %v4768_v1  ;;  %5235 = vmatmul.bf16.vlgmr.msrb.gmra.mxu1 %v4769_v36  ;;  %v8455_v1 = vld [vmem:[#allocation27 + $0x8] sm:$0xff] }
 0x5b5   :  { %5248 = vmatmul.bf16.vlgmr.msrb.gmra.mxu2 %v4770_v60  ;;  %5261 = vmatmul.bf16.vlgmr.msrb.gmra.mxu3 %v4771_v25  ;;  %v8463_v36 = vld [vmem:[#allocation27 + $0x48] sm:$0xff] }
 0x5b6   :  { %5462 = vmatpush.bf16.msra.mxu0 %v8457_v2  ;;  %5475 = vmatpush.bf16.msra.mxu1 %v8465_v33 }
 0x5ba   :  { %5463 = vmatpush.bf16.msra.mxu0 %v8456_v53  ;;  %5476 = vmatpush.bf16.msra.mxu1 %v8464_v58 }
 0x5be   :  { %5464 = vmatpush.bf16.msra.mxu0 %v8455_v1  ;;  %5477 = vmatpush.bf16.msra.mxu1 %v8463_v36 }
 0x5c2   :  { %5465 = vmatpush.bf16.msra.mxu0 %v8454_v10  ;;  %5478 = vmatpush.bf16.msra.mxu1 %v8462_v20 }
 0x621   :  { %v5171_v54 = vpop.f32.mrf.mxu0  ;;  %v5184_v55 = vpop.f32.mrf.mxu1 }
 0x622   :  { %v5172_v5 = vadd.f32 %v5171_v54, %v4838_v62  ;;  %v5267_v62 = vld [vmem:[#allocation25] sm:$0x3] }
 0x624   :  { %v5185_v11 = vadd.f32 %v5184_v55, %v5172_v5 }
 0x628   :  { %v5197_v7 = vpop.f32.mrf.mxu2  ;;  %v5210_v4 = vpop.f32.mrf.mxu3 }
 0x629   :  { %v5173_v15 = vpop.f32.mrf.mxu0  ;;  %v5186_v9 = vpop.f32.mrf.mxu1  ;;  %v5198_v56 = vadd.f32 %v5197_v7, %v5185_v11 }
 0x62a   :  { %v5266_v15 = vld [vmem:[#allocation24] sm:$0x3] }
 0x62b   :  { %v5211_v19 = vadd.f32 %v5210_v4, %v5198_v56 }
 0x62d   :  { %v5268_v23 = vsel %vm427_vm0, %v5211_v19, 0.0 }
 0x630   :  { %v5199_v61 = vpop.f32.mrf.mxu2  ;;  %v5212_v44 = vpop.f32.mrf.mxu3 }
 0x631   :  { %v5223_v6 = vpop.f32.mrf.mxu0  ;;  %v5236_v34 = vpop.f32.mrf.mxu1  ;;  %v5306_v61 = vperm.slane %v5266_v15, 1 }
 0x632   :  { %v5224_v0 = vadd.f32 %v5223_v6, %v4839_v43  ;;  %v5305_v43 = vperm.slane %v5266_v15, 0  ;;  %v5312_v6 = vperm.slane %v5267_v62, 0 }
 0x634   :  { %v5237_v12 = vadd.f32 %v5236_v34, %v5224_v0  ;;  %v5313_v34 = vperm.slane %v5267_v62, 1 }
 0x638   :  { %v5249_v8 = vpop.f32.mrf.mxu2  ;;  %v5262_v16 = vpop.f32.mrf.mxu3 }
 0x639   :  { %v5250_v30 = vadd.f32 %v5249_v8, %v5237_v12  ;;  %v5225_v22 = vpop.f32.mrf.mxu0  ;;  %v5238_v21 = vpop.f32.mrf.mxu1 }
 0x63b   :  { %v5263_v14 = vadd.f32 %v5262_v16, %v5250_v30 }
 0x63d   :  { %v5269_v17 = vsel %vm427_vm0, %v5263_v14, 0.0 }
 0x63e   :  { %v5270_v28 = vadd.f32 %v5269_v17, %v5268_v23  ;;  %v8501_v17 = vld [vmem:[#allocation28] ss:$0 sm:$0xff] }
 0x640   :  { %v5251_v29 = vpop.f32.mrf.mxu2  ;;  %v5264_v24 = vpop.f32.mrf.mxu3  ;;  %5271 = vadd.xlane.f32.xlu0 %v5270_v28 }
 0x6b3   :  { %v5272_v40 = vpop.xlane.xlu0 %5271 }
 0x6b4   :  { %v5280_v42 = vmul.f32 %v5279_v49, %v5272_v40 }
 0x6b6   :  { %v5281_v51 = vsub.f32 %v5211_v19, %v5280_v42  ;;  %v5282_v52 = vsub.f32 %v5263_v14, %v5280_v42 }
 0x6b8   :  { %v5283_v3 = vmul.f32 %v5281_v51, %v5281_v51  ;;  %v5284_v46 = vmul.f32 %v5282_v52, %v5282_v52 }
 0x6ba   :  { %v5285_v26 = vsel %vm427_vm0, %v5283_v3, 0.0  ;;  %v5286_v27 = vsel %vm427_vm0, %v5284_v46, 0.0 }
 0x6bb   :  { %v5287_v18 = vadd.f32 %v5286_v27, %v5285_v26 }
 0x6bd   :  { %5288 = vadd.xlane.f32.xlu1 %v5287_v18 }
 0x730   :  { %v5289_v60 = vpop.xlane.xlu1 %5288 }
 0x731   :  { %v5290_v25 = vmul.f32 %v5289_v60, %v5279_v49 }
 0x733   :  { %v5291_v54 = vadd.f32 1e-05, %v5290_v25 }
 0x735   :  { %8510 = vrsqrt.f32 %v5291_v54  ;;  %vm5298_vm8 = vweird.f32 %v5291_v54 }
 0x73b   :  { %v8511_v55 = vpop.eup %8510 }
 0x73c   :  { %v5293_v13 = vmul.f32 %v8511_v55, %v5291_v54  ;;  %vm5299_vm0 = vweird.f32 %v8511_v55 }
 0x73d   :  { %vm5300_vm9 = vmor %vm5298_vm8, %vm5299_vm0 }
 0x73e   :  { %v5294_v7 = vmul.f32 %v8511_v55, %v5293_v13 }
 0x740   :  { %v5295_v4 = vmul.f32 0.5, %v5294_v7 }
 0x742   :  { %v5296_v9 = vsub.f32 1.5, %v5295_v4 }
 0x744   :  { %v5297_v5 = vmul.f32 %v8511_v55, %v5296_v9 }
 0x746   :  { %v5301_v44 = vsel %vm5300_vm9, %v8511_v55, %v5297_v5 }
 0x747   :  { %v5302_v11 = vmul.f32 %v5301_v44, %v5281_v51  ;;  %v5303_v0 = vmul.f32 %v5301_v44, %v5282_v52 }
 0x749   :  { %v5309_v56 = vmul.f32 %v5305_v43, %v5302_v11  ;;  %v5310_v12 = vmul.f32 %v5306_v61, %v5303_v0 }
 0x74b   :  { %v5316_v8 = vadd.f32 %v5312_v6, %v5309_v56  ;;  %v5317_v16 = vadd.f32 %v5313_v34, %v5310_v12 }
 0x74d   :  { %vm5318_vm10 = vcmp.gt.f32.partialorder %v5316_v8, 0.0  ;;  %v5320_v19 = vmul.f32 0.01, %v5316_v8  ;;  %vm5319_vm11 = vcmp.gt.f32.partialorder %v5317_v16, 0.0  ;;  %v5321_v30 = vmul.f32 0.01, %v5317_v16 }
 0x74f   :  { %v5322_v22 = vsel %vm5318_vm10, %v5316_v8, %v5320_v19  ;;  %v5323_v21 = vsel %vm5319_vm11, %v5317_v16, %v5321_v30 }
 0x750   :  { %v5324_v14 = vpack.c.bf16 %v5322_v22, %v5322_v22  ;;  %v5325_v23 = vpack.c.bf16 %v5323_v21, %v5323_v21 }
 0x752   :  { %5466 = vmatmul.bf16.vlgmr.msra.gmra.mxu0 %v5324_v14  ;;  %5479 = vmatmul.bf16.vlgmr.msra.gmra.mxu1 %v5325_v23 }
 0x7cf   :  { %v5467_v28 = vpop.f32.mrf.mxu0  ;;  %v5480_v29 = vpop.f32.mrf.mxu1 }
 0x7d0   :  { %v5468_v24 = vadd.f32 %v8501_v17, %v5467_v28 }
 0x7d2   :  { %v5481_v63 = vadd.f32 %v5480_v29, %v5468_v24 }
 0x7d4   :  { %5484 = vst [vmem:[#allocation30] sm:$0x3] %v5481_v63 }
 0x7d5   :  { %5495 = dma.vmem_to_hbm [thread:$0]  %s5491_s1, 32, %s5493_s7, [#allocation6]  }
 0x7d7   :  { %v5469_v39 = vpop.f32.mrf.mxu0  ;;  %v5482_v48 = vpop.f32.mrf.mxu1 }
 0x7d8   :  { %8938 = dma.done.wait [#allocation6], 32  }
 0x7d9   :  { %8939 = vsyncadd [#allocation6], 4294967264 }
 0x7da   :  { %5500 = vsyncpa [#allocation5], 1 }
 0x7db   :  { %5501 = vsyncpa [#allocation8], 1 }
 0x7dc   :  { %5502 = vsyncpa [#allocation11], 1 }
 0x7dd   :  { %5503 = vsyncpa [#allocation14], 1 }
 0x7de   :  { %5504 = vsyncpa [#allocation17], 1 }
 0x7df   :  { %5505 = vsyncpa [#allocation20], 1 }
 0x7e0   :  { %5506 = vsyncpa [#allocation23], 1 }
 0x7e1   :  { %5507 = vsyncpa [#allocation26], 1 }
 0x7e2   :  { %5508 = vsyncpa [#allocation29], 1 }
 0x7e3   :  { %5509 = vsyncpa [#allocation6], 1 }

</bundles_post_ra>
